<compile_context>
chip_gen: v5e
topology: v5e:2x2
jax: 0.10.0
libtpu: 0.0.40
codegen_flags: <defaults>
</compile_context>

<pallas_src>
import functools

import jax
import jax.numpy as jnp
import numpy as np
from jax.experimental import pallas as pl
from jax.experimental.pallas import tpu as pltpu

EPS = 1e-5


# ----------------------------- Pallas kernels ------------------------------

def attn_convz_kernel(x_ref, y_ref, wq_ref, wk_ref, wv_ref, wz_ref,
                      z_ref, psum_ref, psumsq_ref):
    """One batch element: convQ/K/V (1x1 = GEMM), attention scores, Softmax2d,
    V @ M, convZ, plus per-batch BatchNorm partial sums (sum, sum-of-squares)."""
    x = x_ref[0]                                  # (HW, C)  channels on lanes
    y = y_ref[0]                                  # (HW, C)

    q = jnp.dot(x, wq_ref[...], preferred_element_type=jnp.float32)   # (HW, C/2)
    k = jnp.dot(y, wk_ref[...], preferred_element_type=jnp.float32)   # (HW, C/2)
    v = jnp.dot(y, wv_ref[...], preferred_element_type=jnp.float32)   # (HW, C/2)

    # torch computes M[i, j] = sum_c Q[c, i] K[c, j].  We build the transposed
    # score matrix Mt[j, i] = M[i, j] so both MXU contractions below run over the
    # minor (lane) dimension (no explicit transposes needed).
    mt = jax.lax.dot_general(k, q, (((1,), (1,)), ((), ())),
                             preferred_element_type=jnp.float32)       # (HW, HW)

    # torch.nn.Softmax2d() is applied to M[:, None, :, :]; it normalizes over the
    # channel axis, which has size 1, so every entry becomes exp(0)/exp(0) == 1.
    # (Softmax2d is elementwise over that singleton axis, so applying it to the
    # transposed scores is exactly equivalent.)
    e = jnp.exp(mt - mt)
    attn_t = e / e                                                     # == 1.0 everywhere

    # Z[c, j] = sum_i V[c, i] * M[i, j]  ->  channels-last:  z_half = Mt @ v.
    z_half = jnp.dot(attn_t, v, preferred_element_type=jnp.float32)    # (HW, C/2)

    # torch.reshape(Z, (-1, 128, 14, 14)) is a pure re-layout; in flattened
    # channels-last form it is the identity.  convZ (1x1) is one more GEMM.
    z_full = jnp.dot(z_half, wz_ref[...], preferred_element_type=jnp.float32)  # (HW, C)

    z_ref[0] = z_full
    # Streaming BatchNorm statistics for this batch element; finalized in kernel 2.
    psum_ref[0] = jnp.sum(z_full, axis=0, keepdims=True)                # (1, C)
    psumsq_ref[0] = jnp.sum(z_full * z_full, axis=0, keepdims=True)     # (1, C)


def bn_residual_kernel(x_ref, z_ref, psum_ref, psumsq_ref, gamma_ref, beta_ref,
                       out_ref, *, count):
    """Finalize training-mode BatchNorm2d (batch mean / biased variance, eps=1e-5)
    from the streamed per-batch partials, then fused scale/shift + residual add."""
    total = jnp.sum(psum_ref[...], axis=0)            # (1, C)
    total_sq = jnp.sum(psumsq_ref[...], axis=0)       # (1, C)
    inv_n = 1.0 / count
    mean = total * inv_n
    var = total_sq * inv_n - mean * mean              # biased variance (PyTorch training BN)
    scale = gamma_ref[...] * jax.lax.rsqrt(var + EPS)
    shift = beta_ref[...] - mean * scale
    out_ref[...] = x_ref[...] + z_ref[...] * scale + shift


# ------------------------------ host wrapper -------------------------------

def _pick_row_tile(rows):
    """Largest row tile that divides `rows` and is sublane-aligned (multiple of 8)."""
    for t in (512, 256, 128, 112, 64, 56, 48, 40, 32, 24, 16, 8):
        if rows % t == 0:
            return t
    return rows


@jax.jit
def cma_block_forward(x_nchw, y_nchw, params):
    """cmaBlock.forward(x, y) for the default config (stride=1, training-mode BN)."""
    B, C, H, W = x_nchw.shape
    Ch = C // 2
    HW = H * W

    # NCHW -> flattened channels-last (glue); the torch reshape to (-1, 128, 14, 14)
    # pins planes=256, H=W=14 and is the identity in this layout.
    x_cl = jnp.transpose(x_nchw, (0, 2, 3, 1)).reshape(B, HW, C).astype(jnp.float32)
    y_cl = jnp.transpose(y_nchw, (0, 2, 3, 1)).reshape(B, HW, C).astype(jnp.float32)

    z_cl, psum, psumsq = pl.pallas_call(
        attn_convz_kernel,
        grid=(B,),
        out_shape=(
            jax.ShapeDtypeStruct((B, HW, C), jnp.float32),
            jax.ShapeDtypeStruct((B, 1, C), jnp.float32),
            jax.ShapeDtypeStruct((B, 1, C), jnp.float32),
        ),
        in_specs=[
            pl.BlockSpec((1, HW, C), lambda b: (b, 0, 0)),     # x
            pl.BlockSpec((1, HW, C), lambda b: (b, 0, 0)),     # y
            pl.BlockSpec((C, Ch), lambda b: (0, 0)),           # Wq  (kept resident)
            pl.BlockSpec((C, Ch), lambda b: (0, 0)),           # Wk
            pl.BlockSpec((C, Ch), lambda b: (0, 0)),           # Wv
            pl.BlockSpec((Ch, C), lambda b: (0, 0)),           # Wz
        ],
        out_specs=(
            pl.BlockSpec((1, HW, C), lambda b: (b, 0, 0)),
            pl.BlockSpec((1, 1, C), lambda b: (b, 0, 0)),
            pl.BlockSpec((1, 1, C), lambda b: (b, 0, 0)),
        ),
        compiler_params=pltpu.CompilerParams(dimension_semantics=("parallel",)),
    )(x_cl, y_cl, params["wq"], params["wk"], params["wv"], params["wz"])

    rows = B * HW
    tr = _pick_row_tile(rows)
    x_flat = x_cl.reshape(rows, C)
    z_flat = z_cl.reshape(rows, C)

    out_flat = pl.pallas_call(
        functools.partial(bn_residual_kernel, count=float(rows)),
        grid=(rows // tr,),
        out_shape=jax.ShapeDtypeStruct((rows, C), jnp.float32),
        in_specs=[
            pl.BlockSpec((tr, C), lambda i: (i, 0)),           # residual x
            pl.BlockSpec((tr, C), lambda i: (i, 0)),           # convZ output
            pl.BlockSpec((B, 1, C), lambda i: (0, 0, 0)),      # BN partial sums
            pl.BlockSpec((B, 1, C), lambda i: (0, 0, 0)),      # BN partial sum-of-squares
            pl.BlockSpec((1, C), lambda i: (0, 0)),            # gamma
            pl.BlockSpec((1, C), lambda i: (0, 0)),            # beta
        ],
        out_specs=pl.BlockSpec((tr, C), lambda i: (i, 0)),
        compiler_params=pltpu.CompilerParams(dimension_semantics=("parallel",)),
    )(x_flat, z_flat, psum, psumsq, params["gamma"], params["beta"])

    out = out_flat.reshape(B, H, W, C)
    return jnp.transpose(out, (0, 3, 1, 2))                    # back to NCHW


# ------------------------------ pure-JAX ref -------------------------------

def reference_forward(x, y, params):
    """Literal re-implementation of cmaBlock.forward in plain JAX (channels-first)."""
    B, C, H, W = x.shape
    Ch = C // 2
    hp = jax.lax.Precision.HIGHEST

    def conv1x1(inp, w_io):            # w_io: (Cin, Cout) == torch_weight[:, :, 0, 0].T
        return jnp.einsum("bchw,cd->bdhw", inp, w_io, precision=hp)

    V = conv1x1(y, params["wv"]).reshape(B, Ch, H * W)            # torch.flatten(V, 2, 3)
    Q = conv1x1(x, params["wq"]).reshape(B, Ch, H * W)
    K = conv1x1(y, params["wk"]).reshape(B, Ch, H * W)
    M = jnp.einsum("bci,bcj->bij", Q, K, precision=hp)            # Q^T K
    M = jax.nn.softmax(M[:, None], axis=1)[:, 0]                  # Softmax2d (size-1 channel axis)
    Z = jnp.einsum("bci,bij->bcj", V, M, precision=hp)            # V @ M
    Z = Z.reshape(B, Ch, H, W)                                    # torch.reshape(Z, (-1, 128, 14, 14))
    Z = conv1x1(Z, params["wz"])
    mean = jnp.mean(Z, axis=(0, 2, 3), keepdims=True)             # training-mode BatchNorm2d
    var = jnp.mean((Z - mean) ** 2, axis=(0, 2, 3), keepdims=True)
    g = params["gamma"].reshape(1, C, 1, 1)
    b = params["beta"].reshape(1, C, 1, 1)
    Z = (Z - mean) * jax.lax.rsqrt(var + EPS) * g + b
    return x + Z


# ----------------------------------- main -----------------------------------

if __name__ == "__main__":
    # The hard-coded torch.reshape(Z, (-1, 128, 14, 14)) in cmaBlock.forward pins
    # planes = 256 and H = W = 14; the batch size is free and kept small.
    B, C, H, W = 4, 256, 14, 14
    Ch = C // 2

    key = jax.random.PRNGKey(0)
    kx, ky, kq, kk, kv, kz, kg, kb = jax.random.split(key, 8)

    x = jax.random.normal(kx, (B, C, H, W), jnp.float32)
    y = jax.random.normal(ky, (B, C, H, W), jnp.float32)

    params = {
        # 1x1-conv weights stored as (Cin, Cout) matrices == torch_weight[:, :, 0, 0].T
        "wq": 0.1 * jax.random.normal(kq, (C, Ch), jnp.float32),
        "wk": 0.1 * jax.random.normal(kk, (C, Ch), jnp.float32),
        "wv": 0.1 * jax.random.normal(kv, (C, Ch), jnp.float32),
        "wz": 0.1 * jax.random.normal(kz, (Ch, C), jnp.float32),
        "gamma": 1.0 + 0.1 * jax.random.normal(kg, (1, C), jnp.float32),
        "beta": 0.1 * jax.random.normal(kb, (1, C), jnp.float32),
    }

    out = cma_block_forward(x, y, params)
    jax.block_until_ready(out)

    ref = reference_forward(x, y, params)
    np.testing.assert_allclose(np.asarray(out), np.asarray(ref), rtol=5e-3, atol=5e-3)

    print("KERNEL_OK")
</pallas_src>

<mosaic_0001>
module attributes {stable_mosaic.version = 11 : i64} {
  func.func @attn_convz_kernel(%arg0: i32, %arg1: memref<1x196x256xf32, #tpu.memory_space<vmem>>, %arg2: memref<1x196x256xf32, #tpu.memory_space<vmem>>, %arg3: memref<256x128xf32, #tpu.memory_space<vmem>>, %arg4: memref<256x128xf32, #tpu.memory_space<vmem>>, %arg5: memref<256x128xf32, #tpu.memory_space<vmem>>, %arg6: memref<128x256xf32, #tpu.memory_space<vmem>>, %arg7: memref<1x196x256xf32, #tpu.memory_space<vmem>>, %arg8: memref<1x1x256xf32, #tpu.memory_space<vmem>>, %arg9: memref<1x1x256xf32, #tpu.memory_space<vmem>>) attributes {dimension_semantics = [#tpu.dimension_semantics<parallel>], iteration_bounds = array<i64: 4>, scalar_prefetch = 0 : i64, scratch_operands = 0 : i64, tpu.core_type = #tpu.core_type<tc>, window_params = [{transform_indices = @transform_0, window_bounds = array<i64: 1, 196, 256>}, {transform_indices = @transform_1, window_bounds = array<i64: 1, 196, 256>}, {pipeline_mode = #tpu.pipeline_mode<synchronous>, transform_indices = @transform_2, window_bounds = array<i64: 256, 128>}, {pipeline_mode = #tpu.pipeline_mode<synchronous>, transform_indices = @transform_3, window_bounds = array<i64: 256, 128>}, {pipeline_mode = #tpu.pipeline_mode<synchronous>, transform_indices = @transform_4, window_bounds = array<i64: 256, 128>}, {pipeline_mode = #tpu.pipeline_mode<synchronous>, transform_indices = @transform_5, window_bounds = array<i64: 128, 256>}, {transform_indices = @transform_6, window_bounds = array<i64: 1, 196, 256>}, {transform_indices = @transform_7, window_bounds = array<i64: 1, 1, 256>}, {transform_indices = @transform_8, window_bounds = array<i64: 1, 1, 256>}]} {
    %c0 = arith.constant 0 : index
    %c0_0 = arith.constant 0 : index
    %c0_1 = arith.constant 0 : index
    %0 = vector.load %arg1[%c0, %c0_0, %c0_1] : memref<1x196x256xf32, #tpu.memory_space<vmem>>, vector<1x196x256xf32>
    %1 = vector.shape_cast %0 : vector<1x196x256xf32> to vector<196x256xf32>
    %c0_2 = arith.constant 0 : index
    %c0_3 = arith.constant 0 : index
    %c0_4 = arith.constant 0 : index
    %2 = vector.load %arg2[%c0_2, %c0_3, %c0_4] : memref<1x196x256xf32, #tpu.memory_space<vmem>>, vector<1x196x256xf32>
    %3 = vector.shape_cast %2 : vector<1x196x256xf32> to vector<196x256xf32>
    %c0_5 = arith.constant 0 : index
    %c0_6 = arith.constant 0 : index
    %4 = vector.load %arg3[%c0_5, %c0_6] : memref<256x128xf32, #tpu.memory_space<vmem>>, vector<256x128xf32>
    %cst = arith.constant dense<0.000000e+00> : vector<196x128xf32>
    %5 = tpu.matmul %1, %4, %cst {dimension_numbers = #tpu.dot_dimension_numbers<[1], [0], [0], [1], [0, 0, 1, 1], [], []>} : vector<196x256xf32>, vector<256x128xf32>, vector<196x128xf32> -> vector<196x128xf32>
    %c0_7 = arith.constant 0 : index
    %c0_8 = arith.constant 0 : index
    %6 = vector.load %arg4[%c0_7, %c0_8] : memref<256x128xf32, #tpu.memory_space<vmem>>, vector<256x128xf32>
    %cst_9 = arith.constant dense<0.000000e+00> : vector<196x128xf32>
    %7 = tpu.matmul %3, %6, %cst_9 {dimension_numbers = #tpu.dot_dimension_numbers<[1], [0], [0], [1], [0, 0, 1, 1], [], []>} : vector<196x256xf32>, vector<256x128xf32>, vector<196x128xf32> -> vector<196x128xf32>
    %c0_10 = arith.constant 0 : index
    %c0_11 = arith.constant 0 : index
    %8 = vector.load %arg5[%c0_10, %c0_11] : memref<256x128xf32, #tpu.memory_space<vmem>>, vector<256x128xf32>
    %cst_12 = arith.constant dense<0.000000e+00> : vector<196x128xf32>
    %9 = tpu.matmul %3, %8, %cst_12 {dimension_numbers = #tpu.dot_dimension_numbers<[1], [0], [0], [1], [0, 0, 1, 1], [], []>} : vector<196x256xf32>, vector<256x128xf32>, vector<196x128xf32> -> vector<196x128xf32>
    %cst_13 = arith.constant dense<0.000000e+00> : vector<196x196xf32>
    %10 = tpu.matmul %7, %5, %cst_13 {dimension_numbers = #tpu.dot_dimension_numbers<[1], [1], [0], [0], [0, 0, 1, 0], [], []>} : vector<196x128xf32>, vector<196x128xf32>, vector<196x196xf32> -> vector<196x196xf32>
    %11 = arith.subf %10, %10 : vector<196x196xf32>
    %12 = math.exp %11 : vector<196x196xf32>
    %13 = arith.divf %12, %12 : vector<196x196xf32>
    %cst_14 = arith.constant dense<0.000000e+00> : vector<196x128xf32>
    %14 = tpu.matmul %13, %9, %cst_14 {dimension_numbers = #tpu.dot_dimension_numbers<[1], [0], [0], [1], [0, 0, 1, 1], [], []>} : vector<196x196xf32>, vector<196x128xf32>, vector<196x128xf32> -> vector<196x128xf32>
    %c0_15 = arith.constant 0 : index
    %c0_16 = arith.constant 0 : index
    %15 = vector.load %arg6[%c0_15, %c0_16] : memref<128x256xf32, #tpu.memory_space<vmem>>, vector<128x256xf32>
    %cst_17 = arith.constant dense<0.000000e+00> : vector<196x256xf32>
    %16 = tpu.matmul %14, %15, %cst_17 {dimension_numbers = #tpu.dot_dimension_numbers<[1], [0], [0], [1], [0, 0, 1, 1], [], []>} : vector<196x128xf32>, vector<128x256xf32>, vector<196x256xf32> -> vector<196x256xf32>
    %c0_18 = arith.constant 0 : index
    %c0_19 = arith.constant 0 : index
    %c0_20 = arith.constant 0 : index
    %17 = vector.load %arg7[%c0_18, %c0_19, %c0_20] : memref<1x196x256xf32, #tpu.memory_space<vmem>>, vector<1x196x256xf32>
    %18 = vector.shape_cast %17 : vector<1x196x256xf32> to vector<196x256xf32>
    %19 = vector.shape_cast %16 : vector<196x256xf32> to vector<1x196x256xf32>
    tpu.vector_store %arg7[%c0_18, %c0_19, %c0_20], %19 {strides = array<i32>} : memref<1x196x256xf32, #tpu.memory_space<vmem>>, vector<1x196x256xf32>,
    %cst_21 = arith.constant dense<0.000000e+00> : vector<256xf32>
    %20 = vector.multi_reduction <add>, %16, %cst_21 [0] : vector<196x256xf32> to vector<256xf32>
    %21 = vector.shape_cast %20 : vector<256xf32> to vector<1x256xf32>
    %c0_22 = arith.constant 0 : index
    %c0_23 = arith.constant 0 : index
    %c0_24 = arith.constant 0 : index
    %22 = vector.load %arg8[%c0_22, %c0_23, %c0_24] : memref<1x1x256xf32, #tpu.memory_space<vmem>>, vector<1x1x256xf32>
    %23 = vector.shape_cast %22 : vector<1x1x256xf32> to vector<1x256xf32>
    %24 = vector.shape_cast %21 : vector<1x256xf32> to vector<1x1x256xf32>
    tpu.vector_store %arg8[%c0_22, %c0_23, %c0_24], %24 {strides = array<i32>} : memref<1x1x256xf32, #tpu.memory_space<vmem>>, vector<1x1x256xf32>,
    %25 = arith.mulf %16, %16 : vector<196x256xf32>
    %cst_25 = arith.constant dense<0.000000e+00> : vector<256xf32>
    %26 = vector.multi_reduction <add>, %25, %cst_25 [0] : vector<196x256xf32> to vector<256xf32>
    %27 = vector.shape_cast %26 : vector<256xf32> to vector<1x256xf32>
    %c0_26 = arith.constant 0 : index
    %c0_27 = arith.constant 0 : index
    %c0_28 = arith.constant 0 : index
    %28 = vector.load %arg9[%c0_26, %c0_27, %c0_28] : memref<1x1x256xf32, #tpu.memory_space<vmem>>, vector<1x1x256xf32>
    %29 = vector.shape_cast %28 : vector<1x1x256xf32> to vector<1x256xf32>
    %30 = vector.shape_cast %27 : vector<1x256xf32> to vector<1x1x256xf32>
    tpu.vector_store %arg9[%c0_26, %c0_27, %c0_28], %30 {strides = array<i32>} : memref<1x1x256xf32, #tpu.memory_space<vmem>>, vector<1x1x256xf32>,
    return
  }
  func.func @transform_0(%arg0: i32) -> (i32, i32, i32) {
    %c0_i32 = arith.constant 0 : i32
    %c0_i32_0 = arith.constant 0 : i32
    %c0_i32_1 = arith.constant 0 : i32
    return %arg0, %c0_i32, %c0_i32_0 : i32, i32, i32
  }
  func.func @transform_1(%arg0: i32) -> (i32, i32, i32) {
    %c0_i32 = arith.constant 0 : i32
    %c0_i32_0 = arith.constant 0 : i32
    %c0_i32_1 = arith.constant 0 : i32
    return %arg0, %c0_i32, %c0_i32_0 : i32, i32, i32
  }
  func.func @transform_2(%arg0: i32) -> (i32, i32) {
    %c0_i32 = arith.constant 0 : i32
    %c0_i32_0 = arith.constant 0 : i32
    %c0_i32_1 = arith.constant 0 : i32
    return %c0_i32, %c0_i32_0 : i32, i32
  }
  func.func @transform_3(%arg0: i32) -> (i32, i32) {
    %c0_i32 = arith.constant 0 : i32
    %c0_i32_0 = arith.constant 0 : i32
    %c0_i32_1 = arith.constant 0 : i32
    return %c0_i32, %c0_i32_0 : i32, i32
  }
  func.func @transform_4(%arg0: i32) -> (i32, i32) {
    %c0_i32 = arith.constant 0 : i32
    %c0_i32_0 = arith.constant 0 : i32
    %c0_i32_1 = arith.constant 0 : i32
    return %c0_i32, %c0_i32_0 : i32, i32
  }
  func.func @transform_5(%arg0: i32) -> (i32, i32) {
    %c0_i32 = arith.constant 0 : i32
    %c0_i32_0 = arith.constant 0 : i32
    %c0_i32_1 = arith.constant 0 : i32
    return %c0_i32, %c0_i32_0 : i32, i32
  }
  func.func @transform_6(%arg0: i32) -> (i32, i32, i32) {
    %c0_i32 = arith.constant 0 : i32
    %c0_i32_0 = arith.constant 0 : i32
    %c0_i32_1 = arith.constant 0 : i32
    return %arg0, %c0_i32, %c0_i32_0 : i32, i32, i32
  }
  func.func @transform_7(%arg0: i32) -> (i32, i32, i32) {
    %c0_i32 = arith.constant 0 : i32
    %c0_i32_0 = arith.constant 0 : i32
    %c0_i32_1 = arith.constant 0 : i32
    return %arg0, %c0_i32, %c0_i32_0 : i32, i32, i32
  }
  func.func @transform_8(%arg0: i32) -> (i32, i32, i32) {
    %c0_i32 = arith.constant 0 : i32
    %c0_i32_0 = arith.constant 0 : i32
    %c0_i32_1 = arith.constant 0 : i32
    return %arg0, %c0_i32, %c0_i32_0 : i32, i32, i32
  }
}

module attributes {stable_mosaic.version = 11 : i64} {
  func.func @bn_residual_kernel(%arg0: i32, %arg1: memref<112x256xf32, #tpu.memory_space<vmem>>, %arg2: memref<112x256xf32, #tpu.memory_space<vmem>>, %arg3: memref<4x1x256xf32, #tpu.memory_space<vmem>>, %arg4: memref<4x1x256xf32, #tpu.memory_space<vmem>>, %arg5: memref<1x256xf32, #tpu.memory_space<vmem>>, %arg6: memref<1x256xf32, #tpu.memory_space<vmem>>, %arg7: memref<112x256xf32, #tpu.memory_space<vmem>>) attributes {dimension_semantics = [#tpu.dimension_semantics<parallel>], iteration_bounds = array<i64: 7>, scalar_prefetch = 0 : i64, scratch_operands = 0 : i64, tpu.core_type = #tpu.core_type<tc>, window_params = [{transform_indices = @transform_0, window_bounds = array<i64: 112, 256>}, {transform_indices = @transform_1, window_bounds = array<i64: 112, 256>}, {pipeline_mode = #tpu.pipeline_mode<synchronous>, transform_indices = @transform_2, window_bounds = array<i64: 4, 1, 256>}, {pipeline_mode = #tpu.pipeline_mode<synchronous>, transform_indices = @transform_3, window_bounds = array<i64: 4, 1, 256>}, {pipeline_mode = #tpu.pipeline_mode<synchronous>, transform_indices = @transform_4, window_bounds = array<i64: 1, 256>}, {pipeline_mode = #tpu.pipeline_mode<synchronous>, transform_indices = @transform_5, window_bounds = array<i64: 1, 256>}, {transform_indices = @transform_6, window_bounds = array<i64: 112, 256>}]} {
    %c0 = arith.constant 0 : index
    %c0_0 = arith.constant 0 : index
    %c0_1 = arith.constant 0 : index
    %0 = vector.load %arg3[%c0, %c0_0, %c0_1] : memref<4x1x256xf32, #tpu.memory_space<vmem>>, vector<4x1x256xf32>
    %cst = arith.constant dense<0.000000e+00> : vector<1x256xf32>
    %1 = vector.multi_reduction <add>, %0, %cst [0] : vector<4x1x256xf32> to vector<1x256xf32>
    %c0_2 = arith.constant 0 : index
    %c0_3 = arith.constant 0 : index
    %c0_4 = arith.constant 0 : index
    %2 = vector.load %arg4[%c0_2, %c0_3, %c0_4] : memref<4x1x256xf32, #tpu.memory_space<vmem>>, vector<4x1x256xf32>
    %cst_5 = arith.constant dense<0.000000e+00> : vector<1x256xf32>
    %3 = vector.multi_reduction <add>, %2, %cst_5 [0] : vector<4x1x256xf32> to vector<1x256xf32>
    %cst_6 = arith.constant 0.00127551018 : f32
    %4 = vector.broadcast %cst_6 : f32 to vector<1x256xf32>
    %5 = arith.mulf %1, %4 : vector<1x256xf32>
    %cst_7 = arith.constant 0.00127551018 : f32
    %6 = vector.broadcast %cst_7 : f32 to vector<1x256xf32>
    %7 = arith.mulf %3, %6 : vector<1x256xf32>
    %8 = arith.mulf %5, %5 : vector<1x256xf32>
    %9 = arith.subf %7, %8 : vector<1x256xf32>
    %c0_8 = arith.constant 0 : index
    %c0_9 = arith.constant 0 : index
    %10 = vector.load %arg5[%c0_8, %c0_9] : memref<1x256xf32, #tpu.memory_space<vmem>>, vector<1x256xf32>
    %cst_10 = arith.constant 9.99999974E-6 : f32
    %11 = vector.broadcast %cst_10 : f32 to vector<1x256xf32>
    %12 = arith.addf %9, %11 : vector<1x256xf32>
    %13 = math.rsqrt %12 : vector<1x256xf32>
    %14 = arith.mulf %10, %13 : vector<1x256xf32>
    %c0_11 = arith.constant 0 : index
    %c0_12 = arith.constant 0 : index
    %15 = vector.load %arg6[%c0_11, %c0_12] : memref<1x256xf32, #tpu.memory_space<vmem>>, vector<1x256xf32>
    %16 = arith.mulf %5, %14 : vector<1x256xf32>
    %17 = arith.subf %15, %16 : vector<1x256xf32>
    %c0_13 = arith.constant 0 : index
    %c0_14 = arith.constant 0 : index
    %18 = vector.load %arg1[%c0_13, %c0_14] : memref<112x256xf32, #tpu.memory_space<vmem>>, vector<112x256xf32>
    %c0_15 = arith.constant 0 : index
    %c0_16 = arith.constant 0 : index
    %19 = vector.load %arg2[%c0_15, %c0_16] : memref<112x256xf32, #tpu.memory_space<vmem>>, vector<112x256xf32>
    %20 = vector.broadcast %14 : vector<1x256xf32> to vector<112x256xf32>
    %21 = arith.mulf %19, %20 : vector<112x256xf32>
    %22 = arith.addf %18, %21 : vector<112x256xf32>
    %23 = vector.broadcast %17 : vector<1x256xf32> to vector<112x256xf32>
    %24 = arith.addf %22, %23 : vector<112x256xf32>
    %c0_17 = arith.constant 0 : index
    %c0_18 = arith.constant 0 : index
    %25 = vector.load %arg7[%c0_17, %c0_18] : memref<112x256xf32, #tpu.memory_space<vmem>>, vector<112x256xf32>
    tpu.vector_store %arg7[%c0_17, %c0_18], %24 {strides = array<i32>} : memref<112x256xf32, #tpu.memory_space<vmem>>, vector<112x256xf32>,
    return
  }
  func.func @transform_0(%arg0: i32) -> (i32, i32) {
    %c0_i32 = arith.constant 0 : i32
    %c0_i32_0 = arith.constant 0 : i32
    return %arg0, %c0_i32 : i32, i32
  }
  func.func @transform_1(%arg0: i32) -> (i32, i32) {
    %c0_i32 = arith.constant 0 : i32
    %c0_i32_0 = arith.constant 0 : i32
    return %arg0, %c0_i32 : i32, i32
  }
  func.func @transform_2(%arg0: i32) -> (i32, i32, i32) {
    %c0_i32 = arith.constant 0 : i32
    %c0_i32_0 = arith.constant 0 : i32
    %c0_i32_1 = arith.constant 0 : i32
    %c0_i32_2 = arith.constant 0 : i32
    return %c0_i32, %c0_i32_0, %c0_i32_1 : i32, i32, i32
  }
  func.func @transform_3(%arg0: i32) -> (i32, i32, i32) {
    %c0_i32 = arith.constant 0 : i32
    %c0_i32_0 = arith.constant 0 : i32
    %c0_i32_1 = arith.constant 0 : i32
    %c0_i32_2 = arith.constant 0 : i32
    return %c0_i32, %c0_i32_0, %c0_i32_1 : i32, i32, i32
  }
  func.func @transform_4(%arg0: i32) -> (i32, i32) {
    %c0_i32 = arith.constant 0 : i32
    %c0_i32_0 = arith.constant 0 : i32
    %c0_i32_1 = arith.constant 0 : i32
    return %c0_i32, %c0_i32_0 : i32, i32
  }
  func.func @transform_5(%arg0: i32) -> (i32, i32) {
    %c0_i32 = arith.constant 0 : i32
    %c0_i32_0 = arith.constant 0 : i32
    %c0_i32_1 = arith.constant 0 : i32
    return %c0_i32, %c0_i32_0 : i32, i32
  }
  func.func @transform_6(%arg0: i32) -> (i32, i32) {
    %c0_i32 = arith.constant 0 : i32
    %c0_i32_0 = arith.constant 0 : i32
    return %arg0, %c0_i32 : i32, i32
  }
}

</mosaic_0001>

<bundles_post_ra>
// kernel: cma_block_forward.2
= control target key start
LH: loop header
LB: loop body
LE: loop exit
PB: predicated region body
PF: predicated region fallthrough
CT: control target
= control target key end

     0   :  { %s3329_s27 = smov 0   ;;  %s5732_s0 = inlined_call_operand.vmem [shape: f32[4,196,256], index: 0, kind: input, shape index: {}]   ;;  %s5733_s1 = inlined_call_operand.vmem [shape: f32[4,196,256], index: 1, kind: input, shape index: {}]   ;;  %s5734_s2 = inlined_call_operand.vmem [shape: f32[256,128], index: 2, kind: input, shape index: {}]   ;;  %s5735_s3 = inlined_call_operand.vmem [shape: f32[256,128], index: 3, kind: input, shape index: {}]   ;;  %s5736_s4 = inlined_call_operand.vmem [shape: f32[256,128], index: 4, kind: input, shape index: {}]   ;;  %s5737_s5 = inlined_call_operand.vmem [shape: f32[128,256], index: 5, kind: input, shape index: {}]   ;;  %s5738_s6 = inlined_call_operand.vmem [shape: f32[4,196,256], index: 6, kind: output, shape index: {0}]   ;;  %s5739_s7 = inlined_call_operand.vmem [shape: f32[4,1,256], index: 7, kind: output, shape index: {1}]   ;;  %s5740_s8 = inlined_call_operand.vmem [shape: f32[4,1,256], index: 8, kind: output, shape index: {2}]  }
   0x1 LB: > { %s3029_s28 = sadd.s32 4294967295, %s3282_s27   ;;  %p3033_p0 = scmp.ge.s32.totalorder %s3282_s27, 1  ;;  %s3282_s27 = sphi %s3329_s27, %s19_s27  }
   0x2   : > { %p277_p1 = scmp.lt.s32.totalorder %s3282_s27, 5 }
   0x4   : > { %p278_p2 = pnand %p3033_p0, %p277_p1 }
   0x6   : > { %281 = sbr.rel (%p278_p2) target bundleno = 1055 (0x41f), region = 44 }
   0xb   : > { %v462_v0 = vld [vmem:[%s5734_s2 + $0x78] sm:$0xff]  ;;  %v461_v2 = vld [vmem:[%s5734_s2 + $0x70] sm:$0xff]  ;;  %v460_v4 = vld [vmem:[%s5734_s2 + $0x68] sm:$0xff]  ;;  %p324_p3 = scmp.lt.s32.totalorder %s3029_s28, 3 }
   0xc   : > { %v478_v1 = vld [vmem:[%s5734_s2 + $0xf8] sm:$0xff]  ;;  %479 = vmatpush.msra.mxu0 %v462_v0  ;;  %v477_v3 = vld [vmem:[%s5734_s2 + $0xf0] sm:$0xff]  ;;  %v476_v5 = vld [vmem:[%s5734_s2 + $0xe8] sm:$0xff] }
   0xd   : > { %571 = vmatpush.msra.mxu1 %v478_v1  ;;  %v459_v6 = vld [vmem:[%s5734_s2 + $0x60] sm:$0xff]  ;;  %v458_v8 = vld [vmem:[%s5734_s2 + $0x58] sm:$0xff]  ;;  %v457_v10 = vld [vmem:[%s5734_s2 + $0x50] sm:$0xff]  ;;  %s5865_s28 = smov (!%p324_p3, %s3029_s28), 3 }
   0xe   : > { %480 = vmatpush.msra.mxu0 %v461_v2  ;;  %v475_v7 = vld [vmem:[%s5734_s2 + $0xe0] sm:$0xff]  ;;  %v474_v9 = vld [vmem:[%s5734_s2 + $0xd8] sm:$0xff]  ;;  %v473_v11 = vld [vmem:[%s5734_s2 + $0xd0] sm:$0xff]  ;;  %s3422_s19 = smul.u32 400, %s5865_s28 }
   0xf   : > { %572 = vmatpush.msra.mxu1 %v477_v3  ;;  %v456_v12 = vld [vmem:[%s5734_s2 + $0x48] sm:$0xff]  ;;  %v455_v14 = vld [vmem:[%s5734_s2 + $0x40] sm:$0xff]  ;;  %v454_v16 = vld [vmem:[%s5734_s2 + $0x38] sm:$0xff] }
  0x10   : > { %481 = vmatpush.msra.mxu0 %v460_v4  ;;  %v472_v13 = vld [vmem:[%s5734_s2 + $0xc8] sm:$0xff]  ;;  %v471_v15 = vld [vmem:[%s5734_s2 + $0xc0] sm:$0xff]  ;;  %v470_v17 = vld [vmem:[%s5734_s2 + $0xb8] sm:$0xff]  ;;  %s3440_s10 = scalar_lea.vmem %s5732_s0, %s3422_s19  ;;  %s3517_s11 = scalar_lea.vmem %s5733_s1, %s3422_s19 }
  0x11   : > { %573 = vmatpush.msra.mxu1 %v476_v5  ;;  %v453_v18 = vld [vmem:[%s5734_s2 + $0x30] sm:$0xff]  ;;  %v452_v20 = vld [vmem:[%s5734_s2 + $0x28] sm:$0xff]  ;;  %v451_v22 = vld [vmem:[%s5734_s2 + $0x20] sm:$0xff]  ;;  %s5666_s15 = scalar_lea.vmem %s5738_s6, %s3422_s19  ;;  %s3037_s19 = sshll.u32 %s5865_s28, 1 }
  0x12   : > { %482 = vmatpush.msra.mxu0 %v459_v6  ;;  %v469_v19 = vld [vmem:[%s5734_s2 + $0xb0] sm:$0xff]  ;;  %v468_v21 = vld [vmem:[%s5734_s2 + $0xa8] sm:$0xff]  ;;  %v467_v23 = vld [vmem:[%s5734_s2 + $0xa0] sm:$0xff]  ;;  %s342_s18 = scalar_lea.vmem %s5739_s7, %s3037_s19  ;;  %s346_s22 = scalar_lea.vmem %s5740_s8, %s3037_s19 }
  0x13   : > { %574 = vmatpush.msra.mxu1 %v475_v7  ;;  %v450_v24 = vld [vmem:[%s5734_s2 + $0x18] sm:$0xff]  ;;  %v449_v26 = vld [vmem:[%s5734_s2 + $0x10] sm:$0xff]  ;;  %v448_v28 = vld [vmem:[%s5734_s2 + $0x8] sm:$0xff] }
  0x14   : > { %483 = vmatpush.msra.mxu0 %v458_v8  ;;  %v466_v25 = vld [vmem:[%s5734_s2 + $0x98] sm:$0xff]  ;;  %v465_v27 = vld [vmem:[%s5734_s2 + $0x90] sm:$0xff]  ;;  %v464_v29 = vld [vmem:[%s5734_s2 + $0x88] sm:$0xff] }
  0x15   : > { %575 = vmatpush.msra.mxu1 %v474_v9  ;;  %v447_v30 = vld [vmem:[%s5734_s2] sm:$0xff]  ;;  %v348_v33 = vld [vmem:[%s3440_s10 + $0x8] sm:$0xff]  ;;  %v349_v34 = vld [vmem:[%s3440_s10 + $0x10] sm:$0xff] }
  0x16   : > { %484 = vmatpush.msra.mxu0 %v457_v10  ;;  %v463_v31 = vld [vmem:[%s5734_s2 + $0x80] sm:$0xff]  ;;  %v350_v35 = vld [vmem:[%s3440_s10 + $0x18] sm:$0xff]  ;;  %v352_v37 = vld [vmem:[%s3440_s10 + $0x28] sm:$0xff] }
  0x17   : > { %576 = vmatpush.msra.mxu1 %v473_v11  ;;  %v347_v32 = vld [vmem:[%s3440_s10] sm:$0xff]  ;;  %v353_v38 = vld [vmem:[%s3440_s10 + $0x30] sm:$0xff]  ;;  %v354_v39 = vld [vmem:[%s3440_s10 + $0x38] sm:$0xff] }
  0x18   : > { %485 = vmatpush.msra.mxu0 %v456_v12  ;;  %v351_v36 = vld [vmem:[%s3440_s10 + $0x20] sm:$0xff]  ;;  %v356_v41 = vld [vmem:[%s3440_s10 + $0x48] sm:$0xff]  ;;  %v357_v42 = vld [vmem:[%s3440_s10 + $0x50] sm:$0xff] }
  0x19   : > { %577 = vmatpush.msra.mxu1 %v472_v13  ;;  %v355_v40 = vld [vmem:[%s3440_s10 + $0x40] sm:$0xff]  ;;  %v358_v43 = vld [vmem:[%s3440_s10 + $0x58] sm:$0xff]  ;;  %v360_v45 = vld [vmem:[%s3440_s10 + $0x68] sm:$0xff] }
  0x1a   : > { %486 = vmatpush.msra.mxu0 %v455_v14  ;;  %v359_v44 = vld [vmem:[%s3440_s10 + $0x60] sm:$0xff]  ;;  %v678_v46 = vld [vmem:[%s5735_s3 + $0x78] sm:$0xff]  ;;  %v677_v47 = vld [vmem:[%s5735_s3 + $0x70] sm:$0xff] }
  0x1b   : > { %578 = vmatpush.msra.mxu1 %v471_v15  ;;  %695 = vmatpush.msra.mxu2 %v678_v46  ;;  %v676_v48 = vld [vmem:[%s5735_s3 + $0x68] sm:$0xff]  ;;  %v361_v49 = vld [vmem:[%s3440_s10 + $0x70] sm:$0xff]  ;;  %v362_v50 = vld [vmem:[%s3440_s10 + $0x78] sm:$0xff] }
  0x1c   : > { %487 = vmatpush.msra.mxu0 %v454_v16  ;;  %v675_v51 = vld [vmem:[%s5735_s3 + $0x60] sm:$0xff]  ;;  %v674_v52 = vld [vmem:[%s5735_s3 + $0x58] sm:$0xff]  ;;  %v673_v53 = vld [vmem:[%s5735_s3 + $0x50] sm:$0xff] }
  0x1d   : > { %579 = vmatpush.msra.mxu1 %v470_v17  ;;  %696 = vmatpush.msra.mxu2 %v677_v47  ;;  %v672_v54 = vld [vmem:[%s5735_s3 + $0x48] sm:$0xff]  ;;  %v363_v55 = vld [vmem:[%s3440_s10 + $0x80] sm:$0xff]  ;;  %v670_v58 = vld [vmem:[%s5735_s3 + $0x38] sm:$0xff] }
  0x1e   : > { %488 = vmatpush.msra.mxu0 %v453_v18  ;;  %v364_v56 = vld [vmem:[%s3440_s10 + $0x88] sm:$0xff]  ;;  %v671_v57 = vld [vmem:[%s5735_s3 + $0x40] sm:$0xff]  ;;  %v669_v59 = vld [vmem:[%s5735_s3 + $0x30] sm:$0xff] }
  0x1f   : > { %580 = vmatpush.msra.mxu1 %v469_v19  ;;  %697 = vmatpush.msra.mxu2 %v676_v48  ;;  %v668_v60 = vld [vmem:[%s5735_s3 + $0x28] sm:$0xff]  ;;  %v365_v61 = vld [vmem:[%s3440_s10 + $0x90] sm:$0xff]  ;;  %v366_v62 = vld [vmem:[%s3440_s10 + $0x98] sm:$0xff] }
  0x20   : > { %489 = vmatpush.msra.mxu0 %v452_v20  ;;  %v667_v63 = vld [vmem:[%s5735_s3 + $0x20] sm:$0xff]  ;;  %v666_v0 = vld [vmem:[%s5735_s3 + $0x18] sm:$0xff]  ;;  %v665_v1 = vld [vmem:[%s5735_s3 + $0x10] sm:$0xff] }
  0x21   : > { %581 = vmatpush.msra.mxu1 %v468_v21  ;;  %698 = vmatpush.msra.mxu2 %v675_v51  ;;  %v664_v2 = vld [vmem:[%s5735_s3 + $0x8] sm:$0xff]  ;;  %v367_v3 = vld [vmem:[%s3440_s10 + $0xa0] sm:$0xff]  ;;  %v369_v7 = vld [vmem:[%s3440_s10 + $0xb0] sm:$0xff] }
  0x22   : > { %490 = vmatpush.msra.mxu0 %v451_v22  ;;  %v368_v4 = vld [vmem:[%s3440_s10 + $0xa8] sm:$0xff]  ;;  %v663_v5 = vld [vmem:[%s5735_s3] sm:$0xff]  ;;  %v370_v8 = vld [vmem:[%s3440_s10 + $0xb8] sm:$0xff] }
  0x23   : > { %582 = vmatpush.msra.mxu1 %v467_v23  ;;  %699 = vmatpush.msra.mxu2 %v674_v52  ;;  %v3525_v6 = vld [vmem:[%s3517_s11] sm:$0xff]  ;;  %v3531_v9 = vld [vmem:[%s3517_s11 + $0x10] sm:$0xff]  ;;  %v694_v10 = vld [vmem:[%s5735_s3 + $0xf8] sm:$0xff] }
  0x24   : > { %491 = vmatpush.msra.mxu0 %v450_v24  ;;  %787 = vmatpush.msra.mxu3 %v694_v10  ;;  %v371_v11 = vld [vmem:[%s3440_s10 + $0xc0] sm:$0xff]  ;;  %v372_v12 = vld [vmem:[%s3440_s10 + $0xc8] sm:$0xff]  ;;  %v693_v13 = vld [vmem:[%s5735_s3 + $0xf0] sm:$0xff] }
  0x25   : > { %583 = vmatpush.msra.mxu1 %v466_v25  ;;  %700 = vmatpush.msra.mxu2 %v673_v53  ;;  %v3543_v14 = vld [vmem:[%s3517_s11 + $0x20] sm:$0xff]  ;;  %v692_v15 = vld [vmem:[%s5735_s3 + $0xe8] sm:$0xff]  ;;  %v690_v17 = vld [vmem:[%s5735_s3 + $0xd8] sm:$0xff] }
  0x26   : > { %492 = vmatpush.msra.mxu0 %v449_v26  ;;  %788 = vmatpush.msra.mxu3 %v693_v13  ;;  %v691_v16 = vld [vmem:[%s5735_s3 + $0xe0] sm:$0xff]  ;;  %v373_v18 = vld [vmem:[%s3440_s10 + $0xd0] sm:$0xff]  ;;  %v374_v19 = vld [vmem:[%s3440_s10 + $0xd8] sm:$0xff] }
  0x27   : > { %584 = vmatpush.msra.mxu1 %v465_v27  ;;  %701 = vmatpush.msra.mxu2 %v672_v54  ;;  %v689_v20 = vld [vmem:[%s5735_s3 + $0xd0] sm:$0xff]  ;;  %v688_v22 = vld [vmem:[%s5735_s3 + $0xc8] sm:$0xff]  ;;  %v687_v23 = vld [vmem:[%s5735_s3 + $0xc0] sm:$0xff] }
  0x28   : > { %493 = vmatpush.msra.mxu0 %v448_v28  ;;  %789 = vmatpush.msra.mxu3 %v692_v15  ;;  %v3561_v21 = vld [vmem:[%s3517_s11 + $0x30] sm:$0xff]  ;;  %v686_v24 = vld [vmem:[%s5735_s3 + $0xb8] sm:$0xff]  ;;  %v375_v25 = vld [vmem:[%s3440_s10 + $0xe0] sm:$0xff] }
  0x29   : > { %585 = vmatpush.msra.mxu1 %v464_v29  ;;  %702 = vmatpush.msra.mxu2 %v671_v57  ;;  %v376_v26 = vld [vmem:[%s3440_s10 + $0xe8] sm:$0xff]  ;;  %v685_v27 = vld [vmem:[%s5735_s3 + $0xb0] sm:$0xff]  ;;  %v3579_v28 = vld [vmem:[%s3517_s11 + $0x40] sm:$0xff] }
  0x2a   : > { %494 = vmatpush.msra.mxu0 %v447_v30  ;;  %790 = vmatpush.msra.mxu3 %v691_v16  ;;  %v684_v29 = vld [vmem:[%s5735_s3 + $0xa8] sm:$0xff]  ;;  %v683_v30 = vld [vmem:[%s5735_s3 + $0xa0] sm:$0xff]  ;;  %v381_v47 = vld [vmem:[%s3440_s10 + $0x110] sm:$0xff] }
  0x2b   : > { %586 = vmatpush.msra.mxu1 %v463_v31  ;;  %495 = vmatmul.f32.vlgmr.msra.gmra.mxu0 %v347_v32  ;;  %v682_v31 = vld [vmem:[%s5735_s3 + $0x98] sm:$0xff]  ;;  %v377_v32 = vld [vmem:[%s3440_s10 + $0xf0] sm:$0xff]  ;;  %v3646_v54 = vld [vmem:[%s3517_s11 + $0x28] sm:$0xff] }
  0x2c   : > { %587 = vmatmul.f32.vlgmr.msra.gmra.mxu1 %v348_v33  ;;  %703 = vmatpush.msra.mxu2 %v670_v58  ;;  %v378_v33 = vld [vmem:[%s3440_s10 + $0xf8] sm:$0xff]  ;;  %v893_v52 = vld [vmem:[%s5736_s4 + $0x70] sm:$0xff]  ;;  %v908_v57 = vld [vmem:[%s5736_s4 + $0xe8] sm:$0xff] }
  0x2d   : > { %791 = vmatpush.msra.mxu3 %v690_v17  ;;  %v382_v48 = vld [vmem:[%s3440_s10 + $0x118] sm:$0xff]  ;;  %v909_v53 = vld [vmem:[%s5736_s4 + $0xf0] sm:$0xff]  ;;  %v887_v13 = vld [vmem:[%s5736_s4 + $0x40] sm:$0xff] }
  0x2e   : > { %704 = vmatpush.msra.mxu2 %v669_v59  ;;  %v910_v51 = vld [vmem:[%s5736_s4 + $0xf8] sm:$0xff]  ;;  %v903_v15 = vld [vmem:[%s5736_s4 + $0xc0] sm:$0xff]  ;;  %v3707_v16 = vld [vmem:[%s3517_s11 + $0x90] sm:$0xff] }
  0x2f   : > { %792 = vmatpush.msra.mxu3 %v689_v20  ;;  %1003 = vmatpush.msrb.mxu1 %v910_v51  ;;  %v886_v17 = vld [vmem:[%s5736_s4 + $0x38] sm:$0xff]  ;;  %v901_v20 = vld [vmem:[%s5736_s4 + $0xb0] sm:$0xff] }
  0x30   : > { %705 = vmatpush.msra.mxu2 %v668_v60  ;;  %v384_v60 = vld [vmem:[%s3440_s10 + $0x128] sm:$0xff] }
  0x31   : > { %793 = vmatpush.msra.mxu3 %v688_v22  ;;  %1004 = vmatpush.msrb.mxu1 %v909_v53  ;;  %v3722_v22 = vld [vmem:[%s3517_s11 + $0x48] sm:$0xff]  ;;  %v879_v53 = vld [vmem:[%s5736_s4] sm:$0xff] }
  0x32   : > { %706 = vmatpush.msra.mxu2 %v667_v63  ;;  %v3669_v63 = vld [vmem:[%s3517_s11 + $0x80] sm:$0xff] }
  0x33   : > { %498 = vmatmul.f32.gmra.mxu0 %v349_v34  ;;  %794 = vmatpush.msra.mxu3 %v687_v23  ;;  %v681_v34 = vld [vmem:[%s5735_s3 + $0x90] sm:$0xff]  ;;  %v387_v23 = vld [vmem:[%s3440_s10 + $0x140] sm:$0xff] }
  0x34   : > { %590 = vmatmul.f32.gmra.mxu1 %v350_v35  ;;  %707 = vmatpush.msra.mxu2 %v666_v0  ;;  %v3597_v35 = vld [vmem:[%s3517_s11 + $0x50] sm:$0xff]  ;;  %v890_v0 = vld [vmem:[%s5736_s4 + $0x58] sm:$0xff] }
  0x35   : > { %795 = vmatpush.msra.mxu3 %v686_v24  ;;  %1005 = vmatpush.msrb.mxu1 %v908_v57  ;;  %v884_v24 = vld [vmem:[%s5736_s4 + $0x28] sm:$0xff] }
  0x36   : > { %708 = vmatpush.msra.mxu2 %v665_v1  ;;  %v906_v1 = vld [vmem:[%s5736_s4 + $0xd8] sm:$0xff]  ;;  %v3786_v57 = vld [vmem:[%s3517_s11 + $0x68] sm:$0xff] }
  0x37   : > { %796 = vmatpush.msra.mxu3 %v685_v27 }
  0x38   : > { %709 = vmatpush.msra.mxu2 %v664_v2  ;;  %v889_v2 = vld [vmem:[%s5736_s4 + $0x50] sm:$0xff] }
  0x39   : > { %797 = vmatpush.msra.mxu3 %v684_v29  ;;  %v388_v29 = vld [vmem:[%s3440_s10 + $0x148] sm:$0xff] }
  0x3a   : > { %710 = vmatpush.msra.mxu2 %v663_v5  ;;  %v385_v5 = vld [vmem:[%s3440_s10 + $0x130] sm:$0xff] }
  0x3b   : > { %501 = vmatmul.f32.gmra.mxu0 %v351_v36  ;;  %711 = vmatmul.f32.vlgmr.msra.gmra.mxu2 %v3525_v6  ;;  %v680_v36 = vld [vmem:[%s5735_s3 + $0x88] sm:$0xff] }
  0x3c   : > { %593 = vmatmul.f32.gmra.mxu1 %v352_v37  ;;  %798 = vmatpush.msra.mxu3 %v683_v30  ;;  %v679_v37 = vld [vmem:[%s5735_s3 + $0x80] sm:$0xff] }
  0x3d   : > { %v883_v30 = vld [vmem:[%s5736_s4 + $0x20] sm:$0xff] }
  0x3e   : > { %799 = vmatpush.msra.mxu3 %v682_v31  ;;  %v899_v31 = vld [vmem:[%s5736_s4 + $0xa0] sm:$0xff] }
  0x40   : > { %800 = vmatpush.msra.mxu3 %v681_v34  ;;  %v898_v34 = vld [vmem:[%s5736_s4 + $0x98] sm:$0xff] }
  0x42   : > { %801 = vmatpush.msra.mxu3 %v680_v36  ;;  %v881_v36 = vld [vmem:[%s5736_s4 + $0x10] sm:$0xff] }
  0x43   : > { %504 = vmatmul.f32.gmra.mxu0 %v353_v38  ;;  %714 = vmatmul.f32.gmra.mxu2 %v3531_v9  ;;  %v3607_v38 = vld [vmem:[%s3517_s11 + $0x8] sm:$0xff] }
  0x44   : > { %596 = vmatmul.f32.gmra.mxu1 %v354_v39  ;;  %802 = vmatpush.msra.mxu3 %v679_v37  ;;  %v897_v37 = vld [vmem:[%s5736_s4 + $0x90] sm:$0xff] }
  0x45   : > { %803 = vmatmul.f32.vlgmr.msra.gmra.mxu3 %v3607_v38 }
  0x4b   : > { %507 = vmatmul.f32.gmra.mxu0 %v355_v40  ;;  %717 = vmatmul.f32.gmra.mxu2 %v3543_v14 }
  0x4c   : > { %599 = vmatmul.f32.gmra.mxu1 %v356_v41  ;;  %v379_v41 = vld [vmem:[%s3440_s10 + $0x100] sm:$0xff] }
  0x53   : > { %510 = vmatmul.f32.gmra.mxu0 %v357_v42  ;;  %720 = vmatmul.f32.gmra.mxu2 %v3561_v21  ;;  %v380_v42 = vld [vmem:[%s3440_s10 + $0x108] sm:$0xff] }
  0x54   : > { %602 = vmatmul.f32.gmra.mxu1 %v358_v43  ;;  %v3617_v43 = vld [vmem:[%s3517_s11 + $0x60] sm:$0xff] }
  0x5b   : > { %513 = vmatmul.f32.gmra.mxu0 %v359_v44  ;;  %723 = vmatmul.f32.gmra.mxu2 %v3579_v28  ;;  %v3621_v44 = vld [vmem:[%s3517_s11 + $0x18] sm:$0xff] }
  0x5c   : > { %605 = vmatmul.f32.gmra.mxu1 %v360_v45  ;;  %806 = vmatmul.f32.gmra.mxu3 %v3621_v44 }
  0x63   : > { %516 = vmatmul.f32.gmra.mxu0 %v361_v49  ;;  %726 = vmatmul.f32.gmra.mxu2 %v3597_v35  ;;  %v3631_v49 = vld [vmem:[%s3517_s11 + $0x70] sm:$0xff] }
  0x64   : > { %608 = vmatmul.f32.gmra.mxu1 %v362_v50  ;;  %v894_v50 = vld [vmem:[%s5736_s4 + $0x78] sm:$0xff]  ;;  %809 = vmatmul.f32.gmra.mxu3 %v3646_v54 }
  0x65   : > { %911 = vmatpush.msrb.mxu0 %v894_v50 }
  0x67   : > { %912 = vmatpush.msrb.mxu0 %v893_v52  ;;  %v390_v52 = vld [vmem:[%s3440_s10 + $0x158] sm:$0xff] }
  0x6b   : > { %519 = vmatmul.f32.gmra.mxu0 %v363_v55  ;;  %729 = vmatmul.f32.gmra.mxu2 %v3617_v43  ;;  %v383_v55 = vld [vmem:[%s3440_s10 + $0x120] sm:$0xff] }
  0x6c   : > { %611 = vmatmul.f32.gmra.mxu1 %v364_v56  ;;  %v892_v56 = vld [vmem:[%s5736_s4 + $0x68] sm:$0xff] }
  0x6d   : > { %913 = vmatpush.msrb.mxu0 %v892_v56  ;;  %v3783_v56 = vld [vmem:[%s3517_s11 + $0xb0] sm:$0xff] }
  0x73   : > { %522 = vmatmul.f32.gmra.mxu0 %v365_v61  ;;  %732 = vmatmul.f32.gmra.mxu2 %v3631_v49  ;;  %v891_v61 = vld [vmem:[%s5736_s4 + $0x60] sm:$0xff] }
  0x74   : > { %614 = vmatmul.f32.gmra.mxu1 %v366_v62  ;;  %v907_v62 = vld [vmem:[%s5736_s4 + $0xe0] sm:$0xff]  ;;  %914 = vmatpush.msrb.mxu0 %v891_v61 }
  0x75   : > { %1006 = vmatpush.msrb.mxu1 %v907_v62  ;;  %v391_v62 = vld [vmem:[%s3440_s10 + $0x160] sm:$0xff] }
  0x76   : > { %915 = vmatpush.msrb.mxu0 %v890_v0  ;;  %v392_v0 = vld [vmem:[%s3440_s10 + $0x168] sm:$0xff] }
  0x77   : > { %1007 = vmatpush.msrb.mxu1 %v906_v1  ;;  %v3797_v1 = vld [vmem:[%s3517_s11 + $0xc0] sm:$0xff] }
  0x78   : > { %916 = vmatpush.msrb.mxu0 %v889_v2  ;;  %v3800_v2 = vld [vmem:[%s3517_s11 + $0x78] sm:$0xff] }
  0x7b   : > { %525 = vmatmul.f32.gmra.mxu0 %v367_v3  ;;  %v905_v3 = vld [vmem:[%s5736_s4 + $0xd0] sm:$0xff]  ;;  %735 = vmatmul.f32.gmra.mxu2 %v3669_v63 }
  0x7c   : > { %617 = vmatmul.f32.gmra.mxu1 %v368_v4  ;;  %v3684_v4 = vld [vmem:[%s3517_s11 + $0x38] sm:$0xff] }
  0x7d   : > { %1008 = vmatpush.msrb.mxu1 %v905_v3  ;;  %812 = vmatmul.f32.gmra.mxu3 %v3684_v4 }
  0x83   : > { %528 = vmatmul.f32.gmra.mxu0 %v369_v7  ;;  %v888_v7 = vld [vmem:[%s5736_s4 + $0x48] sm:$0xff]  ;;  %738 = vmatmul.f32.gmra.mxu2 %v3707_v16 }
  0x84   : > { %620 = vmatmul.f32.gmra.mxu1 %v370_v8  ;;  %v904_v8 = vld [vmem:[%s5736_s4 + $0xc8] sm:$0xff]  ;;  %917 = vmatpush.msrb.mxu0 %v888_v7  ;;  %v393_v7 = vld [vmem:[%s3440_s10 + $0x170] sm:$0xff] }
  0x85   : > { %1009 = vmatpush.msrb.mxu1 %v904_v8  ;;  %815 = vmatmul.f32.gmra.mxu3 %v3722_v22  ;;  %v394_v8 = vld [vmem:[%s3440_s10 + $0x178] sm:$0xff] }
  0x86   : > { %918 = vmatpush.msrb.mxu0 %v887_v13  ;;  %v3814_v13 = vld [vmem:[%s3517_s11 + $0x88] sm:$0xff] }
  0x87   : > { %1010 = vmatpush.msrb.mxu1 %v903_v15 }
  0x88   : > { %919 = vmatpush.msrb.mxu0 %v886_v17 }
  0x8b   : > { %531 = vmatmul.f32.gmra.mxu0 %v371_v11 }
  0x8c   : > { %623 = vmatmul.f32.gmra.mxu1 %v372_v12  ;;  %v386_v12 = vld [vmem:[%s3440_s10 + $0x138] sm:$0xff] }
  0x93   : > { %534 = vmatmul.f32.gmra.mxu0 %v373_v18  ;;  %v902_v18 = vld [vmem:[%s5736_s4 + $0xb8] sm:$0xff] }
  0x94   : > { %626 = vmatmul.f32.gmra.mxu1 %v374_v19  ;;  %v885_v19 = vld [vmem:[%s5736_s4 + $0x30] sm:$0xff] }
  0x95   : > { %1011 = vmatpush.msrb.mxu1 %v902_v18  ;;  %920 = vmatpush.msrb.mxu0 %v885_v19  ;;  %v395_v18 = vld [vmem:[%s3440_s10 + $0x180] sm:$0xf]  ;;  %v396_v19 = vld [vmem:[%s3440_s10 + $0x188] sm:$0xf] }
  0x97   : > { %1012 = vmatpush.msrb.mxu1 %v901_v20  ;;  %921 = vmatpush.msrb.mxu0 %v884_v24  ;;  %v3825_v20 = vld [vmem:[%s3517_s11 + $0xe0] sm:$0xff] }
  0x99   : > { %922 = vmatpush.msrb.mxu0 %v883_v30  ;;  %v3843_v30 = vld [vmem:[%s3517_s11 + $0xa8] sm:$0xff] }
  0x9b   : > { %537 = vmatmul.f32.gmra.mxu0 %v375_v25  ;;  %v900_v25 = vld [vmem:[%s5736_s4 + $0xa8] sm:$0xff] }
  0x9c   : > { %629 = vmatmul.f32.gmra.mxu1 %v376_v26 }
  0x9d   : > { %1013 = vmatpush.msrb.mxu1 %v900_v25 }
  0x9f   : > { %1014 = vmatpush.msrb.mxu1 %v899_v31 }
  0xa1   : > { %1015 = vmatpush.msrb.mxu1 %v898_v34  ;;  %v3851_v34 = vld [vmem:[%s3517_s11 + $0x100] sm:$0xff] }
  0xa3   : > { %540 = vmatmul.f32.gmra.mxu0 %v377_v32  ;;  %v3745_v32 = vld [vmem:[%s3517_s11 + $0xa0] sm:$0xff]  ;;  %1016 = vmatpush.msrb.mxu1 %v897_v37 }
  0xa4   : > { %632 = vmatmul.f32.gmra.mxu1 %v378_v33  ;;  %v882_v33 = vld [vmem:[%s5736_s4 + $0x18] sm:$0xff]  ;;  %741 = vmatmul.f32.gmra.mxu2 %v3745_v32 }
  0xa5   : > { %923 = vmatpush.msrb.mxu0 %v882_v33 }
  0xa7   : > { %924 = vmatpush.msrb.mxu0 %v881_v36 }
  0xa8   : > { %v3610_v39 = vpop.f32.mrf.mxu0 }
  0xa9   : > { %v3612_v40 = vpop.f32.mrf.mxu1 }
  0xab   : > { %543 = vmatmul.f32.gmra.mxu0 %v379_v41  ;;  %v3760_v41 = vld [vmem:[%s3517_s11 + $0x58] sm:$0xff] }
  0xac   : > { %635 = vmatmul.f32.gmra.mxu1 %v380_v42  ;;  %v389_v42 = vld [vmem:[%s3440_s10 + $0x150] sm:$0xff]  ;;  %818 = vmatmul.f32.gmra.mxu3 %v3760_v41 }
  0xad   : > { %744 = vmatmul.f32.gmra.mxu2 %v3783_v56 }
  0xb0   : > { %v3624_v45 = vpop.f32.mrf.mxu0 }
  0xb1   : > { %v3626_v46 = vpop.f32.mrf.mxu1 }
  0xb3   : > { %546 = vmatmul.f32.gmra.mxu0 %v381_v47  ;;  %v880_v47 = vld [vmem:[%s5736_s4 + $0x8] sm:$0xff] }
  0xb4   : > { %638 = vmatmul.f32.gmra.mxu1 %v382_v48  ;;  %v896_v48 = vld [vmem:[%s5736_s4 + $0x88] sm:$0xff]  ;;  %925 = vmatpush.msrb.mxu0 %v880_v47 }
  0xb5   : > { %1017 = vmatpush.msrb.mxu1 %v896_v48  ;;  %821 = vmatmul.f32.gmra.mxu3 %v3786_v57 }
  0xb6   : > { %926 = vmatpush.msrb.mxu0 %v879_v53  ;;  %747 = vmatmul.f32.gmra.mxu2 %v3797_v1 }
  0xb8   : > { %v3657_v58 = vpop.f32.mrf.mxu0 }
  0xb9   : > { %v3659_v59 = vpop.f32.mrf.mxu1 }
  0xbb   : > { %549 = vmatmul.f32.gmra.mxu0 %v383_v55  ;;  %v895_v55 = vld [vmem:[%s5736_s4 + $0x80] sm:$0xff] }
  0xbc   : > { %641 = vmatmul.f32.gmra.mxu1 %v384_v60 }
  0xbd   : > { %1018 = vmatpush.msrb.mxu1 %v895_v55  ;;  %824 = vmatmul.f32.gmra.mxu3 %v3800_v2 }
  0xc0   : > { %v3695_v10 = vpop.f32.mrf.mxu0 }
  0xc1   : > { %v3697_v11 = vpop.f32.mrf.mxu1 }
  0xc3   : > { %552 = vmatmul.f32.gmra.mxu0 %v385_v5 }
  0xc4   : > { %644 = vmatmul.f32.gmra.mxu1 %v386_v12  ;;  %v3811_v12 = vld [vmem:[%s3517_s11 + $0xd0] sm:$0xff] }
  0xc5   : > { %750 = vmatmul.f32.gmra.mxu2 %v3811_v12  ;;  %827 = vmatmul.f32.gmra.mxu3 %v3814_v13 }
  0xc8   : > { %v3733_v26 = vpop.f32.mrf.mxu0 }
  0xc9   : > { %v3735_v27 = vpop.f32.mrf.mxu1 }
  0xcb   : > { %555 = vmatmul.f32.gmra.mxu0 %v387_v23  ;;  %v3828_v23 = vld [vmem:[%s3517_s11 + $0x98] sm:$0xff] }
  0xcc   : > { %647 = vmatmul.f32.gmra.mxu1 %v388_v29  ;;  %v3837_v29 = vld [vmem:[%s3517_s11 + $0xf0] sm:$0xff] }
  0xcd   : > { %753 = vmatmul.f32.gmra.mxu2 %v3825_v20  ;;  %830 = vmatmul.f32.gmra.mxu3 %v3828_v23 }
  0xd0   : > { %v3771_v50 = vpop.f32.mrf.mxu0 }
  0xd1   : > { %v3773_v51 = vpop.f32.mrf.mxu1 }
  0xd3   : > { %558 = vmatmul.f32.gmra.mxu0 %v389_v42  ;;  %v3867_v42 = vld [vmem:[%s3517_s11 + $0x110] sm:$0xff] }
  0xd4   : > { %650 = vmatmul.f32.gmra.mxu1 %v390_v52  ;;  %v3879_v52 = vld [vmem:[%s3517_s11 + $0x120] sm:$0xff] }
  0xd5   : > { %756 = vmatmul.f32.gmra.mxu2 %v3837_v29  ;;  %833 = vmatmul.f32.gmra.mxu3 %v3843_v30  ;;  %5744 = vst [vmem:[#allocation2_spill] sm:$0xff] %v3879_v52 }
  0xd8   : > { %v3790_v60 = vpop.f32.mrf.mxu0 }
  0xd9   : > { %v3792_v61 = vpop.f32.mrf.mxu1 }
  0xdb   : > { %561 = vmatmul.f32.gmra.mxu0 %v391_v62  ;;  %v3891_v62 = vld [vmem:[%s3517_s11 + $0x130] sm:$0xff] }
  0xdc   : > { %653 = vmatmul.f32.gmra.mxu1 %v392_v0  ;;  %5745 = vst [vmem:[#allocation3_spill] sm:$0xff] %v3891_v62 }
  0xdd   : > { %759 = vmatmul.f32.gmra.mxu2 %v3851_v34 }
  0xe0   : > { %v3804_v3 = vpop.f32.mrf.mxu0 }
  0xe1   : > { %v3806_v5 = vpop.f32.mrf.mxu1 }
  0xe3   : > { %564 = vmatmul.f32.gmra.mxu0 %v393_v7 }
  0xe4   : > { %656 = vmatmul.f32.gmra.mxu1 %v394_v8  ;;  %v3903_v8 = vld [vmem:[%s3517_s11 + $0x140] sm:$0xff] }
  0xe5   : > { %762 = vmatmul.f32.gmra.mxu2 %v3867_v42  ;;  %5746 = vst [vmem:[#allocation4_spill] sm:$0xff] %v3903_v8 }
  0xe8   : > { %v3818_v15 = vpop.f32.mrf.mxu0 }
  0xe9   : > { %v3820_v17 = vpop.f32.mrf.mxu1 }
  0xeb   : > { %567 = vmatmul.f32.gmra.mxu0 %v395_v18 }
  0xec   : > { %659 = vmatmul.f32.gmra.mxu1 %v396_v19 }
  0xed   : > { %765 = vmatmul.f32.gmra.mxu2 %v3879_v52  ;;  %v3915_v52 = vld [vmem:[%s3517_s11 + $0x150] sm:$0xff] }
  0xf0   : > { %v3832_v24 = vpop.f32.mrf.mxu0 }
  0xf1   : > { %v3834_v25 = vpop.f32.mrf.mxu1 }
  0xf3   : > { %927 = vmatmul.f32.vlgmr.msrb.gmra.mxu0 %v3525_v6  ;;  %v3857_v6 = vld [vmem:[%s3517_s11 + $0xb8] sm:$0xff] }
  0xf4   : > { %1019 = vmatmul.f32.vlgmr.msrb.gmra.mxu1 %v3607_v38  ;;  %836 = vmatmul.f32.gmra.mxu3 %v3857_v6  ;;  %v3860_v38 = vpop.f32.mrf.mxu2 }
  0xf5   : > { %768 = vmatmul.f32.gmra.mxu2 %v3891_v62 }
  0xf8   : > { %v3846_v31 = vpop.f32.mrf.mxu0 }
  0xf9   : > { %v3848_v33 = vpop.f32.mrf.mxu1 }
  0xfb   : > { %930 = vmatmul.f32.gmra.mxu0 %v3531_v9  ;;  %v3873_v9 = vld [vmem:[%s3517_s11 + $0xc8] sm:$0xff] }
  0xfc   : > { %1022 = vmatmul.f32.gmra.mxu1 %v3621_v44  ;;  %839 = vmatmul.f32.gmra.mxu3 %v3873_v9  ;;  %v3876_v44 = vpop.f32.mrf.mxu2 }
  0xfd   : > { %771 = vmatmul.f32.gmra.mxu2 %v3903_v8 }
 0x100   : > { %v3862_v36 = vpop.f32.mrf.mxu0 }
 0x101   : > { %v3864_v37 = vpop.f32.mrf.mxu1 }
 0x103   : > { %933 = vmatmul.f32.gmra.mxu0 %v3543_v14  ;;  %v3885_v14 = vld [vmem:[%s3517_s11 + $0xd8] sm:$0xff] }
 0x104   : > { %1025 = vmatmul.f32.gmra.mxu1 %v3646_v54  ;;  %842 = vmatmul.f32.gmra.mxu3 %v3885_v14  ;;  %v3888_v54 = vpop.f32.mrf.mxu2 }
 0x105   : > { %774 = vmatmul.f32.gmra.mxu2 %v3915_v52 }
 0x108   : > { %v532_v47 = vpop.f32.mrf.mxu0 }
 0x109   : > { %v624_v48 = vpop.f32.mrf.mxu1 }
 0x10b   : > { %936 = vmatmul.f32.gmra.mxu0 %v3561_v21  ;;  %v3897_v21 = vld [vmem:[%s3517_s11 + $0xe8] sm:$0xff] }
 0x10c   : > { %1028 = vmatmul.f32.gmra.mxu1 %v3684_v4  ;;  %845 = vmatmul.f32.gmra.mxu3 %v3897_v21  ;;  %v3900_v4 = vpop.f32.mrf.mxu2 }
 0x110   : > { %v535_v53 = vpop.f32.mrf.mxu0 }
 0x111   : > { %v627_v55 = vpop.f32.mrf.mxu1 }
 0x113   : > { %939 = vmatmul.f32.gmra.mxu0 %v3579_v28  ;;  %v3909_v28 = vld [vmem:[%s3517_s11 + $0xf8] sm:$0xff] }
 0x114   : > { %1031 = vmatmul.f32.gmra.mxu1 %v3722_v22  ;;  %848 = vmatmul.f32.gmra.mxu3 %v3909_v28  ;;  %v3912_v22 = vpop.f32.mrf.mxu2 }
 0x115   : > { %5747 = vst [vmem:[#allocation5_spill] sm:$0xff] %v3912_v22 }
 0x118   : > { %v538_v0 = vpop.f32.mrf.mxu0 }
 0x119   : > { %v630_v7 = vpop.f32.mrf.mxu1 }
 0x11b   : > { %942 = vmatmul.f32.gmra.mxu0 %v3597_v35  ;;  %v631_v35 = vadd.f32 %v630_v7, %v538_v0  ;;  %v3939_v0 = vld [vmem:[%s3517_s11 + $0x118] sm:$0xff] }
 0x11c   : > { %1034 = vmatmul.f32.gmra.mxu1 %v3760_v41  ;;  %v3921_v41 = vld [vmem:[%s3517_s11 + $0x108] sm:$0xff]  ;;  %v3924_v8 = vpop.f32.mrf.mxu2 }
 0x11d   : > { %851 = vmatmul.f32.gmra.mxu3 %v3921_v41 }
 0x120   : > { %v541_v18 = vpop.f32.mrf.mxu0 }
 0x121   : > { %v633_v19 = vpop.f32.mrf.mxu1 }
 0x122   : > { %v634_v62 = vadd.f32 %v633_v19, %v541_v18  ;;  %v628_v19 = vadd.f32 %v627_v55, %v535_v53 }
 0x123   : > { %945 = vmatmul.f32.gmra.mxu0 %v3617_v43  ;;  %v3930_v43 = vpop.f32.mrf.mxu3 }
 0x124   : > { %1037 = vmatmul.f32.gmra.mxu1 %v3786_v57  ;;  %1095 = vmatpush.xpose.msrb.mxu2 %v634_v62  ;;  %v3933_v57 = vld [vmem:[%s3517_s11 + $0x160] sm:$0xff]  ;;  %v625_v62 = vadd.f32 %v624_v48, %v532_v47  ;;  %v3942_v7 = vpop.f32.mrf.mxu2  ;;  %v619_v47 = vadd.f32 %v3848_v33, %v3846_v31  ;;  %v3961_v48 = vld [vmem:[%s3517_s11 + $0x128] sm:$0xff]  ;;  %v613_v31 = vadd.f32 %v3820_v17, %v3818_v15  ;;  %v3983_v33 = vld [vmem:[%s3517_s11 + $0x138] sm:$0xff] }
 0x125   : > { %777 = vmatmul.f32.gmra.mxu2 %v3933_v57  ;;  %854 = vmatmul.f32.gmra.mxu3 %v3939_v0  ;;  %v607_v15 = vadd.f32 %v3792_v61, %v3790_v60  ;;  %v4001_v17 = vld [vmem:[%s3517_s11 + $0x148] sm:$0xff]  ;;  %v601_v60 = vadd.f32 %v3735_v27, %v3733_v26  ;;  %v4019_v61 = vld [vmem:[%s3517_s11 + $0x158] sm:$0xff]  ;;  %v595_v26 = vadd.f32 %v3659_v59, %v3657_v58 }
 0x126   : > { %v4033_v27 = vld [vmem:[%s3517_s11 + $0x168] sm:$0xff]  ;;  %v589_v58 = vadd.f32 %v3612_v40, %v3610_v39  ;;  %v4047_v59 = vld [vmem:[%s3517_s11 + $0x178] sm:$0xff] }
 0x127   : > { %v4062_v40 = vld [vmem:[%s3517_s11 + $0x188] sm:$0xf] }
 0x128   : > { %1096 = vmatpush.xpose.msrb.mxu2 %v631_v35  ;;  %v3926_v22 = vpop.f32.mrf.mxu0  ;;  %v3953_v35 = vld [vmem:[%s3517_s11 + $0x170] sm:$0xff] }
 0x129   : > { %v3928_v18 = vpop.f32.mrf.mxu1 }
 0x12b   : > { %948 = vmatmul.f32.gmra.mxu0 %v3631_v49  ;;  %v622_v49 = vadd.f32 %v3864_v37, %v3862_v36 }
 0x12c   : > { %1040 = vmatmul.f32.gmra.mxu1 %v3800_v2  ;;  %1097 = vmatpush.xpose.msrb.mxu2 %v628_v19  ;;  %v3950_v2 = vpop.f32.mrf.mxu3  ;;  %v3968_v19 = vpop.f32.mrf.mxu2 }
 0x12d   : > { %780 = vmatmul.f32.gmra.mxu2 %v3953_v35  ;;  %857 = vmatmul.f32.gmra.mxu3 %v3961_v48 }
 0x130   : > { %1098 = vmatpush.xpose.msrb.mxu2 %v625_v62  ;;  %v3944_v53 = vpop.f32.mrf.mxu0  ;;  %v3975_v62 = vld [vmem:[%s3517_s11 + $0x180] sm:$0xf] }
 0x131   : > { %v3946_v55 = vpop.f32.mrf.mxu1 }
 0x133   : > { %951 = vmatmul.f32.gmra.mxu0 %v3669_v63  ;;  %v616_v63 = vadd.f32 %v3834_v25, %v3832_v24 }
 0x134   : > { %1043 = vmatmul.f32.gmra.mxu1 %v3814_v13  ;;  %1099 = vmatpush.xpose.msrb.mxu2 %v622_v49  ;;  %v3972_v13 = vpop.f32.mrf.mxu3  ;;  %v3990_v49 = vpop.f32.mrf.mxu2 }
 0x135   : > { %783 = vmatmul.f32.gmra.mxu2 %v3975_v62  ;;  %860 = vmatmul.f32.gmra.mxu3 %v3983_v33 }
 0x138   : > { %1100 = vmatpush.xpose.msrb.mxu2 %v619_v47  ;;  %v3964_v36 = vpop.f32.mrf.mxu0 }
 0x139   : > { %v3966_v37 = vpop.f32.mrf.mxu1 }
 0x13b   : > { %954 = vmatmul.f32.gmra.mxu0 %v3707_v16  ;;  %v610_v16 = vadd.f32 %v3806_v5, %v3804_v3 }
 0x13c   : > { %1046 = vmatmul.f32.gmra.mxu1 %v3828_v23  ;;  %1101 = vmatpush.xpose.msrb.mxu2 %v616_v63  ;;  %v3994_v23 = vpop.f32.mrf.mxu3  ;;  %v4008_v3 = vpop.f32.mrf.mxu2 }
 0x13d   : > { %863 = vmatmul.f32.gmra.mxu3 %v4001_v17 }
 0x140   : > { %1102 = vmatpush.xpose.msrb.mxu2 %v613_v31  ;;  %v3986_v24 = vpop.f32.mrf.mxu0 }
 0x141   : > { %v3988_v25 = vpop.f32.mrf.mxu1 }
 0x143   : > { %957 = vmatmul.f32.gmra.mxu0 %v3745_v32  ;;  %v604_v32 = vadd.f32 %v3773_v51, %v3771_v50  ;;  %v598_v50 = vadd.f32 %v3697_v11, %v3695_v10  ;;  %v592_v10 = vadd.f32 %v3626_v46, %v3624_v45  ;;  %v4052_v46 = vadd.f32 %v3930_v43, %v3860_v38 }
 0x144   : > { %1049 = vmatmul.f32.gmra.mxu1 %v3843_v30  ;;  %1103 = vmatpush.xpose.msrb.mxu2 %v610_v16  ;;  %v4012_v5 = vpop.f32.mrf.mxu3  ;;  %v4022_v16 = vpop.f32.mrf.mxu2  ;;  %v808_v38 = vadd.f32 %v3950_v2, %v3876_v44 }
 0x145   : > { %866 = vmatmul.f32.gmra.mxu3 %v4019_v61 }
 0x148   : > { %1104 = vmatpush.xpose.msrb.mxu2 %v607_v15  ;;  %v4004_v47 = vpop.f32.mrf.mxu0 }
 0x149   : > { %v4006_v63 = vpop.f32.mrf.mxu1 }
 0x14b   : > { %960 = vmatmul.f32.gmra.mxu0 %v3783_v56 }
 0x14c   : > { %1052 = vmatmul.f32.gmra.mxu1 %v3857_v6  ;;  %1105 = vmatpush.xpose.msrb.mxu2 %v604_v32  ;;  %v4026_v51 = vpop.f32.mrf.mxu3 }
 0x14d   : > { %869 = vmatmul.f32.gmra.mxu3 %v4033_v27 }
 0x150   : > { %1106 = vmatpush.xpose.msrb.mxu2 %v601_v60  ;;  %v559_v30 = vpop.f32.mrf.mxu0 }
 0x151   : > { %v651_v31 = vpop.f32.mrf.mxu1 }
 0x153   : > { %963 = vmatmul.f32.gmra.mxu0 %v3797_v1  ;;  %v4042_v1 = vpop.f32.mrf.mxu2 }
 0x154   : > { %1055 = vmatmul.f32.gmra.mxu1 %v3873_v9  ;;  %1107 = vmatpush.xpose.msrb.mxu2 %v598_v50  ;;  %v4038_v11 = vpop.f32.mrf.mxu3 }
 0x155   : > { %872 = vmatmul.f32.gmra.mxu3 %v4047_v59 }
 0x158   : > { %1108 = vmatpush.xpose.msrb.mxu2 %v595_v26  ;;  %v562_v56 = vpop.f32.mrf.mxu0  ;;  %v811_v26 = vadd.f32 %v3972_v13, %v3888_v54  ;;  %v814_v54 = vadd.f32 %v3994_v23, %v3900_v4  ;;  %v646_v13 = vadd.f32 %v3988_v25, %v3986_v24  ;;  %v5748_v4 = vld [vmem:[#allocation5_spill] sm:$0xff]  ;;  %v640_v25 = vadd.f32 %v3946_v55, %v3944_v53 }
 0x159   : > { %v654_v6 = vpop.f32.mrf.mxu1  ;;  %v817_v23 = vadd.f32 %v4012_v5, %v5748_v4 }
 0x15a   : > { %v655_v44 = vadd.f32 %v654_v6, %v562_v56 }
 0x15b   : > { %966 = vmatmul.f32.gmra.mxu0 %v3811_v12  ;;  %v4059_v39 = vpop.f32.mrf.mxu2 }
 0x15c   : > { %1058 = vmatmul.f32.gmra.mxu1 %v3885_v14  ;;  %1109 = vmatpush.xpose.msrb.mxu2 %v592_v10  ;;  %v4054_v12 = vpop.f32.mrf.mxu3 }
 0x15d   : > { %875 = vmatmul.f32.gmra.mxu3 %v4062_v40 }
 0x160   : > { %1110 = vmatpush.xpose.msrb.mxu2 %v589_v58  ;;  %v565_v9 = vpop.f32.mrf.mxu0 }
 0x161   : > { %v657_v45 = vpop.f32.mrf.mxu1 }
 0x163   : > { %969 = vmatmul.f32.gmra.mxu0 %v3825_v20  ;;  %1111 = vmatmul.f32.vlgmr.msrb.gmra.mxu2 %v4052_v46  ;;  %v658_v20 = vadd.f32 %v657_v45, %v565_v9  ;;  %v826_v45 = vadd.f32 %v4054_v12, %v3968_v19 }
 0x164   : > { %1061 = vmatmul.f32.gmra.mxu1 %v3897_v21  ;;  %v4067_v43 = vpop.f32.mrf.mxu3  ;;  %v4071_v21 = vpop.f32.mrf.mxu2 }
 0x168   : > { %v568_v14 = vpop.f32.mrf.mxu0 }
 0x169   : > { %v660_v15 = vpop.f32.mrf.mxu1 }
 0x16a   : > { %v661_v32 = vadd.f32 %v660_v15, %v568_v14 }
 0x16b   : > { %972 = vmatmul.f32.gmra.mxu0 %v3837_v29  ;;  %1114 = vmatmul.f32.gmra.mxu2 %v808_v38 }
 0x16c   : > { %1064 = vmatmul.f32.gmra.mxu1 %v3909_v28  ;;  %1194 = vmatpush.xpose.msrb.mxu3 %v661_v32  ;;  %v4081_v29 = vpop.f32.mrf.mxu3  ;;  %v652_v28 = vadd.f32 %v651_v31, %v559_v30  ;;  %v4087_v58 = vpop.f32.mrf.mxu2 }
 0x16d   : > { %v832_v12 = vadd.f32 %v4081_v29, %v4008_v3 }
 0x170   : > { %1195 = vmatpush.xpose.msrb.mxu3 %v658_v20  ;;  %v4073_v60 = vpop.f32.mrf.mxu0 }
 0x171   : > { %v4075_v50 = vpop.f32.mrf.mxu1 }
 0x173   : > { %975 = vmatmul.f32.gmra.mxu0 %v3851_v34  ;;  %1117 = vmatmul.f32.gmra.mxu2 %v811_v26  ;;  %v649_v34 = vadd.f32 %v4006_v63, %v4004_v47  ;;  %v5749_v47 = vld [vmem:[#allocation2_spill] sm:$0xff] }
 0x174   : > { %1067 = vmatmul.f32.gmra.mxu1 %v3921_v41  ;;  %1196 = vmatpush.xpose.msrb.mxu3 %v655_v44  ;;  %v4095_v41 = vpop.f32.mrf.mxu3 }
 0x175   : > { %v835_v15 = vadd.f32 %v4095_v41, %v4022_v16 }
 0x178   : > { %1197 = vmatpush.xpose.msrb.mxu3 %v652_v28  ;;  %v4083_v2 = vpop.f32.mrf.mxu0 }
 0x179   : > { %v4085_v10 = vpop.f32.mrf.mxu1 }
 0x17b   : > { %978 = vmatmul.f32.gmra.mxu0 %v3867_v42  ;;  %1120 = vmatmul.f32.gmra.mxu2 %v814_v54  ;;  %v643_v42 = vadd.f32 %v3966_v37, %v3964_v36  ;;  %v820_v36 = vadd.f32 %v4026_v51, %v3924_v8  ;;  %v637_v37 = vadd.f32 %v3928_v18, %v3926_v22  ;;  %v5751_v51 = vld [vmem:[#allocation4_spill] sm:$0xff] }
 0x17c   : > { %1070 = vmatmul.f32.gmra.mxu1 %v3939_v0  ;;  %1198 = vmatpush.xpose.msrb.mxu3 %v649_v34  ;;  %v4109_v0 = vpop.f32.mrf.mxu2  ;;  %v837_v24 = vpop.f32.mrf.mxu3  ;;  %v823_v8 = vadd.f32 %v4038_v11, %v3942_v7 }
 0x180   : > { %1199 = vmatpush.xpose.msrb.mxu3 %v646_v13  ;;  %v4099_v30 = vpop.f32.mrf.mxu0 }
 0x181   : > { %v4101_v31 = vpop.f32.mrf.mxu1 }
 0x183   : > { %981 = vmatmul.f32.gmra.mxu0 %v5749_v47  ;;  %1123 = vmatmul.f32.gmra.mxu2 %v817_v23 }
 0x184   : > { %1073 = vmatmul.f32.gmra.mxu1 %v3961_v48  ;;  %1200 = vmatpush.xpose.msrb.mxu3 %v643_v42  ;;  %v5750_v48 = vld [vmem:[#allocation3_spill] sm:$0xff]  ;;  %v4123_v5 = vpop.f32.mrf.mxu2  ;;  %v840_v53 = vpop.f32.mrf.mxu3 }
 0x188   : > { %1201 = vmatpush.xpose.msrb.mxu3 %v640_v25  ;;  %v4113_v63 = vpop.f32.mrf.mxu0 }
 0x189   : > { %v4115_v56 = vpop.f32.mrf.mxu1 }
 0x18b   : > { %984 = vmatmul.f32.gmra.mxu0 %v5750_v48  ;;  %1126 = vmatmul.f32.gmra.mxu2 %v820_v36 }
 0x18c   : > { %1076 = vmatmul.f32.gmra.mxu1 %v3983_v33  ;;  %1202 = vmatpush.xpose.msrb.mxu3 %v637_v37  ;;  %v4134_v22 = vpop.f32.mrf.mxu2  ;;  %v843_v9 = vpop.f32.mrf.mxu3 }
 0x18d   : > { %v844_v28 = vadd.f32 %v843_v9, %v4071_v21 }
 0x18f   : > { %1203 = vmatmul.f32.vlgmr.msrb.gmra.mxu3 %v4052_v46  ;;  %v829_v46 = vadd.f32 %v4067_v43, %v3990_v49 }
 0x190   : > { %v4126_v55 = vpop.f32.mrf.mxu0 }
 0x191   : > { %v4128_v6 = vpop.f32.mrf.mxu1 }
 0x193   : > { %987 = vmatmul.f32.gmra.mxu0 %v5751_v51  ;;  %1129 = vmatmul.f32.gmra.mxu2 %v823_v8 }
 0x194   : > { %1079 = vmatmul.f32.gmra.mxu1 %v4001_v17  ;;  %v4148_v11 = vpop.f32.mrf.mxu2  ;;  %v846_v19 = vpop.f32.mrf.mxu3 }
 0x195   : > { %v4186_v41 = vadd.f32 %v846_v19, %v4087_v58 }
 0x197   : > { %1206 = vmatmul.f32.gmra.mxu3 %v808_v38  ;;  %v838_v38 = vadd.f32 %v837_v24, %v4042_v1 }
 0x198   : > { %v4136_v18 = vpop.f32.mrf.mxu0 }
 0x199   : > { %v4138_v33 = vpop.f32.mrf.mxu1 }
 0x19b   : > { %990 = vmatmul.f32.gmra.mxu0 %v3915_v52  ;;  %1132 = vmatmul.f32.gmra.mxu2 %v826_v45 }
 0x19c   : > { %1082 = vmatmul.f32.gmra.mxu1 %v4019_v61  ;;  %v4162_v14 = vpop.f32.mrf.mxu2 }
 0x19f   : > { %1209 = vmatmul.f32.gmra.mxu3 %v811_v26 }
 0x1a0   : > { %v4144_v7 = vpop.f32.mrf.mxu0 }
 0x1a1   : > { %v4146_v17 = vpop.f32.mrf.mxu1 }
 0x1a3   : > { %993 = vmatmul.f32.gmra.mxu0 %v3933_v57  ;;  %1135 = vmatmul.f32.gmra.mxu2 %v829_v46  ;;  %v849_v57 = vpop.f32.mrf.mxu3 }
 0x1a4   : > { %1085 = vmatmul.f32.gmra.mxu1 %v4033_v27  ;;  %v4192_v42 = vadd.f32 %v849_v57, %v4109_v0 }
 0x1a7   : > { %1212 = vmatmul.f32.gmra.mxu3 %v814_v54 }
 0x1a8   : > { %v4154_v52 = vpop.f32.mrf.mxu0 }
 0x1a9   : > { %v4156_v61 = vpop.f32.mrf.mxu1 }
 0x1ab   : > { %996 = vmatmul.f32.gmra.mxu0 %v3953_v35  ;;  %1138 = vmatmul.f32.gmra.mxu2 %v832_v12  ;;  %v4172_v35 = vpop.f32.mrf.mxu2  ;;  %v852_v3 = vpop.f32.mrf.mxu3 }
 0x1ac   : > { %1088 = vmatmul.f32.gmra.mxu1 %v4047_v59  ;;  %v4200_v25 = vadd.f32 %v852_v3, %v4123_v5 }
 0x1af   : > { %1215 = vmatmul.f32.gmra.mxu3 %v817_v23 }
 0x1b0   : > { %v4164_v49 = vpop.f32.mrf.mxu0 }
 0x1b1   : > { %v4166_v27 = vpop.f32.mrf.mxu1 }
 0x1b3   : > { %999 = vmatmul.f32.gmra.mxu0 %v3975_v62  ;;  %1141 = vmatmul.f32.gmra.mxu2 %v835_v15  ;;  %v4179_v43 = vpop.f32.mrf.mxu2  ;;  %v855_v62 = vpop.f32.mrf.mxu3 }
 0x1b4   : > { %1091 = vmatmul.f32.gmra.mxu1 %v4062_v40  ;;  %v841_v40 = vadd.f32 %v840_v53, %v4059_v39  ;;  %v4206_v51 = vadd.f32 %v855_v62, %v4134_v22 }
 0x1b7   : > { %1218 = vmatmul.f32.gmra.mxu3 %v820_v36 }
 0x1b8   : > { %v4174_v59 = vpop.f32.mrf.mxu0 }
 0x1b9   : > { %v4176_v32 = vpop.f32.mrf.mxu1 }
 0x1bb   : > { %1144 = vmatmul.f32.gmra.mxu2 %v838_v38  ;;  %v4182_v29 = vpop.f32.mrf.mxu2  ;;  %v858_v54 = vpop.f32.mrf.mxu3 }
 0x1bf   : > { %1221 = vmatmul.f32.gmra.mxu3 %v823_v8 }
 0x1c0   : > { %v958_v16 = vpop.f32.mrf.mxu0 }
 0x1c1   : > { %v1050_v20 = vpop.f32.mrf.mxu1 }
 0x1c3   : > { %1147 = vmatmul.f32.gmra.mxu2 %v841_v40  ;;  %v4188_v13 = vpop.f32.mrf.mxu2  ;;  %v861_v39 = vpop.f32.mrf.mxu3 }
 0x1c7   : > { %1224 = vmatmul.f32.gmra.mxu3 %v826_v45 }
 0x1c8   : > { %v961_v26 = vpop.f32.mrf.mxu0 }
 0x1c9   : > { %v1053_v44 = vpop.f32.mrf.mxu1 }
 0x1ca   : > { %v1054_v3 = vadd.f32 %v1053_v44, %v961_v26  ;;  %v1045_v26 = vadd.f32 %v4166_v27, %v4164_v49  ;;  %v1039_v27 = vadd.f32 %v4146_v17, %v4144_v7 }
 0x1cb   : > { %1150 = vmatmul.f32.gmra.mxu2 %v844_v28  ;;  %v4195_v21 = vpop.f32.mrf.mxu2  ;;  %v4197_v47 = vpop.f32.mrf.mxu3 }
 0x1cf   : > { %1227 = vmatmul.f32.gmra.mxu3 %v829_v46 }
 0x1d0   : > { %v964_v1 = vpop.f32.mrf.mxu0 }
 0x1d1   : > { %v1056_v34 = vpop.f32.mrf.mxu1 }
 0x1d2   : > { %v1057_v46 = vadd.f32 %v1056_v34, %v964_v1  ;;  %v1042_v1 = vadd.f32 %v4156_v61, %v4154_v52  ;;  %v1036_v52 = vadd.f32 %v4138_v33, %v4136_v18 }
 0x1d3   : > { %1153 = vmatmul.f32.gmra.mxu2 %v4186_v41  ;;  %v4203_v8 = vpop.f32.mrf.mxu3 }
 0x1d7   : > { %1230 = vmatmul.f32.gmra.mxu3 %v832_v12 }
 0x1d8   : > { %v967_v4 = vpop.f32.mrf.mxu0 }
 0x1d9   : > { %v1059_v23 = vpop.f32.mrf.mxu1 }
 0x1da   : > { %v1060_v5 = vadd.f32 %v1059_v23, %v967_v4 }
 0x1db   : > { %1156 = vmatmul.f32.gmra.mxu2 %v4192_v42  ;;  %v4218_v4 = vpop.f32.mrf.mxu3 }
 0x1df   : > { %1233 = vmatmul.f32.gmra.mxu3 %v835_v15 }
 0x1e0   : > { %v970_v58 = vpop.f32.mrf.mxu0 }
 0x1e1   : > { %v1062_v24 = vpop.f32.mrf.mxu1 }
 0x1e2   : > { %v1063_v45 = vadd.f32 %v1062_v24, %v970_v58  ;;  %v1051_v58 = vadd.f32 %v1050_v20, %v958_v16 }
 0x1e3   : > { %1159 = vmatmul.f32.gmra.mxu2 %v4200_v25  ;;  %v4244_v61 = vpop.f32.mrf.mxu3 }
 0x1e6   : > { %v1112_v36 = vpop.f32.mrf.mxu2 }
 0x1e7   : > { %1236 = vmatmul.f32.gmra.mxu3 %v838_v38  ;;  %v1279_v0 = vsub.f32 %v1112_v36, %v1112_v36  ;;  %v4216_v38 = vadd.f32 %v858_v54, %v4148_v11 }
 0x1e8   : > { %v973_v37 = vpop.f32.mrf.mxu0 }
 0x1e9   : > { %v1065_v48 = vpop.f32.mrf.mxu1  ;;  %v1329_v9 = vmul.f32 1.442695, %v1279_v0 }
 0x1ea   : > { %v1066_v53 = vadd.f32 %v1065_v48, %v973_v37  ;;  %v4267_v48 = vadd.f32 %v4197_v47, %v4172_v35  ;;  %v1024_v35 = vadd.f32 %v4085_v10, %v4083_v2 }
 0x1eb   : > { %3076 = vpow2.f32 %v1329_v9  ;;  %1162 = vmatmul.f32.gmra.mxu2 %v4206_v51 }
 0x1ec   : > { %2259 = vmatpush.msra.mxu0 %v1066_v53 }
 0x1ee   : > { %2260 = vmatpush.msra.mxu0 %v1063_v45  ;;  %v1115_v19 = vpop.f32.mrf.mxu2 }
 0x1ef   : > { %1239 = vmatmul.f32.gmra.mxu3 %v841_v40  ;;  %v1281_v15 = vsub.f32 %v1115_v19, %v1115_v19  ;;  %v1048_v40 = vadd.f32 %v4176_v32, %v4174_v59  ;;  %v4235_v59 = vadd.f32 %v861_v39, %v4162_v14  ;;  %v1033_v39 = vadd.f32 %v4128_v6, %v4126_v55 }
 0x1f0   : > { %2261 = vmatpush.msra.mxu0 %v1060_v5  ;;  %v4209_v12 = vpop.f32.mrf.mxu0  ;;  %v1030_v55 = vadd.f32 %v4115_v56, %v4113_v63  ;;  %v1027_v63 = vadd.f32 %v4101_v31, %v4099_v30  ;;  %v4281_v30 = vpop.f32.mrf.mxu3 }
 0x1f1   : > { %v4211_v57 = vpop.f32.mrf.mxu1  ;;  %v4213_v22 = vpop.eup %3076  ;;  %v1333_v62 = vmul.f32 1.442695, %v1281_v15 }
 0x1f2   : > { %2262 = vmatpush.msra.mxu0 %v1057_v46  ;;  %3078 = vrcp.f32 %v4213_v22  ;;  %v1440_v17 = vand.u32 2147483648, %v4213_v22  ;;  %vm1434_vm1 = vweird.f32 %v4213_v22  ;;  %v1438_v33 = vand.u32 2147483647, %v4213_v22 }
 0x1f3   : > { %3080 = vpow2.f32 %v1333_v62  ;;  %1165 = vmatmul.f32.gmra.mxu2 %v4216_v38  ;;  %v1021_v46 = vadd.f32 %v4075_v50, %v4073_v60 }
 0x1f4   : > { %2263 = vmatpush.msra.mxu0 %v1054_v3  ;;  %v1441_v56 = vor.u32 1.1754944e-38, %v1440_v17  ;;  %vm1439_vm3 = vcmp.eq.f32.partialorder %v1438_v33, 8.507059e+37  ;;  %v4318_v17 = vadd.f32 %v4218_v4, %v4182_v29 }
 0x1f6   : > { %2264 = vmatpush.msra.mxu0 %v1051_v58  ;;  %v1118_v11 = vpop.f32.mrf.mxu2  ;;  %v4296_v58 = vadd.f32 %v4203_v8, %v4179_v43 }
 0x1f7   : > { %1242 = vmatmul.f32.gmra.mxu3 %v844_v28  ;;  %v1283_v20 = vsub.f32 %v1118_v11, %v1118_v11 }
 0x1f8   : > { %2265 = vmatpush.msra.mxu0 %v1048_v40  ;;  %v4226_v44 = vpop.f32.mrf.mxu0  ;;  %v3079_v54 = vpop.eup %3078 }
 0x1f9   : > { %v4228_v16 = vpop.f32.mrf.mxu1  ;;  %v4232_v34 = vpop.eup %3080  ;;  %v1337_v32 = vmul.f32 1.442695, %v1283_v20  ;;  %v1430_v49 = vmul.f32 %v3079_v54, %v4213_v22  ;;  %vm1435_vm0 = vweird.f32 %v3079_v54 }
 0x1fa   : > { %2266 = vmatpush.msra.mxu0 %v1045_v26  ;;  %3082 = vrcp.f32 %v4232_v34  ;;  %vm4259_vm2 = vmor %vm1434_vm1, %vm1435_vm0  ;;  %vm1464_vm5 = vweird.f32 %v4232_v34  ;;  %v1470_v19 = vand.u32 2147483648, %v4232_v34  ;;  %v1468_v60 = vand.u32 2147483647, %v4232_v34 }
 0x1fb   : > { %3084 = vpow2.f32 %v1337_v32  ;;  %1168 = vmatmul.f32.gmra.mxu2 %v4235_v59  ;;  %v1431_v28 = vsub.f32 1.0, %v1430_v49 }
 0x1fc   : > { %2267 = vmatpush.msra.mxu0 %v1042_v1  ;;  %vm1469_vm7 = vcmp.eq.f32.partialorder %v1468_v60, 8.507059e+37 }
 0x1fd   : > { %v1432_v14 = vmul.f32 %v3079_v54, %v1431_v28 }
 0x1fe   : > { %2268 = vmatpush.msra.mxu0 %v1039_v27  ;;  %v1121_v7 = vpop.f32.mrf.mxu2 }
 0x1ff   : > { %1245 = vmatmul.f32.gmra.mxu3 %v4186_v41  ;;  %v1285_v36 = vsub.f32 %v1121_v7, %v1121_v7  ;;  %v1433_v18 = vadd.f32 %v3079_v54, %v1432_v14 }
 0x200   : > { %2269 = vmatpush.msra.mxu0 %v1036_v52  ;;  %v4250_v23 = vpop.f32.mrf.mxu0  ;;  %v3083_v37 = vpop.eup %3082 }
 0x201   : > { %v4252_v24 = vpop.f32.mrf.mxu1  ;;  %v4263_v41 = vpop.eup %3084  ;;  %v1341_v0 = vmul.f32 1.442695, %v1285_v36  ;;  %v1437_v53 = vsel %vm4259_vm2, %v3079_v54, %v1433_v18  ;;  %v1460_v9 = vmul.f32 %v3083_v37, %v4232_v34  ;;  %vm1465_vm4 = vweird.f32 %v3083_v37 }
 0x202   : > { %2270 = vmatpush.msra.mxu0 %v1033_v39  ;;  %3086 = vrcp.f32 %v4263_v41  ;;  %v1442_v47 = vsel %vm1439_vm3, %v1441_v56, %v1437_v53  ;;  %vm1466_vm6 = vmor %vm1464_vm5, %vm1465_vm4  ;;  %vm1494_vm9 = vweird.f32 %v4263_v41  ;;  %v1500_v8 = vand.u32 2147483648, %v4263_v41 }
 0x203   : > { %3088 = vpow2.f32 %v1341_v0  ;;  %1171 = vmatmul.f32.gmra.mxu2 %v4267_v48  ;;  %v1461_v45 = vsub.f32 1.0, %v1460_v9  ;;  %v1443_v10 = vmul.f32 %v4213_v22, %v1442_v47  ;;  %v1471_v22 = vor.u32 1.1754944e-38, %v1470_v19 }
 0x204   : > { %2271 = vmatpush.msra.mxu0 %v1030_v55  ;;  %v1498_v14 = vand.u32 2147483647, %v4263_v41  ;;  %v1501_v55 = vor.u32 1.1754944e-38, %v1500_v8  ;;  %v4342_v19 = vadd.f32 %v4244_v61, %v4188_v13 }
 0x205   : > { %v1462_v5 = vmul.f32 %v3083_v37, %v1461_v45 }
 0x206   : > { %2272 = vmatpush.msra.mxu0 %v1027_v63  ;;  %v1124_v31 = vpop.f32.mrf.mxu2  ;;  %vm1499_vm11 = vcmp.eq.f32.partialorder %v1498_v14, 8.507059e+37 }
 0x207   : > { %1248 = vmatmul.f32.gmra.mxu3 %v4192_v42  ;;  %v1287_v3 = vsub.f32 %v1124_v31, %v1124_v31  ;;  %v1463_v62 = vadd.f32 %v3083_v37, %v1462_v5 }
 0x208   : > { %2273 = vmatpush.msra.mxu0 %v1024_v35  ;;  %v4285_v15 = vpop.f32.mrf.mxu0  ;;  %v3087_v50 = vpop.eup %3086 }
 0x209   : > { %v4287_v2 = vpop.f32.mrf.mxu1  ;;  %v4292_v42 = vpop.eup %3088  ;;  %v1345_v40 = vmul.f32 1.442695, %v1287_v3  ;;  %v1467_v26 = vsel %vm1466_vm6, %v3083_v37, %v1463_v62  ;;  %v1490_v11 = vmul.f32 %v3087_v50, %v4263_v41  ;;  %vm1495_vm8 = vweird.f32 %v3087_v50 }
 0x20a   : > { %2274 = vmatpush.msra.mxu0 %v1021_v46  ;;  %3090 = vrcp.f32 %v4292_v42  ;;  %v1472_v54 = vsel %vm1469_vm7, %v1471_v22, %v1467_v26  ;;  %vm4310_vm10 = vmor %vm1494_vm9, %vm1495_vm8  ;;  %vm1524_vm13 = vweird.f32 %v4292_v42  ;;  %v1530_v9 = vand.u32 2147483648, %v4292_v42 }
 0x20b   : > { %2275 = vmatmul.f32.vlgmr.msra.gmra.mxu0 %v1443_v10  ;;  %3092 = vpow2.f32 %v1345_v40  ;;  %1174 = vmatmul.f32.gmra.mxu2 %v4296_v58  ;;  %v1491_v20 = vsub.f32 1.0, %v1490_v11  ;;  %v1473_v27 = vmul.f32 %v4232_v34, %v1472_v54  ;;  %v1528_v5 = vand.u32 2147483647, %v4292_v42 }
 0x20c   : > { %vm2255_vm8 = vcmask 1043456  }
 0x20d   : > { %v1492_v1 = vmul.f32 %v3087_v50, %v1491_v20  ;;  %vm1529_vm15 = vcmp.eq.f32.partialorder %v1528_v5, 8.507059e+37 }
 0x20e   : > { %v1127_v43 = vpop.f32.mrf.mxu2 }
 0x20f   : > { %1251 = vmatmul.f32.gmra.mxu3 %v4200_v25  ;;  %v1289_v28 = vsub.f32 %v1127_v43, %v1127_v43  ;;  %v1493_v52 = vadd.f32 %v3087_v50, %v1492_v1 }
 0x210   : > { %v4304_v32 = vpop.f32.mrf.mxu0  ;;  %v3091_v39 = vpop.eup %3090 }
 0x211   : > { %v4306_v49 = vpop.f32.mrf.mxu1  ;;  %v4314_v25 = vpop.eup %3092  ;;  %v1349_v18 = vmul.f32 1.442695, %v1289_v28  ;;  %v1497_v34 = vsel %vm4310_vm10, %v3087_v50, %v1493_v52  ;;  %v1520_v33 = vmul.f32 %v3091_v39, %v4292_v42  ;;  %vm1525_vm12 = vweird.f32 %v3091_v39 }
 0x212   : > { %v1204_v36 = vpop.f32.mrf.mxu3  ;;  %3094 = vrcp.f32 %v4314_v25  ;;  %v1502_v29 = vsel %vm1499_vm11, %v1501_v55, %v1497_v34  ;;  %vm4334_vm14 = vmor %vm1524_vm13, %vm1525_vm12  ;;  %v1531_v50 = vor.u32 1.1754944e-38, %v1530_v9  ;;  %v1560_v20 = vand.u32 2147483648, %v4314_v25 }
 0x213   : > { %2278 = vmatmul.f32.gmra.mxu0 %v1473_v27  ;;  %v1280_v37 = vsub.f32 %v1204_v36, %v1204_v36  ;;  %3096 = vpow2.f32 %v1349_v18  ;;  %1177 = vmatmul.f32.gmra.mxu2 %v4318_v17  ;;  %v1521_v6 = vsub.f32 1.0, %v1520_v33  ;;  %v1503_v45 = vmul.f32 %v4263_v41, %v1502_v29 }
 0x214   : > { %v1558_v27 = vand.u32 2147483647, %v4314_v25  ;;  %vm1554_vm1 = vweird.f32 %v4314_v25  ;;  %v1561_v34 = vor.u32 1.1754944e-38, %v1560_v20  ;;  %v4407_v20 = vadd.f32 %v4287_v2, %v4285_v15 }
 0x215   : > { %v1331_v0 = vmul.f32 1.442695, %v1280_v37  ;;  %v1522_v4 = vmul.f32 %v3091_v39, %v1521_v6 }
 0x216   : > { %v1130_v53 = vpop.f32.mrf.mxu2  ;;  %vm1559_vm3 = vcmp.eq.f32.partialorder %v1558_v27, 8.507059e+37 }
 0x217   : > { %1254 = vmatmul.f32.gmra.mxu3 %v4206_v51  ;;  %v1291_v35 = vsub.f32 %v1130_v53, %v1130_v53  ;;  %v1523_v47 = vadd.f32 %v3091_v39, %v1522_v4  ;;  %3098 = vpow2.f32 %v1331_v0 }
 0x218   : > { %v4328_v63 = vpop.f32.mrf.mxu0  ;;  %v3095_v46 = vpop.eup %3094 }
 0x219   : > { %v4330_v56 = vpop.f32.mrf.mxu1  ;;  %v4338_v51 = vpop.eup %3096  ;;  %v1353_v3 = vmul.f32 1.442695, %v1291_v35  ;;  %v1527_v41 = vsel %vm4334_vm14, %v3091_v39, %v1523_v47  ;;  %v1550_v62 = vmul.f32 %v3095_v46, %v4314_v25  ;;  %vm1555_vm0 = vweird.f32 %v3095_v46 }
 0x21a   : > { %v1207_v10 = vpop.f32.mrf.mxu3  ;;  %3100 = vrcp.f32 %v4338_v51  ;;  %v1532_v13 = vsel %vm1529_vm15, %v1531_v50, %v1527_v41  ;;  %vm1556_vm2 = vmor %vm1554_vm1, %vm1555_vm0  ;;  %v1590_v55 = vand.u32 2147483648, %v4338_v51  ;;  %vm1584_vm5 = vweird.f32 %v4338_v51 }
 0x21b   : > { %2281 = vmatmul.f32.gmra.mxu0 %v1503_v45  ;;  %v1282_v60 = vsub.f32 %v1207_v10, %v1207_v10  ;;  %3102 = vpow2.f32 %v1353_v3  ;;  %1180 = vmatmul.f32.gmra.mxu2 %v4342_v19  ;;  %v1551_v40 = vsub.f32 1.0, %v1550_v62  ;;  %v1533_v43 = vmul.f32 %v4292_v42, %v1532_v13 }
 0x21c   : > { %v1588_v45 = vand.u32 2147483647, %v4338_v51  ;;  %v1591_v31 = vor.u32 1.1754944e-38, %v1590_v55 }
 0x21d   : > { %v1335_v26 = vmul.f32 1.442695, %v1282_v60  ;;  %v4349_v61 = vpop.eup %3098  ;;  %v1552_v22 = vmul.f32 %v3095_v46, %v1551_v40  ;;  %v4393_v60 = vadd.f32 %v4211_v57, %v4209_v12 }
 0x21e   : > { %v1133_v11 = vpop.f32.mrf.mxu2  ;;  %vm1589_vm7 = vcmp.eq.f32.partialorder %v1588_v45, 8.507059e+37  ;;  %vm1449_vm12 = vweird.f32 %v4349_v61 }
 0x21f   : > { %3104 = vpow2.f32 %v1335_v26  ;;  %1257 = vmatmul.f32.gmra.mxu3 %v4216_v38  ;;  %v1293_v8 = vsub.f32 %v1133_v11, %v1133_v11  ;;  %v1553_v52 = vadd.f32 %v3095_v46, %v1552_v22  ;;  %v4364_v38 = vadd.f32 %v4281_v30, %v4195_v21 }
 0x220   : > { %v4353_v54 = vpop.f32.mrf.mxu0  ;;  %v3101_v28 = vpop.eup %3100  ;;  %3106 = vrcp.f32 %v4349_v61  ;;  %v4399_v11 = vadd.f32 %v4228_v16, %v4226_v44  ;;  %v4403_v22 = vadd.f32 %v4252_v24, %v4250_v23 }
 0x221   : > { %v4355_v1 = vpop.f32.mrf.mxu1  ;;  %v4360_v14 = vpop.eup %3102  ;;  %v1357_v7 = vmul.f32 1.442695, %v1293_v8  ;;  %v1580_v42 = vmul.f32 %v3101_v28, %v4338_v51  ;;  %v1557_v18 = vsel %vm1556_vm2, %v3095_v46, %v1553_v52  ;;  %vm1585_vm4 = vweird.f32 %v3101_v28 }
 0x222   : > { %v1210_v39 = vpop.f32.mrf.mxu3  ;;  %3108 = vrcp.f32 %v4360_v14  ;;  %v1562_v37 = vsel %vm1559_vm3, %v1561_v34, %v1557_v18  ;;  %vm1586_vm6 = vmor %vm1584_vm5, %vm1585_vm4  ;;  %vm1614_vm9 = vweird.f32 %v4360_v14  ;;  %v1620_v2 = vand.u32 2147483648, %v4360_v14 }
 0x223   : > { %2284 = vmatmul.f32.gmra.mxu0 %v1533_v43  ;;  %v1284_v36 = vsub.f32 %v1210_v39, %v1210_v39  ;;  %3110 = vpow2.f32 %v1357_v7  ;;  %1183 = vmatmul.f32.gmra.mxu2 %v4364_v38  ;;  %v1581_v21 = vsub.f32 1.0, %v1580_v42  ;;  %v1563_v9 = vmul.f32 %v4314_v25, %v1562_v37 }
 0x224   : > { %v1453_v43 = vand.u32 2147483647, %v4349_v61  ;;  %v1618_v34 = vand.u32 2147483647, %v4360_v14  ;;  %vm2179_vm3 = vcmask 556032  }
 0x225   : > { %v4371_v30 = vpop.eup %3104  ;;  %v1339_v33 = vmul.f32 1.442695, %v1284_v36  ;;  %v1582_v0 = vmul.f32 %v3101_v28, %v1581_v21  ;;  %v1081_v21 = vadd.f32 %v4306_v49, %v4304_v32  ;;  %v1455_v32 = vand.u32 2147483648, %v4349_v61 }
 0x226   : > { %v1136_v6 = vpop.f32.mrf.mxu2  ;;  %v4375_v29 = vpop.eup %3106  ;;  %3112 = vrcp.f32 %v4371_v30  ;;  %vm4450_vm13 = vcmp.eq.f32.partialorder %v1453_v43, 8.507059e+37  ;;  %vm1619_vm15 = vcmp.eq.f32.partialorder %v1618_v34, 8.507059e+37  ;;  %vm1479_vm4 = vweird.f32 %v4371_v30 }
 0x227   : > { %1260 = vmatmul.f32.gmra.mxu3 %v4235_v59  ;;  %3114 = vpow2.f32 %v1339_v33  ;;  %v1295_v47 = vsub.f32 %v1136_v6, %v1136_v6  ;;  %v1583_v5 = vadd.f32 %v3101_v28, %v1582_v0  ;;  %v1445_v3 = vmul.f32 %v4375_v29, %v4349_v61 }
 0x228   : > { %v997_v4 = vpop.f32.mrf.mxu0  ;;  %v4380_v35 = vpop.eup %3108  ;;  %v1084_v33 = vadd.f32 %v4330_v56, %v4328_v63  ;;  %v1087_v0 = vadd.f32 %v4355_v1, %v4353_v54  ;;  %vm1450_vm14 = vweird.f32 %v4375_v29 }
 0x229   : > { %v1089_v53 = vpop.f32.mrf.mxu1  ;;  %v4383_v59 = vpop.eup %3110  ;;  %v1610_v10 = vmul.f32 %v4380_v35, %v4360_v14  ;;  %v1587_v41 = vsel %vm1586_vm6, %v3101_v28, %v1583_v5  ;;  %v1361_v40 = vmul.f32 1.442695, %v1295_v47  ;;  %v1446_v57 = vsub.f32 1.0, %v1445_v3  ;;  %vm4476_vm2 = vmor %vm1449_vm12, %vm1450_vm14 }
 0x22a   : > { %v1213_v46 = vpop.f32.mrf.mxu3  ;;  %3116 = vrcp.f32 %v4383_v59  ;;  %v1592_v26 = vsel %vm1589_vm7, %v1591_v31, %v1587_v41  ;;  %vm1615_vm10 = vweird.f32 %v4380_v35  ;;  %v1090_v42 = vadd.f32 %v1089_v53, %v997_v4 }
 0x22b   : > { %2287 = vmatmul.f32.gmra.mxu0 %v1563_v9  ;;  %v1286_v25 = vsub.f32 %v1213_v46, %v1213_v46  ;;  %v1611_v62 = vsub.f32 1.0, %v1610_v10  ;;  %v1593_v23 = vmul.f32 %v4338_v51, %v1592_v26  ;;  %v1447_v36 = vmul.f32 %v4375_v29, %v1446_v57  ;;  %vm4437_vm11 = vmor %vm1614_vm9, %vm1615_vm10 }
 0x22c   : > { %v4395_v13 = vpop.eup %3112  ;;  %v1621_v53 = vor.u32 1.1754944e-38, %v1620_v2  ;;  %v1456_v46 = vor.u32 1.1754944e-38, %v1455_v32  ;;  %vm1644_vm0 = vweird.f32 %v4383_v59  ;;  %v1650_v41 = vand.u32 2147483648, %v4383_v59 }
 0x22d   : > { %v1343_v50 = vmul.f32 1.442695, %v1286_v25  ;;  %v4409_v12 = vpop.eup %3114  ;;  %v1612_v15 = vmul.f32 %v4380_v35, %v1611_v62  ;;  %v1448_v54 = vadd.f32 %v4375_v29, %v1447_v36  ;;  %vm1480_vm6 = vweird.f32 %v4395_v13 }
 0x22e   : > { %v1139_v8 = vpop.f32.mrf.mxu2  ;;  %v1651_v2 = vor.u32 1.1754944e-38, %v1650_v41  ;;  %vm4524_vm9 = vmor %vm1479_vm4, %vm1480_vm6 }
 0x22f   : > { %3118 = vpow2.f32 %v1343_v50  ;;  %1263 = vmatmul.f32.gmra.mxu3 %v4267_v48  ;;  %v1297_v24 = vsub.f32 %v1139_v8, %v1139_v8  ;;  %v1475_v48 = vmul.f32 %v4395_v13, %v4371_v30  ;;  %v1613_v51 = vadd.f32 %v4380_v35, %v1612_v15 }
 0x230   : > { %v1000_v44 = vpop.f32.mrf.mxu0  ;;  %v4417_v27 = vpop.eup %3116  ;;  %3120 = vpow2.f32 %v1361_v40  ;;  %v1648_v40 = vand.u32 2147483647, %v4383_v59  ;;  %v1452_v26 = vsel %vm4476_vm2, %v4375_v29, %v1448_v54  ;;  %v1485_v29 = vand.u32 2147483648, %v4371_v30 }
 0x231   : > { %v1092_v16 = vpop.f32.mrf.mxu1  ;;  %3122 = vrcp.f32 %v4409_v12  ;;  %v1365_v39 = vmul.f32 1.442695, %v1297_v24  ;;  %v1640_v7 = vmul.f32 %v4417_v27, %v4383_v59  ;;  %v1617_v63 = vsel %vm4437_vm11, %v4380_v35, %v1613_v51 }
 0x232   : > { %v1093_v28 = vadd.f32 %v1092_v16, %v1000_v44  ;;  %v1216_v52 = vpop.f32.mrf.mxu3  ;;  %v1476_v4 = vsub.f32 1.0, %v1475_v48  ;;  %v1622_v35 = vsel %vm1619_vm15, %v1621_v53, %v1617_v63  ;;  %vm1645_vm1 = vweird.f32 %v4417_v27 }
 0x233   : > { %2290 = vmatmul.f32.gmra.mxu0 %v1593_v23  ;;  %v1288_v18 = vsub.f32 %v1216_v52, %v1216_v52  ;;  %3124 = vpow2.f32 %v1365_v39  ;;  %v1641_v55 = vsub.f32 1.0, %v1640_v7  ;;  %v1623_v31 = vmul.f32 %v4360_v14, %v1622_v35  ;;  %vm4492_vm5 = vmor %vm1644_vm0, %vm1645_vm1 }
 0x234   : > { %3039 = vmatpush.msk.msra.mxu1 %vm2255_vm8, %v1093_v28  ;;  %v1483_v44 = vand.u32 2147483647, %v4371_v30  ;;  %vm1649_vm7 = vcmp.eq.f32.partialorder %v1648_v40, 8.507059e+37  ;;  %v1513_v52 = vand.u32 2147483647, %v4409_v12  ;;  %v1515_v39 = vand.u32 2147483648, %v4409_v12 }
 0x235   : > { %v4441_v6 = vpop.eup %3118  ;;  %v1347_v49 = vmul.f32 1.442695, %v1288_v18  ;;  %v1642_v5 = vmul.f32 %v4417_v27, %v1641_v55  ;;  %vm1509_vm11 = vweird.f32 %v4409_v12 }
 0x236   : > { %2359 = vmatpush.msra.mxu1 %v1090_v42  ;;  %v4454_v9 = vpop.eup %3120  ;;  %v1142_v1 = vpop.f32.mrf.mxu2  ;;  %vm4538_vm10 = vcmp.eq.f32.partialorder %v1483_v44, 8.507059e+37  ;;  %vm4551_vm12 = vcmp.eq.f32.partialorder %v1513_v52, 8.507059e+37  ;;  %v1545_v35 = vand.u32 2147483648, %v4441_v6  ;;  %vm1539_vm15 = vweird.f32 %v4441_v6 }
 0x237   : > { %3126 = vpow2.f32 %v1347_v49  ;;  %1266 = vmatmul.f32.gmra.mxu3 %v4296_v58  ;;  %v4459_v45 = vpop.eup %3122  ;;  %v1299_v47 = vsub.f32 %v1142_v1, %v1142_v1  ;;  %v1477_v58 = vmul.f32 %v4395_v13, %v1476_v4  ;;  %v1643_v3 = vadd.f32 %v4417_v27, %v1642_v5 }
 0x238   : > { %2360 = vmatpush.msra.mxu1 %v1087_v0  ;;  %3128 = vrcp.f32 %v4441_v6  ;;  %v1505_v50 = vmul.f32 %v4459_v45, %v4409_v12  ;;  %vm1510_vm14 = vweird.f32 %v4459_v45  ;;  %v1543_v1 = vand.u32 2147483647, %v4441_v6 }
 0x239   : > { %v4466_v10 = vpop.eup %3124  ;;  %3130 = vrcp.f32 %v4454_v9  ;;  %v1369_v57 = vmul.f32 1.442695, %v1299_v47  ;;  %v1647_v23 = vsel %vm4492_vm5, %v4417_v27, %v1643_v3  ;;  %v1478_v15 = vadd.f32 %v4395_v13, %v1477_v58  ;;  %vm4578_vm1 = vmor %vm1509_vm11, %vm1510_vm14 }
 0x23a   : > { %2361 = vmatpush.msra.mxu1 %v1084_v33  ;;  %v1219_v25 = vpop.f32.mrf.mxu3  ;;  %3132 = vrcp.f32 %v4466_v10  ;;  %v1506_v28 = vsub.f32 1.0, %v1505_v50  ;;  %v1652_v51 = vsel %vm1649_vm7, %v1651_v2, %v1647_v23  ;;  %v1678_v5 = vand.u32 2147483647, %v4454_v9 }
 0x23b   : > { %v1290_v62 = vsub.f32 %v1219_v25, %v1219_v25  ;;  %2293 = vmatmul.f32.gmra.mxu0 %v1623_v31  ;;  %v1653_v42 = vmul.f32 %v4383_v59, %v1652_v51  ;;  %v1680_v40 = vand.u32 2147483648, %v4454_v9  ;;  %vm4588_vm2 = vcmp.eq.f32.partialorder %v1543_v1, 8.507059e+37 }
 0x23c   : > { %2362 = vmatpush.msra.mxu1 %v1081_v21  ;;  %v1507_v37 = vmul.f32 %v4459_v45, %v1506_v28  ;;  %vm4600_vm5 = vcmp.eq.f32.partialorder %v1678_v5, 8.507059e+37  ;;  %vm1704_vm6 = vweird.f32 %v4466_v10 }
 0x23d   : > { %v4496_v8 = vpop.eup %3126  ;;  %v1351_v16 = vmul.f32 1.442695, %v1290_v62  ;;  %v1681_v51 = vor.u32 1.1754944e-38, %v1680_v40 }
 0x23e   : > { %2363 = vmatpush.msra.mxu1 %v4407_v20  ;;  %v4504_v24 = vpop.eup %3128  ;;  %3134 = vrcp.f32 %v4496_v8  ;;  %v1457_v20 = vsel %vm4450_vm13, %v1456_v46, %v1452_v26  ;;  %v1145_v27 = vpop.f32.mrf.mxu2  ;;  %vm1674_vm13 = vweird.f32 %v4454_v9  ;;  %v1508_v47 = vadd.f32 %v4459_v45, %v1507_v37 }
 0x23f   : > { %3136 = vpow2.f32 %v1351_v16  ;;  %1269 = vmatmul.f32.gmra.mxu3 %v4318_v17  ;;  %v4513_v48 = vpop.eup %3130  ;;  %v1301_v36 = vsub.f32 %v1145_v27, %v1145_v27  ;;  %v1458_v34 = vmul.f32 %v4349_v61, %v1457_v20  ;;  %v1486_v61 = vor.u32 1.1754944e-38, %v1485_v29 }
 0x240   : > { %2364 = vmatpush.msra.mxu1 %v4403_v22  ;;  %3138 = vpow2.f32 %v1369_v57  ;;  %v4517_v7 = vpop.eup %3132  ;;  %v1535_v22 = vmul.f32 %v4504_v24, %v4441_v6  ;;  %v1670_v18 = vmul.f32 %v4513_v48, %v4454_v9  ;;  %vm1675_vm0 = vweird.f32 %v4513_v48 }
 0x241   : > { %v1700_v55 = vmul.f32 %v4517_v7, %v4466_v10  ;;  %v1373_v4 = vmul.f32 1.442695, %v1301_v36  ;;  %v1512_v26 = vsel %vm4578_vm1, %v4459_v45, %v1508_v47  ;;  %v1546_v57 = vor.u32 1.1754944e-38, %v1545_v35  ;;  %vm4596_vm4 = vmor %vm1674_vm13, %vm1675_vm0 }
 0x242   : > { %2365 = vmatpush.msra.mxu1 %v4399_v11  ;;  %v1482_v11 = vsel %vm4524_vm9, %v4395_v13, %v1478_v15  ;;  %v1222_v21 = vpop.f32.mrf.mxu3  ;;  %v1516_v13 = vor.u32 1.1754944e-38, %v1515_v39  ;;  %v1536_v56 = vsub.f32 1.0, %v1535_v22  ;;  %vm1540_vm7 = vweird.f32 %v4504_v24 }
 0x243   : > { %v1292_v59 = vsub.f32 %v1222_v21, %v1222_v21  ;;  %2296 = vmatmul.f32.gmra.mxu0 %v1653_v42  ;;  %v1487_v54 = vsel %vm4538_vm10, %v1486_v61, %v1482_v11  ;;  %v1701_v31 = vsub.f32 1.0, %v1700_v55  ;;  %v1573_v39 = vand.u32 2147483647, %v4496_v8  ;;  %vm4630_vm10 = vmor %vm1539_vm15, %vm1540_vm7 }
 0x244   : > { %2366 = vmatpush.msra.mxu1 %v4393_v60  ;;  %v4545_v0 = vpop.eup %3134  ;;  %v1671_v60 = vsub.f32 1.0, %v1670_v18  ;;  %v1537_v41 = vmul.f32 %v4504_v24, %v1536_v56  ;;  %v1517_v52 = vsel %vm4551_vm12, %v1516_v13, %v1512_v26  ;;  %v1575_v22 = vand.u32 2147483648, %v4496_v8 }
 0x245   : > { %3040 = vmatmul.msk.f32.vlgmr.msra.gmra.mxu1 %vm2179_vm3, %v1458_v34  ;;  %v4549_v32 = vpop.eup %3136  ;;  %v1355_v63 = vmul.f32 1.442695, %v1292_v59  ;;  %v1565_v58 = vmul.f32 %v4545_v0, %v4496_v8  ;;  %v1702_v44 = vmul.f32 %v4517_v7, %v1701_v31  ;;  %vm1705_vm9 = vweird.f32 %v4517_v7 }
 0x246   : > { %v4556_v53 = vpop.eup %3138  ;;  %v1148_v46 = vpop.f32.mrf.mxu2  ;;  %v1672_v25 = vmul.f32 %v4513_v48, %v1671_v60  ;;  %v1538_v2 = vadd.f32 %v4504_v24, %v1537_v41  ;;  %v1710_v11 = vand.u32 2147483648, %v4466_v10  ;;  %v1708_v59 = vand.u32 2147483647, %v4466_v10  ;;  %vm4655_vm13 = vmor %vm1704_vm6, %vm1705_vm9 }
 0x247   : > { %3140 = vpow2.f32 %v1355_v63  ;;  %1272 = vmatmul.f32.gmra.mxu3 %v4342_v19  ;;  %v1303_v3 = vsub.f32 %v1148_v46, %v1148_v46  ;;  %v1488_v19 = vmul.f32 %v4371_v30, %v1487_v54  ;;  %v1566_v29 = vsub.f32 1.0, %v1565_v58 }
 0x248   : > { %3142 = vrcp.f32 %v4549_v32  ;;  %v1673_v50 = vadd.f32 %v4513_v48, %v1672_v25  ;;  %v1703_v42 = vadd.f32 %v4517_v7, %v1702_v44  ;;  %v1542_v21 = vsel %vm4630_vm10, %v4504_v24, %v1538_v2 }
 0x249   : > { %3144 = vpow2.f32 %v1373_v4  ;;  %v1377_v45 = vmul.f32 1.442695, %v1303_v3  ;;  %v1567_v34 = vmul.f32 %v4545_v0, %v1566_v29  ;;  %v1518_v55 = vmul.f32 %v4409_v12, %v1517_v52 }
 0x24a   : > { %v1225_v62 = vpop.f32.mrf.mxu3  ;;  %3146 = vrcp.f32 %v4556_v53  ;;  %v1677_v28 = vsel %vm4596_vm4, %v4513_v48, %v1673_v50  ;;  %vm1569_vm11 = vweird.f32 %v4496_v8  ;;  %vm4647_vm12 = vcmp.eq.f32.partialorder %v1573_v39, 8.507059e+37 }
 0x24b   : > { %v1294_v43 = vsub.f32 %v1225_v62, %v1225_v62  ;;  %vm1570_vm14 = vweird.f32 %v4545_v0  ;;  %v1707_v60 = vsel %vm4655_vm13, %v4517_v7, %v1703_v42  ;;  %v1547_v63 = vsel %vm4588_vm2, %v1546_v57, %v1542_v21 }
 0x24c   : > { %v1568_v56 = vadd.f32 %v4545_v0, %v1567_v34  ;;  %v1711_v4 = vor.u32 1.1754944e-38, %v1710_v11  ;;  %v1576_v35 = vor.u32 1.1754944e-38, %v1575_v22  ;;  %vm1709_vm15 = vcmp.eq.f32.partialorder %v1708_v59, 8.507059e+37  ;;  %vm4683_vm1 = vmor %vm1569_vm11, %vm1570_vm14 }
 0x24d   : > { %3041 = vmatmul.msk.f32.gmra.mxu1 %vm2179_vm3, %v1488_v19  ;;  %v4605_v15 = vpop.eup %3140  ;;  %v1359_v20 = vmul.f32 1.442695, %v1294_v43  ;;  %vm1734_vm0 = vweird.f32 %v4556_v53  ;;  %v1548_v58 = vmul.f32 %v4441_v6, %v1547_v63  ;;  %vm1599_vm2 = vweird.f32 %v4549_v32 }
 0x24e   : > { %v4612_v27 = vpop.eup %3142  ;;  %3148 = vrcp.f32 %v4605_v15  ;;  %v1151_v48 = vpop.f32.mrf.mxu2  ;;  %v1712_v46 = vsel %vm1709_vm15, %v1711_v4, %v1707_v60  ;;  %v1603_v3 = vand.u32 2147483647, %v4549_v32  ;;  %v1572_v6 = vsel %vm4683_vm1, %v4545_v0, %v1568_v56 }
 0x24f   : > { %v4618_v17 = vpop.eup %3144  ;;  %3150 = vpow2.f32 %v1359_v20  ;;  %1275 = vmatmul.f32.gmra.mxu3 %v4364_v38  ;;  %v1682_v38 = vsel %vm4600_vm5, %v1681_v51, %v1677_v28  ;;  %v1595_v33 = vmul.f32 %v4612_v27, %v4549_v32  ;;  %v1305_v31 = vsub.f32 %v1151_v48, %v1151_v48 }
 0x250   : > { %v4624_v36 = vpop.eup %3146  ;;  %3152 = vpow2.f32 %v1377_v45  ;;  %v1683_v37 = vmul.f32 %v4454_v9, %v1682_v38  ;;  %v1605_v14 = vand.u32 2147483648, %v4549_v32  ;;  %v1740_v50 = vand.u32 2147483648, %v4556_v53 }
 0x251   : > { %v1730_v9 = vmul.f32 %v4624_v36, %v4556_v53  ;;  %3154 = vrcp.f32 %v4618_v17  ;;  %v1596_v5 = vsub.f32 1.0, %v1595_v33  ;;  %v1713_v30 = vmul.f32 %v4466_v10, %v1712_v46 }
 0x252   : > { %v1228_v13 = vpop.f32.mrf.mxu3  ;;  %2299 = vmatmul.f32.gmra.mxu0 %v1683_v37  ;;  %vm1735_vm4 = vweird.f32 %v4624_v36  ;;  %v1381_v43 = vmul.f32 1.442695, %v1305_v31  ;;  %v1577_v16 = vsel %vm4647_vm12, %v1576_v35, %v1572_v6  ;;  %vm4708_vm5 = vcmp.eq.f32.partialorder %v1603_v3, 8.507059e+37 }
 0x253   : > { %v1296_v12 = vsub.f32 %v1228_v13, %v1228_v13  ;;  %v1731_v54 = vsub.f32 1.0, %v1730_v9  ;;  %v1597_v26 = vmul.f32 %v4612_v27, %v1596_v5  ;;  %v1738_v2 = vand.u32 2147483647, %v4556_v53  ;;  %vm4721_vm7 = vmor %vm1734_vm0, %vm1735_vm4 }
 0x254   : > { %v4666_v49 = vpop.eup %3148  ;;  %vm1600_vm6 = vweird.f32 %v4612_v27  ;;  %v1606_v28 = vor.u32 1.1754944e-38, %v1605_v14  ;;  %vm1764_vm9 = vweird.f32 %v4618_v17  ;;  %v1633_v48 = vand.u32 2147483647, %v4605_v15 }
 0x255   : > { %3042 = vmatmul.msk.f32.gmra.mxu1 %vm2179_vm3, %v1518_v55  ;;  %v4672_v1 = vpop.eup %3150  ;;  %v1363_v47 = vmul.f32 1.442695, %v1296_v12  ;;  %v1625_v41 = vmul.f32 %v4666_v49, %v4605_v15  ;;  %v1732_v62 = vmul.f32 %v4624_v36, %v1731_v54  ;;  %v1598_v22 = vadd.f32 %v4612_v27, %v1597_v26  ;;  %vm4742_vm11 = vmor %vm1599_vm2, %vm1600_vm6 }
 0x256   : > { %v4674_v7 = vpop.eup %3152  ;;  %3156 = vrcp.f32 %v4672_v1  ;;  %v1154_v19 = vpop.f32.mrf.mxu2  ;;  %v1578_v34 = vmul.f32 %v4496_v8, %v1577_v16  ;;  %v1741_v38 = vor.u32 1.1754944e-38, %v1740_v50  ;;  %v1635_v37 = vand.u32 2147483648, %v4605_v15 }
 0x257   : > { %3158 = vpow2.f32 %v1363_v47  ;;  %v4697_v40 = vpop.eup %3154  ;;  %v1733_v0 = vadd.f32 %v4624_v36, %v1732_v62  ;;  %v1307_v44 = vsub.f32 %v1154_v19, %v1154_v19  ;;  %v1626_v45 = vsub.f32 1.0, %v1625_v41 }
 0x258   : > { %3160 = vrcp.f32 %v4674_v7  ;;  %v1760_v29 = vmul.f32 %v4697_v40, %v4618_v17  ;;  %vm1739_vm10 = vcmp.eq.f32.partialorder %v1738_v2, 8.507059e+37  ;;  %v1602_v13 = vsel %vm4742_vm11, %v4612_v27, %v1598_v22 }
 0x259   : > { %v1737_v18 = vsel %vm4721_vm7, %v4624_v36, %v1733_v0  ;;  %3162 = vpow2.f32 %v1381_v43  ;;  %v1385_v11 = vmul.f32 1.442695, %v1307_v44  ;;  %v1627_v33 = vmul.f32 %v4666_v49, %v1626_v45 }
 0x25a   : > { %v1231_v57 = vpop.f32.mrf.mxu3  ;;  %2302 = vmatmul.f32.gmra.mxu0 %v1713_v30  ;;  %v1761_v39 = vsub.f32 1.0, %v1760_v29  ;;  %v1742_v55 = vsel %vm1739_vm10, %v1741_v38, %v1737_v18  ;;  %vm1765_vm12 = vweird.f32 %v4697_v40  ;;  %v1770_v63 = vand.u32 2147483648, %v4618_v17 }
 0x25b   : > { %v1298_v10 = vsub.f32 %v1231_v57, %v1231_v57  ;;  %v1743_v24 = vmul.f32 %v4556_v53, %v1742_v55  ;;  %v1628_v4 = vadd.f32 %v4666_v49, %v1627_v33  ;;  %vm1630_vm13 = vweird.f32 %v4666_v49  ;;  %vm4771_vm14 = vmor %vm1764_vm9, %vm1765_vm12 }
 0x25c   : > { %v4713_v20 = vpop.eup %3156  ;;  %v1762_v61 = vmul.f32 %v4697_v40, %v1761_v39  ;;  %v1768_v53 = vand.u32 2147483647, %v4618_v17  ;;  %v1607_v35 = vsel %vm4708_vm5, %v1606_v28, %v1602_v13  ;;  %vm1629_vm15 = vweird.f32 %v4605_v15 }
 0x25d   : > { %3043 = vmatmul.msk.f32.gmra.mxu1 %vm2179_vm3, %v1548_v58  ;;  %v4726_v51 = vpop.eup %3158  ;;  %v1367_v42 = vmul.f32 1.442695, %v1298_v10  ;;  %v1655_v8 = vmul.f32 %v4713_v20, %v4672_v1  ;;  %vm4778_vm0 = vcmp.eq.f32.partialorder %v1633_v48, 8.507059e+37  ;;  %vm4789_vm1 = vmor %vm1629_vm15, %vm1630_vm13  ;;  %v1636_v6 = vor.u32 1.1754944e-38, %v1635_v37 }
 0x25e   : > { %v4734_v21 = vpop.eup %3160  ;;  %v1157_v59 = vpop.f32.mrf.mxu2  ;;  %v1763_v60 = vadd.f32 %v4697_v40, %v1762_v61  ;;  %v1663_v14 = vand.u32 2147483647, %v4672_v1  ;;  %v1771_v62 = vor.u32 1.1754944e-38, %v1770_v63  ;;  %v1608_v26 = vmul.f32 %v4549_v32, %v1607_v35 }
 0x25f   : > { %3164 = vpow2.f32 %v1367_v42  ;;  %v1790_v9 = vmul.f32 %v4734_v21, %v4674_v7  ;;  %v1309_v56 = vsub.f32 %v1157_v59, %v1157_v59  ;;  %v4762_v27 = vpop.eup %3162  ;;  %v1656_v47 = vsub.f32 1.0, %v1655_v8 }
 0x260   : > { %3166 = vrcp.f32 %v4726_v51  ;;  %v1767_v3 = vsel %vm4771_vm14, %v4697_v40, %v1763_v60  ;;  %v1632_v30 = vsel %vm4789_vm1, %v4666_v49, %v1628_v4  ;;  %vm1769_vm2 = vcmp.eq.f32.partialorder %v1768_v53, 8.507059e+37 }
 0x261   : > { %3168 = vpow2.f32 %v1385_v11  ;;  %v1791_v46 = vsub.f32 1.0, %v1790_v9  ;;  %v1389_v50 = vmul.f32 1.442695, %v1309_v56  ;;  %v1657_v43 = vmul.f32 %v4713_v20, %v1656_v47 }
 0x262   : > { %v1234_v12 = vpop.f32.mrf.mxu3  ;;  %2305 = vmatmul.f32.gmra.mxu0 %v1743_v24  ;;  %v1772_v0 = vsel %vm1769_vm2, %v1771_v62, %v1767_v3  ;;  %vm1795_vm4 = vweird.f32 %v4734_v21  ;;  %v1665_v49 = vand.u32 2147483648, %v4672_v1  ;;  %v1800_v10 = vand.u32 2147483648, %v4674_v7 }
 0x263   : > { %v1300_v54 = vsub.f32 %v1234_v12, %v1234_v12  ;;  %v1792_v44 = vmul.f32 %v4734_v21, %v1791_v46  ;;  %v1773_v29 = vmul.f32 %v4618_v17, %v1772_v0  ;;  %vm1794_vm5 = vweird.f32 %v4674_v7  ;;  %v2469_v0 = vld [vmem:[%s5737_s5 + $0xd0] sm:$0xff] }
 0x264   : > { %v1798_v2 = vand.u32 2147483647, %v4674_v7  ;;  %v1637_v17 = vsel %vm4778_vm0, %v1636_v6, %v1632_v30  ;;  %v1658_v28 = vadd.f32 %v4713_v20, %v1657_v43  ;;  %vm1660_vm6 = vweird.f32 %v4713_v20  ;;  %vm4823_vm7 = vmor %vm1794_vm5, %vm1795_vm4 }
 0x265   : > { %3044 = vmatmul.msk.f32.gmra.mxu1 %vm2179_vm3, %v1578_v34  ;;  %v4775_v31 = vpop.eup %3164  ;;  %v1371_v25 = vmul.f32 1.442695, %v1300_v54  ;;  %v1793_v23 = vadd.f32 %v4734_v21, %v1792_v44  ;;  %vm1659_vm9 = vweird.f32 %v4672_v1  ;;  %vm4835_vm10 = vcmp.eq.f32.partialorder %v1663_v14, 8.507059e+37 }
 0x266   : > { %v4785_v41 = vpop.eup %3166  ;;  %3170 = vrcp.f32 %v4775_v31  ;;  %v4799_v40 = vpop.f32.mrf.mxu2  ;;  %v1666_v38 = vor.u32 1.1754944e-38, %v1665_v49  ;;  %v1801_v11 = vor.u32 1.1754944e-38, %v1800_v10  ;;  %v1638_v37 = vmul.f32 %v4605_v15, %v1637_v17  ;;  %vm4842_vm11 = vmor %vm1659_vm9, %vm1660_vm6 }
 0x267   : > { %v4801_v57 = vpop.eup %3168  ;;  %3172 = vpow2.f32 %v1371_v25  ;;  %v1685_v32 = vmul.f32 %v4785_v41, %v4726_v51  ;;  %v1797_v48 = vsel %vm4823_vm7, %v4734_v21, %v1793_v23  ;;  %vm1689_vm12 = vweird.f32 %v4726_v51 }
 0x268   : > { %3174 = vrcp.f32 %v4762_v27  ;;  %v1693_v21 = vand.u32 2147483647, %v4726_v51  ;;  %vm1799_vm13 = vcmp.eq.f32.partialorder %v1798_v2, 8.507059e+37  ;;  %v1662_v55 = vsel %vm4842_vm11, %v4713_v20, %v1658_v28 }
 0x269   : > { %3176 = vpow2.f32 %v1389_v50  ;;  %v1686_v42 = vsub.f32 1.0, %v1685_v32  ;;  %v1802_v61 = vsel %vm1799_vm13, %v1801_v11, %v1797_v48  ;;  %v1311_v15 = vsub.f32 %v4799_v40, %v4799_v40 }
 0x26a   : > { %v1237_v16 = vpop.f32.mrf.mxu3  ;;  %2308 = vmatmul.f32.gmra.mxu0 %v1773_v29  ;;  %3178 = vrcp.f32 %v4801_v57  ;;  %v1803_v60 = vmul.f32 %v4674_v7, %v1802_v61  ;;  %v1695_v20 = vand.u32 2147483648, %v4726_v51  ;;  %v1828_v4 = vand.u32 2147483647, %v4762_v27 }
 0x26b   : > { %v1302_v45 = vsub.f32 %v1237_v16, %v1237_v16  ;;  %v1687_v9 = vmul.f32 %v4785_v41, %v1686_v42  ;;  %v1667_v53 = vsel %vm4835_vm10, %v1666_v38, %v1662_v55  ;;  %vm1690_vm14 = vweird.f32 %v4785_v41 }
 0x26c   : > { %v4827_v39 = vpop.eup %3170  ;;  %vm4872_vm15 = vcmp.eq.f32.partialorder %v1693_v21, 8.507059e+37  ;;  %v1393_v5 = vmul.f32 1.442695, %v1311_v15  ;;  %v1830_v14 = vand.u32 2147483648, %v4762_v27  ;;  %v1696_v62 = vor.u32 1.1754944e-38, %v1695_v20  ;;  %vm4895_vm2 = vmor %vm1689_vm12, %vm1690_vm14 }
 0x26d   : > { %3045 = vmatmul.msk.f32.gmra.mxu1 %vm2179_vm3, %v1608_v26  ;;  %v1375_v22 = vmul.f32 1.442695, %v1302_v45  ;;  %v4832_v18 = vpop.eup %3172  ;;  %v1715_v12 = vmul.f32 %v4827_v39, %v4775_v31  ;;  %v1688_v3 = vadd.f32 %v4785_v41, %v1687_v9  ;;  %vm1824_vm0 = vweird.f32 %v4762_v27 }
 0x26e   : > { %v4839_v33 = vpop.eup %3174  ;;  %v1163_v36 = vpop.f32.mrf.mxu2  ;;  %v1668_v26 = vmul.f32 %v4672_v1, %v1667_v53  ;;  %v1723_v30 = vand.u32 2147483647, %v4775_v31  ;;  %v1725_v44 = vand.u32 2147483648, %v4775_v31  ;;  %vm1829_vm4 = vcmp.eq.f32.partialorder %v1828_v4, 8.507059e+37 }
 0x26f   : > { %3180 = vpow2.f32 %v1375_v22  ;;  %v4848_v8 = vpop.eup %3176  ;;  %v1820_v13 = vmul.f32 %v4839_v33, %v4762_v27  ;;  %v1313_v47 = vsub.f32 %v1163_v36, %v1163_v36  ;;  %v1716_v6 = vsub.f32 1.0, %v1715_v12 }
 0x270   : > { %v4857_v24 = vpop.eup %3178  ;;  %3182 = vrcp.f32 %v4832_v18  ;;  %vm1825_vm1 = vweird.f32 %v4839_v33  ;;  %v1692_v29 = vsel %vm4895_vm2, %v4785_v41, %v1688_v3  ;;  %v1831_v16 = vor.u32 1.1754944e-38, %v1830_v14  ;;  %v2474_v3 = vld [vmem:[%s5737_s5 + $0xf8] sm:$0xff] }
 0x271   : > { %v1821_v56 = vsub.f32 1.0, %v1820_v13  ;;  %v1850_v54 = vmul.f32 %v4857_v24, %v4801_v57  ;;  %3184 = vrcp.f32 %v4848_v8  ;;  %v1397_v40 = vmul.f32 1.442695, %v1313_v47  ;;  %vm1826_vm5 = vmor %vm1824_vm0, %vm1825_vm1  ;;  %2567 = vmatpush.msra.mxu3 %v2474_v3 }
 0x272   : > { %v1240_v63 = vpop.f32.mrf.mxu3  ;;  %2311 = vmatmul.f32.gmra.mxu0 %v1803_v60  ;;  %v1717_v49 = vmul.f32 %v4827_v39, %v1716_v6  ;;  %vm1855_vm6 = vweird.f32 %v4857_v24  ;;  %v1860_v52 = vand.u32 2147483648, %v4801_v57  ;;  %vm1854_vm7 = vweird.f32 %v4801_v57 }
 0x273   : > { %v1304_v35 = vsub.f32 %v1240_v63, %v1240_v63  ;;  %v1822_v46 = vmul.f32 %v4839_v33, %v1821_v56  ;;  %v1851_v58 = vsub.f32 1.0, %v1850_v54  ;;  %v1858_v48 = vand.u32 2147483647, %v4801_v57  ;;  %vm4933_vm10 = vmor %vm1854_vm7, %vm1855_vm6 }
 0x274   : > { %v1697_v11 = vsel %vm4872_vm15, %v1696_v62, %v1692_v29  ;;  %vm1720_vm9 = vweird.f32 %v4827_v39  ;;  %vm1719_vm11 = vweird.f32 %v4775_v31  ;;  %v1861_v61 = vor.u32 1.1754944e-38, %v1860_v52 }
 0x275   : > { %3046 = vmatmul.msk.f32.gmra.mxu1 %vm2179_vm3, %v1638_v37  ;;  %v4878_v25 = vpop.eup %3180  ;;  %v1379_v19 = vmul.f32 1.442695, %v1304_v35  ;;  %v1823_v32 = vadd.f32 %v4839_v33, %v1822_v46  ;;  %v1852_v1 = vmul.f32 %v4857_v24, %v1851_v58  ;;  %vm4949_vm12 = vcmp.eq.f32.partialorder %v1723_v30, 8.507059e+37  ;;  %vm4958_vm14 = vmor %vm1719_vm11, %vm1720_vm9  ;;  %v2472_v30 = vld [vmem:[%s5737_s5 + $0xe8] sm:$0xff] }
 0x276   : > { %3186 = vrcp.f32 %v4878_v25  ;;  %v4885_v50 = vpop.eup %3182  ;;  %v4889_v43 = vpop.f32.mrf.mxu2  ;;  %v1726_v9 = vor.u32 1.1754944e-38, %v1725_v44  ;;  %vm1859_vm13 = vcmp.eq.f32.partialorder %v1858_v48, 8.507059e+37  ;;  %v1753_v63 = vand.u32 2147483647, %v4832_v18  ;;  %v2470_v44 = vld [vmem:[%s5737_s5 + $0xd8] sm:$0xff]  ;;  %2568 = vmatpush.msra.mxu3 %v2472_v30  ;;  %v2460_v30 = vld [vmem:[%s5737_s5 + $0x88] sm:$0xff] }
 0x277   : > { %3188 = vpow2.f32 %v1379_v19  ;;  %v4910_v23 = vpop.eup %3184  ;;  %v1745_v45 = vmul.f32 %v4885_v50, %v4832_v18  ;;  %v1827_v2 = vsel %vm1826_vm5, %v4839_v33, %v1823_v32  ;;  %v1853_v17 = vadd.f32 %v4857_v24, %v1852_v1  ;;  %v2471_v19 = vld [vmem:[%s5737_s5 + $0xe0] sm:$0xff] }
 0x278   : > { %3190 = vpow2.f32 %v1393_v5  ;;  %v1832_v28 = vsel %vm1829_vm4, %v1831_v16, %v1827_v2  ;;  %v1880_v34 = vmul.f32 %v4910_v23, %v4848_v8  ;;  %v1315_v4 = vsub.f32 %v4889_v43, %v4889_v43  ;;  %2569 = vmatpush.msra.mxu3 %v2470_v44 }
 0x279   : > { %3192 = vpow2.f32 %v1397_v40  ;;  %v1833_v42 = vmul.f32 %v4762_v27, %v1832_v28  ;;  %v1718_v27 = vadd.f32 %v4827_v39, %v1717_v49  ;;  %v1746_v59 = vsub.f32 1.0, %v1745_v45 }
 0x27a   : > { %v1243_v10 = vpop.f32.mrf.mxu3  ;;  %v1857_v21 = vsel %vm4933_vm10, %v4857_v24, %v1853_v17  ;;  %v1881_v12 = vsub.f32 1.0, %v1880_v34  ;;  %v1698_v24 = vmul.f32 %v4726_v51, %v1697_v11  ;;  %v1888_v5 = vand.u32 2147483647, %v4848_v8  ;;  %v2467_v17 = vld [vmem:[%s5737_s5 + $0xc0] sm:$0xff] }
 0x27b   : > { %v1306_v41 = vsub.f32 %v1243_v10, %v1243_v10  ;;  %2314 = vmatmul.f32.gmra.mxu0 %v1833_v42  ;;  %v1862_v56 = vsel %vm1859_vm13, %v1861_v61, %v1857_v21  ;;  %v1722_v54 = vsel %vm4958_vm14, %v4827_v39, %v1718_v27  ;;  %v1747_v53 = vmul.f32 %v4885_v50, %v1746_v59  ;;  %v2473_v39 = vld [vmem:[%s5737_s5 + $0xf0] sm:$0xff] }
 0x27c   : > { %v4918_v22 = vpop.eup %3186  ;;  %v1882_v51 = vmul.f32 %v4910_v23, %v1881_v12  ;;  %v1890_v46 = vand.u32 2147483648, %v4848_v8  ;;  %v1863_v6 = vmul.f32 %v4801_v57, %v1862_v56  ;;  %vm1885_vm15 = vweird.f32 %v4910_v23  ;;  %2475 = vmatpush.msra.mxu2 %v2473_v39  ;;  %v2463_v12 = vld [vmem:[%s5737_s5 + $0xa0] sm:$0xff]  ;;  %v2452_v56 = vld [vmem:[%s5737_s5 + $0x48] sm:$0xff] }
 0x27d   : > { %3047 = vmatmul.msk.f32.gmra.mxu1 %vm2179_vm3, %v1668_v26  ;;  %v4926_v38 = vpop.eup %3188  ;;  %v1383_v33 = vmul.f32 1.442695, %v1306_v41  ;;  %v1775_v55 = vmul.f32 %v4918_v22, %v4878_v25  ;;  %vm1749_vm0 = vweird.f32 %v4832_v18  ;;  %v1401_v40 = vmul.f32 1.442695, %v1315_v4  ;;  %v2468_v41 = vld [vmem:[%s5737_s5 + $0xc8] sm:$0xff] }
 0x27e   : > { %3194 = vrcp.f32 %v4926_v38  ;;  %v4942_v36 = vpop.eup %3190  ;;  %v4947_v15 = vpop.f32.mrf.mxu2  ;;  %v1883_v14 = vadd.f32 %v4910_v23, %v1882_v51  ;;  %vm1884_vm1 = vweird.f32 %v4848_v8  ;;  %v1727_v57 = vsel %vm4949_vm12, %v1726_v9, %v1722_v54  ;;  %2476 = vmatpush.msra.mxu2 %v2471_v19  ;;  %2570 = vmatpush.msra.mxu3 %v2468_v41  ;;  %v2466_v9 = vld [vmem:[%s5737_s5 + $0xb8] sm:$0xff] }
 0x27f   : > { %3196 = vpow2.f32 %v1383_v33  ;;  %v4953_v60 = vpop.eup %3192  ;;  %v1776_v7 = vsub.f32 1.0, %v1775_v55  ;;  %v1748_v43 = vadd.f32 %v4885_v50, %v1747_v53  ;;  %vm1750_vm2 = vweird.f32 %v4885_v50  ;;  %vm5012_vm4 = vmor %vm1884_vm1, %vm1885_vm15 }
 0x280   : > { %3198 = vrcp.f32 %v4942_v36  ;;  %v1891_v49 = vor.u32 1.1754944e-38, %v1890_v46  ;;  %vm5020_vm5 = vcmp.eq.f32.partialorder %v1753_v63, 8.507059e+37  ;;  %v1755_v2 = vand.u32 2147483648, %v4832_v18  ;;  %vm5038_vm7 = vmor %vm1749_vm0, %vm1750_vm2  ;;  %2477 = vmatpush.msra.mxu2 %v2469_v0  ;;  %2571 = vmatpush.msra.mxu3 %v2466_v9 }
 0x281   : > { %3200 = vrcp.f32 %v4953_v60  ;;  %v1777_v32 = vmul.f32 %v4918_v22, %v1776_v7  ;;  %v1887_v28 = vsel %vm5012_vm4, %v4910_v23, %v1883_v14  ;;  %vm1889_vm6 = vcmp.eq.f32.partialorder %v1888_v5, 8.507059e+37  ;;  %v2461_v7 = vld [vmem:[%s5737_s5 + $0x90] sm:$0xff]  ;;  %v2462_v5 = vld [vmem:[%s5737_s5 + $0x98] sm:$0xff] }
 0x282   : > { %v1246_v35 = vpop.f32.mrf.mxu3  ;;  %v1783_v42 = vand.u32 2147483647, %v4878_v25  ;;  %v1892_v48 = vsel %vm1889_vm6, %v1891_v49, %v1887_v28  ;;  %v1728_v23 = vmul.f32 %v4775_v31, %v1727_v57  ;;  %v1752_v33 = vsel %vm5038_vm7, %v4885_v50, %v1748_v43  ;;  %2478 = vmatpush.msra.mxu2 %v2467_v17  ;;  %v2465_v50 = vld [vmem:[%s5737_s5 + $0xb0] sm:$0xff] }
 0x283   : > { %v1308_v47 = vsub.f32 %v1246_v35, %v1246_v35  ;;  %2317 = vmatmul.f32.gmra.mxu0 %v1863_v6  ;;  %vm1780_vm9 = vweird.f32 %v4918_v22  ;;  %v1785_v37 = vand.u32 2147483648, %v4878_v25  ;;  %v1778_v59 = vadd.f32 %v4918_v22, %v1777_v32 }
 0x284   : > { %v4973_v58 = vpop.eup %3194  ;;  %v1317_v61 = vsub.f32 %v4947_v15, %v4947_v15  ;;  %v1756_v31 = vor.u32 1.1754944e-38, %v1755_v2  ;;  %vm1779_vm10 = vweird.f32 %v4878_v25  ;;  %vm5074_vm11 = vcmp.eq.f32.partialorder %v1783_v42, 8.507059e+37  ;;  %2479 = vmatpush.msra.mxu2 %v2465_v50  ;;  %v2457_v42 = vld [vmem:[%s5737_s5 + $0x70] sm:$0xff]  ;;  %v2454_v50 = vld [vmem:[%s5737_s5 + $0x58] sm:$0xff] }
 0x285   : > { %3048 = vmatmul.msk.f32.gmra.mxu1 %vm2179_vm3, %v1698_v24  ;;  %v4989_v62 = vpop.eup %3196  ;;  %v1387_v26 = vmul.f32 1.442695, %v1308_v47  ;;  %v1805_v1 = vmul.f32 %v4973_v58, %v4926_v38  ;;  %v1893_v24 = vmul.f32 %v4848_v8, %v1892_v48  ;;  %v1815_v54 = vand.u32 2147483648, %v4926_v38  ;;  %v2464_v8 = vld [vmem:[%s5737_s5 + $0xa8] sm:$0xff]  ;;  %vm5086_vm12 = vmor %vm1779_vm10, %vm1780_vm9  ;;  %v2458_v48 = vld [vmem:[%s5737_s5 + $0x78] sm:$0xff] }
 0x286   : > { %3202 = vrcp.f32 %v4989_v62  ;;  %v5016_v16 = vpop.f32.mrf.mxu2  ;;  %v5018_v10 = vpop.eup %3198  ;;  %v1757_v53 = vsel %vm5020_vm5, %v1756_v31, %v1752_v33  ;;  %v1786_v51 = vor.u32 1.1754944e-38, %v1785_v37  ;;  %v1813_v47 = vand.u32 2147483647, %v4926_v38  ;;  %2480 = vmatpush.msra.mxu2 %v2463_v12  ;;  %2572 = vmatpush.msra.mxu3 %v2464_v8  ;;  %v2453_v31 = vld [vmem:[%s5737_s5 + $0x50] sm:$0xff] }
 0x287   : > { %3204 = vpow2.f32 %v1387_v26  ;;  %v1910_v34 = vmul.f32 %v5018_v10, %v4942_v36  ;;  %v5045_v11 = vpop.eup %3200  ;;  %v1806_v55 = vsub.f32 1.0, %v1805_v1  ;;  %v1782_v39 = vsel %vm5086_vm12, %v4918_v22, %v1778_v59  ;;  %v2459_v26 = vld [vmem:[%s5737_s5 + $0x80] sm:$0xff]  ;;  %v2456_v59 = vld [vmem:[%s5737_s5 + $0x68] sm:$0xff] }
 0x288   : > { %3206 = vpow2.f32 %v1401_v40  ;;  %v1940_v20 = vmul.f32 %v5045_v11, %v4953_v60  ;;  %v1405_v19 = vmul.f32 1.442695, %v1317_v61  ;;  %vm1915_vm13 = vweird.f32 %v5018_v10  ;;  %2481 = vmatpush.msra.mxu2 %v2461_v7  ;;  %2573 = vmatpush.msra.mxu3 %v2462_v5  ;;  %v5120_v0 = vpop.f32.mrf.mxu0 }
 0x289   : > { %v1911_v15 = vsub.f32 1.0, %v1910_v34  ;;  %v1807_v3 = vmul.f32 %v4973_v58, %v1806_v55  ;;  %v1758_v57 = vmul.f32 %v4832_v18, %v1757_v53  ;;  %vm1809_vm14 = vweird.f32 %v4926_v38 }
 0x28a   : > { %v1249_v27 = vpop.f32.mrf.mxu3  ;;  %v1941_v40 = vsub.f32 1.0, %v1940_v20  ;;  %v5118_v43 = vor.u32 1.1754944e-38, %v1815_v54  ;;  %vm1914_vm15 = vweird.f32 %v4942_v36  ;;  %vm5123_vm0 = vcmp.eq.f32.partialorder %v1813_v47, 8.507059e+37  ;;  %2482 = vmatpush.msra.mxu2 %v2459_v26  ;;  %2574 = vmatpush.msra.mxu3 %v2460_v30  ;;  %v2451_v20 = vld [vmem:[%s5737_s5 + $0x40] sm:$0xff] }
 0x28b   : > { %v1310_v21 = vsub.f32 %v1249_v27, %v1249_v27  ;;  %2320 = vmatmul.f32.gmra.mxu0 %v1893_v24  ;;  %v1912_v22 = vmul.f32 %v5018_v10, %v1911_v15  ;;  %v1918_v29 = vand.u32 2147483647, %v4942_v36  ;;  %v1920_v18 = vand.u32 2147483648, %v4942_v36  ;;  %vm5135_vm1 = vmor %vm1914_vm15, %vm1915_vm13 }
 0x28c   : > { %v5056_v13 = vpop.eup %3202  ;;  %v1787_v49 = vsel %vm5074_vm11, %v1786_v51, %v1782_v39  ;;  %v1319_v17 = vsub.f32 %v5016_v16, %v5016_v16  ;;  %v1808_v28 = vadd.f32 %v4973_v58, %v1807_v3  ;;  %vm1810_vm2 = vweird.f32 %v4973_v58  ;;  %v2455_v16 = vld [vmem:[%s5737_s5 + $0x60] sm:$0xff]  ;;  %2483 = vmatpush.msra.mxu2 %v2457_v42  ;;  %2575 = vmatpush.msra.mxu3 %v2458_v48 }
 0x28d   : > { %3049 = vmatmul.msk.f32.gmra.mxu1 %vm2179_vm3, %v1728_v23  ;;  %v5071_v63 = vpop.eup %3204  ;;  %v1391_v4 = vmul.f32 1.442695, %v1310_v21  ;;  %v1835_v14 = vmul.f32 %v5056_v13, %v4989_v62  ;;  %v1913_v1 = vadd.f32 %v5018_v10, %v1912_v22  ;;  %v1942_v34 = vmul.f32 %v5045_v11, %v1941_v40  ;;  %vm5181_vm5 = vmor %vm1809_vm14, %vm1810_vm2  ;;  %v2449_v40 = vld [vmem:[%s5737_s5 + $0x30] sm:$0xff] }
 0x28e   : > { %3208 = vrcp.f32 %v5071_v63  ;;  %v5098_v46 = vpop.eup %3206  ;;  %v5104_v6 = vpop.f32.mrf.mxu2  ;;  %v1843_v37 = vand.u32 2147483647, %v4989_v62  ;;  %v1845_v27 = vand.u32 2147483648, %v4989_v62  ;;  %v1788_v55 = vmul.f32 %v4878_v25, %v1787_v49  ;;  %2484 = vmatpush.msra.mxu2 %v2455_v16  ;;  %2576 = vmatpush.msra.mxu3 %v2456_v59 }
 0x28f   : > { %3210 = vpow2.f32 %v1391_v4  ;;  %v1836_v52 = vsub.f32 1.0, %v1835_v14  ;;  %v1917_v21 = vsel %vm5135_vm1, %v5018_v10, %v1913_v1  ;;  %vm1839_vm4 = vweird.f32 %v4989_v62 }
 0x290   : > { %3212 = vrcp.f32 %v5098_v46  ;;  %v1921_v9 = vor.u32 1.1754944e-38, %v1920_v18  ;;  %vm1919_vm6 = vcmp.eq.f32.partialorder %v1918_v29, 8.507059e+37  ;;  %v1409_v10 = vmul.f32 1.442695, %v1319_v17  ;;  %2485 = vmatpush.msra.mxu2 %v2453_v31  ;;  %2577 = vmatpush.msra.mxu3 %v2454_v50  ;;  %v5221_v26 = vpop.f32.mrf.mxu0  ;;  %v2448_v18 = vld [vmem:[%s5737_s5 + $0x28] sm:$0xff] }
 0x291   : > { %3214 = vpow2.f32 %v1405_v19  ;;  %vm1945_vm7 = vweird.f32 %v5045_v11  ;;  %v1812_v24 = vsel %vm5181_vm5, %v4973_v58, %v1808_v28  ;;  %v1837_v15 = vmul.f32 %v5056_v13, %v1836_v52 }
 0x292   : > { %v1252_v32 = vpop.f32.mrf.mxu3  ;;  %v1922_v4 = vsel %vm1919_vm6, %v1921_v9, %v1917_v21  ;;  %v1943_v54 = vadd.f32 %v5045_v11, %v1942_v34  ;;  %v5203_v35 = vor.u32 1.1754944e-38, %v1845_v27  ;;  %vm1944_vm9 = vweird.f32 %v4953_v60  ;;  %2486 = vmatpush.msra.mxu2 %v2451_v20  ;;  %2578 = vmatpush.msra.mxu3 %v2452_v56  ;;  %v2445_v21 = vld [vmem:[%s5737_s5 + $0x10] sm:$0xff] }
 0x293   : > { %v1312_v45 = vsub.f32 %v1252_v32, %v1252_v32  ;;  %v1950_v58 = vand.u32 2147483648, %v4953_v60  ;;  %v1321_v51 = vsub.f32 %v5104_v6, %v5104_v6  ;;  %vm5209_vm10 = vcmp.eq.f32.partialorder %v1843_v37, 8.507059e+37  ;;  %vm5227_vm12 = vmor %vm1944_vm9, %vm1945_vm7 }
 0x294   : > { %v5141_v41 = vpop.eup %3208  ;;  %v1923_v39 = vmul.f32 %v4942_v36, %v1922_v4  ;;  %v1948_v3 = vand.u32 2147483647, %v4953_v60  ;;  %v1817_v14 = vsel %vm5123_vm0, %v5118_v43, %v1812_v24  ;;  %vm1840_vm11 = vweird.f32 %v5056_v13  ;;  %v2447_v43 = vld [vmem:[%s5737_s5 + $0x20] sm:$0xff]  ;;  %2487 = vmatpush.msra.mxu2 %v2449_v40  ;;  %v2444_v24 = vld [vmem:[%s5737_s5 + $0x8] sm:$0xff] }
 0x295   : > { %3050 = vmatmul.msk.f32.gmra.mxu1 %vm2179_vm3, %v1758_v57  ;;  %v5156_v23 = vpop.eup %3210  ;;  %v1395_v33 = vmul.f32 1.442695, %v1312_v45  ;;  %v1865_v61 = vmul.f32 %v5141_v41, %v5071_v63  ;;  %v1838_v22 = vadd.f32 %v5056_v13, %v1837_v15  ;;  %v2450_v57 = vld [vmem:[%s5737_s5 + $0x38] sm:$0xff]  ;;  %v1947_v44 = vsel %vm5227_vm12, %v5045_v11, %v1943_v54  ;;  %vm5263_vm15 = vmor %vm1839_vm4, %vm1840_vm11 }
 0x296   : > { %3216 = vrcp.f32 %v5156_v23  ;;  %v5186_v12 = vpop.eup %3212  ;;  %v5199_v8 = vpop.f32.mrf.mxu2  ;;  %2323 = vmatmul.f32.gmra.mxu0 %v1923_v39  ;;  %vm1869_vm13 = vweird.f32 %v5071_v63  ;;  %2579 = vmatpush.msra.mxu3 %v2450_v57  ;;  %v1951_v49 = vor.u32 1.1754944e-38, %v1950_v58  ;;  %v1413_v45 = vmul.f32 1.442695, %v1321_v51 }
 0x297   : > { %3218 = vpow2.f32 %v1395_v33  ;;  %v5201_v53 = vpop.eup %3214  ;;  %v1866_v5 = vsub.f32 1.0, %v1865_v61  ;;  %v1970_v19 = vmul.f32 %v5186_v12, %v5098_v46  ;;  %vm1949_vm14 = vcmp.eq.f32.partialorder %v1948_v3, 8.507059e+37  ;;  %2488 = vmatpush.msra.mxu2 %v2447_v43  ;;  %v2443_v61 = vld [vmem:[%s5737_s5] sm:$0xff] }
 0x298   : > { %3220 = vpow2.f32 %v1409_v10  ;;  %v1818_v17 = vmul.f32 %v4926_v38, %v1817_v14  ;;  %v1873_v52 = vand.u32 2147483647, %v5071_v63  ;;  %2580 = vmatpush.msra.mxu3 %v2448_v18  ;;  %v1952_v42 = vsel %vm1949_vm14, %v1951_v49, %v1947_v44 }
 0x299   : > { %v1971_v32 = vsub.f32 1.0, %v1970_v19  ;;  %3222 = vrcp.f32 %v5201_v53  ;;  %v1867_v2 = vmul.f32 %v5141_v41, %v1866_v5  ;;  %v1842_v48 = vsel %vm5263_vm15, %v5056_v13, %v1838_v22  ;;  %2489 = vmatpush.msra.mxu2 %v2445_v21 }
 0x29a   : > { %v1255_v7 = vpop.f32.mrf.mxu3  ;;  %v1875_v38 = vand.u32 2147483648, %v5071_v63  ;;  %vm1974_vm0 = vweird.f32 %v5098_v46  ;;  %vm1870_vm1 = vweird.f32 %v5141_v41  ;;  %vm1975_vm2 = vweird.f32 %v5186_v12 }
 0x29b   : > { %v1314_v6 = vsub.f32 %v1255_v7, %v1255_v7  ;;  %v1972_v16 = vmul.f32 %v5186_v12, %v1971_v32  ;;  %v1980_v33 = vand.u32 2147483648, %v5098_v46  ;;  %v1868_v27 = vadd.f32 %v5141_v41, %v1867_v2  ;;  %vm5315_vm5 = vmor %vm1974_vm0, %vm1975_vm2  ;;  %2490 = vmatpush.msra.mxu2 %v2443_v61  ;;  %v5334_v7 = vpop.f32.mrf.mxu0 }
 0x29c   : > { %v5231_v30 = vpop.eup %3216  ;;  %v1953_v31 = vmul.f32 %v4953_v60, %v1952_v42  ;;  %v1847_v25 = vsel %vm5209_vm10, %v5203_v35, %v1842_v48  ;;  %v1978_v15 = vand.u32 2147483647, %v5098_v46  ;;  %v1323_v60 = vsub.f32 %v5199_v8, %v5199_v8  ;;  %vm5328_vm6 = vmor %vm1869_vm13, %vm1870_vm1 }
 0x29d   : > { %3051 = vmatmul.msk.f32.gmra.mxu1 %vm2179_vm3, %v1788_v55  ;;  %v5248_v1 = vpop.eup %3218  ;;  %v1399_v29 = vmul.f32 1.442695, %v1314_v6  ;;  %v1895_v11 = vmul.f32 %v5231_v30, %v5156_v23  ;;  %v2446_v55 = vld [vmem:[%s5737_s5 + $0x18] sm:$0xff]  ;;  %v1973_v50 = vadd.f32 %v5186_v12, %v1972_v16  ;;  %vm5307_vm4 = vcmp.eq.f32.partialorder %v1873_v52, 8.507059e+37 }
 0x29e   : > { %3224 = vrcp.f32 %v5248_v1  ;;  %v5274_v34 = vpop.eup %3220  ;;  %v5293_v9 = vpop.f32.mrf.mxu2  ;;  %2581 = vmatpush.msra.mxu3 %v2446_v55  ;;  %v1876_v4 = vor.u32 1.1754944e-38, %v1875_v38  ;;  %2326 = vmatmul.f32.gmra.mxu0 %v1953_v31  ;;  %vm1899_vm7 = vweird.f32 %v5156_v23  ;;  %v1903_v47 = vand.u32 2147483647, %v5156_v23 }
 0x29f   : > { %3226 = vpow2.f32 %v1399_v29  ;;  %v5279_v37 = vpop.eup %3222  ;;  %v1896_v59 = vsub.f32 1.0, %v1895_v11  ;;  %v1977_v5 = vsel %vm5315_vm5, %v5186_v12, %v1973_v50  ;;  %v1848_v39 = vmul.f32 %v4989_v62, %v1847_v25 }
 0x2a0   : > { %3228 = vpow2.f32 %v1413_v45  ;;  %v2000_v8 = vmul.f32 %v5279_v37, %v5201_v53  ;;  %2582 = vmatpush.msra.mxu3 %v2444_v24  ;;  %v1872_v3 = vsel %vm5328_vm6, %v5141_v41, %v1868_v27  ;;  %v1981_v14 = vor.u32 1.1754944e-38, %v1980_v33 }
 0x2a1   : > { %3230 = vrcp.f32 %v5274_v34  ;;  %v1897_v19 = vmul.f32 %v5231_v30, %v1896_v59  ;;  %vm1979_vm9 = vcmp.eq.f32.partialorder %v1978_v15, 8.507059e+37  ;;  %v1417_v22 = vmul.f32 1.442695, %v1323_v60 }
 0x2a2   : > { %v1258_v13 = vpop.f32.mrf.mxu3  ;;  %v1905_v40 = vand.u32 2147483648, %v5156_v23  ;;  %v1982_v62 = vsel %vm1979_vm9, %v1981_v14, %v1977_v5  ;;  %v2001_v12 = vsub.f32 1.0, %v2000_v8  ;;  %v1877_v41 = vsel %vm5307_vm4, %v1876_v4, %v1872_v3 }
 0x2a3   : > { %v1316_v10 = vsub.f32 %v1258_v13, %v1258_v13  ;;  %vm1900_vm10 = vweird.f32 %v5231_v30  ;;  %v2008_v57 = vand.u32 2147483647, %v5201_v53  ;;  %v1325_v43 = vsub.f32 %v5293_v9, %v5293_v9  ;;  %v5395_v61 = vpop.f32.mrf.mxu0 }
 0x2a4   : > { %v5304_v20 = vpop.eup %3224  ;;  %v1898_v32 = vadd.f32 %v5231_v30, %v1897_v19  ;;  %v1983_v18 = vmul.f32 %v5098_v46, %v1982_v62  ;;  %v2002_v49 = vmul.f32 %v5279_v37, %v2001_v12  ;;  %v2010_v11 = vand.u32 2147483648, %v5201_v53  ;;  %vm5379_vm13 = vmor %vm1899_vm7, %vm1900_vm10 }
 0x2a5   : > { %3052 = vmatmul.msk.f32.gmra.mxu1 %vm2179_vm3, %v1818_v17  ;;  %v5322_v35 = vpop.eup %3226  ;;  %v1403_v51 = vmul.f32 1.442695, %v1316_v10  ;;  %v1925_v36 = vmul.f32 %v5304_v20, %v5248_v1  ;;  %vm5364_vm11 = vcmp.eq.f32.partialorder %v1903_v47, 8.507059e+37  ;;  %vm2005_vm12 = vweird.f32 %v5279_v37 }
 0x2a6   : > { %v5344_v6 = vpop.eup %3228  ;;  %2329 = vmatmul.f32.gmra.mxu0 %v1983_v18  ;;  %v2003_v28 = vadd.f32 %v5279_v37, %v2002_v49  ;;  %v1184_v52 = vpop.f32.mrf.mxu2  ;;  %v1878_v48 = vmul.f32 %v5071_v63, %v1877_v41  ;;  %v1906_v16 = vor.u32 1.1754944e-38, %v1905_v40  ;;  %vm2004_vm14 = vweird.f32 %v5201_v53 }
 0x2a7   : > { %3232 = vpow2.f32 %v1403_v51  ;;  %v5356_v44 = vpop.eup %3230  ;;  %v1926_v2 = vsub.f32 1.0, %v1925_v36  ;;  %v1902_v13 = vsel %vm5379_vm13, %v5231_v30, %v1898_v32  ;;  %v1935_v63 = vand.u32 2147483648, %v5248_v1  ;;  %vm2006_vm0 = vmor %vm2004_vm14, %vm2005_vm12 }
 0x2a8   : > { %3234 = vrcp.f32 %v5322_v35  ;;  %v2030_v46 = vmul.f32 %v5356_v44, %v5274_v34  ;;  %vm5390_vm15 = vcmp.eq.f32.partialorder %v2008_v57, 8.507059e+37  ;;  %v1421_v21 = vmul.f32 1.442695, %v1325_v43 }
 0x2a9   : > { %3236 = vrcp.f32 %v5344_v6  ;;  %v1927_v55 = vmul.f32 %v5304_v20, %v1926_v2  ;;  %v2011_v31 = vor.u32 1.1754944e-38, %v2010_v11  ;;  %v1327_v50 = vsub.f32 %v1184_v52, %v1184_v52 }
 0x2aa   : > { %v1261_v29 = vpop.f32.mrf.mxu3  ;;  %3238 = vpow2.f32 %v1417_v22  ;;  %vm1930_vm1 = vweird.f32 %v5304_v20  ;;  %v2007_v30 = vsel %vm2006_vm0, %v5279_v37, %v2003_v28  ;;  %v2031_v25 = vsub.f32 1.0, %v2030_v46 }
 0x2ab   : > { %v1318_v45 = vsub.f32 %v1261_v29, %v1261_v29  ;;  %v1907_v24 = vsel %vm5364_vm11, %v1906_v16, %v1902_v13  ;;  %v2012_v60 = vsel %vm5390_vm15, %v2011_v31, %v2007_v30  ;;  %v2038_v8 = vand.u32 2147483647, %v5274_v34  ;;  %v5448_v49 = vpop.f32.mrf.mxu0 }
 0x2ac   : > { %v2013_v54 = vmul.f32 %v5201_v53, %v2012_v60  ;;  %v2032_v37 = vmul.f32 %v5356_v44, %v2031_v25  ;;  %v1928_v58 = vadd.f32 %v5304_v20, %v1927_v55  ;;  %v2040_v47 = vand.u32 2147483648, %v5274_v34 }
 0x2ad   : > { %3053 = vmatmul.msk.f32.gmra.mxu1 %vm2179_vm3, %v1848_v39  ;;  %v5372_v42 = vpop.eup %3232  ;;  %v1407_v33 = vmul.f32 1.442695, %v1318_v45  ;;  %v1425_v5 = vmul.f32 1.442695, %v1327_v50  ;;  %vm2035_vm2 = vweird.f32 %v5356_v44  ;;  %vm1929_vm4 = vweird.f32 %v5248_v1 }
 0x2ae   : > { %v5384_v27 = vpop.eup %3234  ;;  %2332 = vmatmul.f32.gmra.mxu0 %v2013_v54  ;;  %v2033_v39 = vadd.f32 %v5356_v44, %v2032_v37  ;;  %vm5430_vm5 = vmor %vm1929_vm4, %vm1930_vm1  ;;  %v1933_v22 = vand.u32 2147483647, %v5248_v1  ;;  %v1936_v40 = vor.u32 1.1754944e-38, %v1935_v63  ;;  %vm2034_vm6 = vweird.f32 %v5274_v34 }
 0x2af   : > { %3240 = vpow2.f32 %v1407_v33  ;;  %v5399_v9 = vpop.eup %3236  ;;  %v1955_v15 = vmul.f32 %v5384_v27, %v5322_v35  ;;  %v1908_v12 = vmul.f32 %v5156_v23, %v1907_v24  ;;  %vm2036_vm7 = vmor %vm2034_vm6, %vm2035_vm2  ;;  %vm2039_vm9 = vcmp.eq.f32.partialorder %v2038_v8, 8.507059e+37 }
 0x2b0   : > { %3242 = vrcp.f32 %v5372_v42  ;;  %v5404_v10 = vpop.eup %3238  ;;  %v2060_v56 = vmul.f32 %v5399_v9, %v5344_v6  ;;  %v2041_v41 = vor.u32 1.1754944e-38, %v2040_v47  ;;  %v1932_v43 = vsel %vm5430_vm5, %v5304_v20, %v1928_v58 }
 0x2b1   : > { %3244 = vpow2.f32 %v1421_v21  ;;  %v1956_v19 = vsub.f32 1.0, %v1955_v15  ;;  %v2037_v32 = vsel %vm2036_vm7, %v5356_v44, %v2033_v39  ;;  %vm2065_vm10 = vweird.f32 %v5399_v9 }
 0x2b2   : > { %v1264_v4 = vpop.f32.mrf.mxu3  ;;  %v2061_v3 = vsub.f32 1.0, %v2060_v56  ;;  %3246 = vrcp.f32 %v5404_v10  ;;  %v2042_v45 = vsel %vm2039_vm9, %v2041_v41, %v2037_v32  ;;  %v2070_v17 = vand.u32 2147483648, %v5344_v6 }
 0x2b3   : > { %v1320_v51 = vsub.f32 %v1264_v4, %v1264_v4  ;;  %3248 = vpow2.f32 %v1425_v5  ;;  %v1957_v18 = vmul.f32 %v5384_v27, %v1956_v19  ;;  %v2043_v11 = vmul.f32 %v5274_v34, %v2042_v45  ;;  %v5504_v39 = vpop.f32.mrf.mxu0 }
 0x2b4   : > { %v2062_v29 = vmul.f32 %v5399_v9, %v2061_v3  ;;  %v1963_v28 = vand.u32 2147483647, %v5322_v35  ;;  %vm2064_vm11 = vweird.f32 %v5344_v6  ;;  %v2068_v52 = vand.u32 2147483647, %v5344_v6 }
 0x2b5   : > { %3054 = vmatmul.msk.f32.gmra.mxu1 %vm2179_vm3, %v1878_v48  ;;  %v5423_v53 = vpop.eup %3240  ;;  %v1411_v62 = vmul.f32 1.442695, %v1320_v51  ;;  %vm1934_vm12 = vcmp.eq.f32.partialorder %v1933_v22, 8.507059e+37  ;;  %v1965_v48 = vand.u32 2147483648, %v5322_v35  ;;  %vm5463_vm13 = vmor %vm2064_vm11, %vm2065_vm10  ;;  %v1958_v55 = vadd.f32 %v5384_v27, %v1957_v18 }
 0x2b6   : > { %v5426_v14 = vpop.eup %3242  ;;  %3250 = vrcp.f32 %v5423_v53  ;;  %v2063_v44 = vadd.f32 %v5399_v9, %v2062_v29  ;;  %2335 = vmatmul.f32.gmra.mxu0 %v2043_v11  ;;  %v1937_v33 = vsel %vm1934_vm12, %v1936_v40, %v1932_v43  ;;  %vm1960_vm14 = vweird.f32 %v5384_v27 }
 0x2b7   : > { %v5437_v57 = vpop.eup %3244  ;;  %v1985_v23 = vmul.f32 %v5426_v14, %v5372_v42  ;;  %3252 = vpow2.f32 %v1411_v62  ;;  %v2071_v31 = vor.u32 1.1754944e-38, %v2070_v17  ;;  %vm1959_vm15 = vweird.f32 %v5322_v35 }
 0x2b8   : > { %v5451_v2 = vpop.eup %3246  ;;  %3254 = vrcp.f32 %v5437_v57  ;;  %v2067_v59 = vsel %vm5463_vm13, %v5399_v9, %v2063_v44  ;;  %vm5480_vm0 = vcmp.eq.f32.partialorder %v1963_v28, 8.507059e+37  ;;  %vm2069_vm1 = vcmp.eq.f32.partialorder %v2068_v52, 8.507059e+37  ;;  %vm5487_vm2 = vmor %vm1959_vm15, %vm1960_vm14 }
 0x2b9   : > { %v2090_v38 = vmul.f32 %v5451_v2, %v5404_v10  ;;  %v5470_v16 = vpop.eup %3248  ;;  %v1986_v63 = vsub.f32 1.0, %v1985_v23  ;;  %v1938_v25 = vmul.f32 %v5248_v1, %v1937_v33  ;;  %v1966_v24 = vor.u32 1.1754944e-38, %v1965_v48 }
 0x2ba   : > { %v1267_v20 = vpop.f32.mrf.mxu3  ;;  %v2072_v9 = vsel %vm2069_vm1, %v2071_v31, %v2067_v59  ;;  %v1995_v54 = vand.u32 2147483648, %v5372_v42  ;;  %v1962_v58 = vsel %vm5487_vm2, %v5384_v27, %v1958_v55  ;;  %v2100_v19 = vand.u32 2147483648, %v5404_v10 }
 0x2bb   : > { %v1322_v46 = vsub.f32 %v1267_v20, %v1267_v20  ;;  %v2091_v15 = vsub.f32 1.0, %v2090_v38  ;;  %v1987_v4 = vmul.f32 %v5426_v14, %v1986_v63  ;;  %v2073_v3 = vmul.f32 %v5344_v6, %v2072_v9  ;;  %v5553_v59 = vpop.f32.mrf.mxu0 }
 0x2bc   : > { %v5475_v21 = vpop.eup %3250  ;;  %vm2095_vm4 = vweird.f32 %v5451_v2  ;;  %v2098_v27 = vand.u32 2147483647, %v5404_v10  ;;  %v1967_v22 = vsel %vm5480_vm0, %v1966_v24, %v1962_v58  ;;  %vm1990_vm5 = vweird.f32 %v5426_v14 }
 0x2bd   : > { %3055 = vmatmul.msk.f32.gmra.mxu1 %vm2179_vm3, %v1908_v12  ;;  %v1415_v13 = vmul.f32 1.442695, %v1322_v46  ;;  %v5484_v30 = vpop.eup %3252  ;;  %v2015_v37 = vmul.f32 %v5475_v21, %v5423_v53  ;;  %v2092_v47 = vmul.f32 %v5451_v2, %v2091_v15  ;;  %v1988_v6 = vadd.f32 %v5426_v14, %v1987_v4 }
 0x2be   : > { %v5495_v8 = vpop.eup %3254  ;;  %2338 = vmatmul.f32.gmra.mxu0 %v2073_v3  ;;  %vm2094_vm6 = vweird.f32 %v5404_v10  ;;  %vm1989_vm7 = vweird.f32 %v5372_v42  ;;  %v1993_v41 = vand.u32 2147483647, %v5372_v42  ;;  %v1996_v43 = vor.u32 1.1754944e-38, %v1995_v54 }
 0x2bf   : > { %3256 = vpow2.f32 %v1415_v13  ;;  %v2120_v36 = vmul.f32 %v5495_v8, %v5437_v57  ;;  %v2016_v40 = vsub.f32 1.0, %v2015_v37  ;;  %vm2096_vm9 = vmor %vm2094_vm6, %vm2095_vm4  ;;  %v2101_v32 = vor.u32 1.1754944e-38, %v2100_v19 }
 0x2c0   : > { %3258 = vrcp.f32 %v5470_v16  ;;  %v1968_v18 = vmul.f32 %v5322_v35, %v1967_v22  ;;  %vm5528_vm10 = vmor %vm1989_vm7, %vm1990_vm5  ;;  %vm2099_vm11 = vcmp.eq.f32.partialorder %v2098_v27, 8.507059e+37  ;;  %v2128_v34 = vand.u32 2147483647, %v5437_v57 }
 0x2c1   : > { %3260 = vrcp.f32 %v5484_v30  ;;  %v2121_v20 = vsub.f32 1.0, %v2120_v36  ;;  %v1992_v17 = vsel %vm5528_vm10, %v5426_v14, %v1988_v6  ;;  %v2017_v28 = vmul.f32 %v5475_v21, %v2016_v40 }
 0x2c2   : > { %v2368_v60 = vpop.f32.mrf.mxu1  ;;  %v1270_v51 = vpop.f32.mrf.mxu3  ;;  %v2130_v14 = vand.u32 2147483648, %v5437_v57  ;;  %vm2125_vm12 = vweird.f32 %v5495_v8  ;;  %vm1994_vm13 = vcmp.eq.f32.partialorder %v1993_v41, 8.507059e+37  ;;  %vm2019_vm14 = vweird.f32 %v5423_v53 }
 0x2c3   : > { %v2369_v1 = vadd.f32 %v2368_v60, %v5120_v0  ;;  %v1324_v5 = vsub.f32 %v1270_v51, %v1270_v51  ;;  %v2093_v0 = vadd.f32 %v5451_v2, %v2092_v47  ;;  %v2023_v55 = vand.u32 2147483647, %v5423_v53 }
 0x2c4   : > { %vm2124_vm15 = vweird.f32 %v5437_v57  ;;  %v2018_v50 = vadd.f32 %v5475_v21, %v2017_v28  ;;  %vm2020_vm0 = vweird.f32 %v5475_v21  ;;  %v2131_v24 = vor.u32 1.1754944e-38, %v2130_v14 }
 0x2c5   : > { %3056 = vmatmul.msk.f32.gmra.mxu1 %vm2179_vm3, %v1938_v25  ;;  %2491 = vmatmul.f32.vlgmr.msra.gmra.mxu2 %v2369_v1  ;;  %v1419_v62 = vmul.f32 1.442695, %v1324_v5  ;;  %v5519_v12 = vpop.eup %3256  ;;  %v2097_v45 = vsel %vm2096_vm9, %v5451_v2, %v2093_v0  ;;  %v2122_v2 = vmul.f32 %v5495_v8, %v2121_v20  ;;  %v2025_v25 = vand.u32 2147483648, %v5423_v53  ;;  %vm2126_vm1 = vmor %vm2124_vm15, %vm2125_vm12 }
 0x2c6   : > { %2583 = vmatmul.f32.vlgmr.msra.gmra.mxu3 %v2369_v1  ;;  %v5525_v29 = vpop.eup %3258  ;;  %v2102_v46 = vsel %vm2099_vm11, %v2101_v32, %v2097_v45  ;;  %vm2129_vm2 = vcmp.eq.f32.partialorder %v2128_v34, 8.507059e+37  ;;  %vm2154_vm4 = vweird.f32 %v5470_v16  ;;  %vm5576_vm6 = vmor %vm2019_vm14, %vm2020_vm0  ;;  %vm2024_vm9 = vcmp.eq.f32.partialorder %v2023_v55, 8.507059e+37 }
 0x2c7   : > { %v5533_v11 = vpop.eup %3260  ;;  %v2150_v35 = vmul.f32 %v5525_v29, %v5470_v16  ;;  %3262 = vpow2.f32 %v1419_v62  ;;  %v2103_v33 = vmul.f32 %v5404_v10, %v2102_v46  ;;  %v1997_v10 = vsel %vm1994_vm13, %v1996_v43, %v1992_v17  ;;  %v5601_v62 = vpop.f32.mrf.mxu0 }
 0x2c8   : > { %3264 = vrcp.f32 %v5519_v12  ;;  %v2045_v13 = vmul.f32 %v5533_v11, %v5484_v30  ;;  %v1998_v37 = vmul.f32 %v5372_v42, %v1997_v10  ;;  %vm2155_vm5 = vweird.f32 %v5525_v29 }
 0x2c9   : > { %v2151_v63 = vsub.f32 1.0, %v2150_v35  ;;  %2341 = vmatmul.f32.gmra.mxu0 %v2103_v33  ;;  %v2022_v19 = vsel %vm5576_vm6, %v5475_v21, %v2018_v50  ;;  %vm5594_vm7 = vmor %vm2154_vm4, %vm2155_vm5  ;;  %v2026_v36 = vor.u32 1.1754944e-38, %v2025_v25  ;;  %vm2050_vm11 = vweird.f32 %v5533_v11 }
 0x2ca   : > { %v2371_v44 = vpop.f32.mrf.mxu1  ;;  %v1273_v48 = vpop.f32.mrf.mxu3  ;;  %v2046_v15 = vsub.f32 1.0, %v2045_v13  ;;  %vm2049_vm12 = vweird.f32 %v5484_v30  ;;  %v2053_v17 = vand.u32 2147483647, %v5484_v30  ;;  %vm2079_vm0 = vweird.f32 %v5519_v12 }
 0x2cb   : > { %v2372_v52 = vadd.f32 %v2371_v44, %v5221_v26  ;;  %v1326_v38 = vsub.f32 %v1273_v48, %v1273_v48  ;;  %v2123_v26 = vadd.f32 %v5495_v8, %v2122_v2  ;;  %v2152_v56 = vmul.f32 %v5525_v29, %v2151_v63  ;;  %vm2051_vm13 = vmor %vm2049_vm12, %vm2050_vm11 }
 0x2cc   : > { %v2047_v0 = vmul.f32 %v5533_v11, %v2046_v15  ;;  %v2027_v40 = vsel %vm2024_vm9, %v2026_v36, %v2022_v19  ;;  %vm2054_vm14 = vcmp.eq.f32.partialorder %v2053_v17, 8.507059e+37 }
 0x2cd   : > { %3057 = vmatmul.msk.f32.gmra.mxu1 %vm2179_vm3, %v1968_v18  ;;  %2494 = vmatmul.f32.gmra.mxu2 %v2372_v52  ;;  %v1423_v31 = vmul.f32 1.442695, %v1326_v38  ;;  %v5560_v9 = vpop.eup %3262  ;;  %v2127_v60 = vsel %vm2126_vm1, %v5495_v8, %v2123_v26  ;;  %v2153_v47 = vadd.f32 %v5525_v29, %v2152_v56  ;;  %v2160_v8 = vand.u32 2147483648, %v5470_v16 }
 0x2ce   : > { %2586 = vmatmul.f32.gmra.mxu3 %v2372_v52  ;;  %v5564_v4 = vpop.eup %3264  ;;  %v2132_v1 = vsel %vm2129_vm2, %v2131_v24, %v2127_v60  ;;  %v2048_v43 = vadd.f32 %v5533_v11, %v2047_v0  ;;  %v2028_v44 = vmul.f32 %v5423_v53, %v2027_v40  ;;  %v2083_v26 = vand.u32 2147483647, %v5519_v12 }
 0x2cf   : > { %3266 = vpow2.f32 %v1423_v31  ;;  %v2133_v3 = vmul.f32 %v5437_v57, %v2132_v1  ;;  %v2075_v27 = vmul.f32 %v5564_v4, %v5519_v12  ;;  %v2157_v21 = vsel %vm5594_vm7, %v5525_v29, %v2153_v47  ;;  %v5626_v33 = vpop.f32.mrf.mxu0 }
 0x2d0   : > { %3268 = vrcp.f32 %v5560_v9  ;;  %v2161_v6 = vor.u32 1.1754944e-38, %v2160_v8  ;;  %v2055_v29 = vand.u32 2147483648, %v5484_v30  ;;  %v2052_v46 = vsel %vm2051_vm13, %v5533_v11, %v2048_v43 }
 0x2d1   : > { %2344 = vmatmul.f32.gmra.mxu0 %v2133_v3  ;;  %v2076_v32 = vsub.f32 1.0, %v2075_v27  ;;  %vm2080_vm15 = vweird.f32 %v5564_v4  ;;  %v2085_v11 = vand.u32 2147483648, %v5519_v12  ;;  %vm2084_vm2 = vcmp.eq.f32.partialorder %v2083_v26, 8.507059e+37 }
 0x2d2   : > { %v2374_v54 = vpop.f32.mrf.mxu1  ;;  %v1276_v51 = vpop.f32.mrf.mxu3  ;;  %v2056_v53 = vor.u32 1.1754944e-38, %v2055_v29  ;;  %vm2081_vm1 = vmor %vm2079_vm0, %vm2080_vm15  ;;  %v2115_v15 = vand.u32 2147483648, %v5560_v9  ;;  %vm2109_vm5 = vweird.f32 %v5560_v9 }
 0x2d3   : > { %v2375_v58 = vadd.f32 %v2374_v54, %v5334_v7  ;;  %v1328_v42 = vsub.f32 %v1276_v51, %v1276_v51  ;;  %v2158_v7 = vand.u32 2147483647, %v5470_v16  ;;  %v2077_v35 = vmul.f32 %v5564_v4, %v2076_v32 }
 0x2d4   : > { %v2057_v52 = vsel %vm2054_vm14, %v2056_v53, %v2052_v46  ;;  %v2116_v51 = vor.u32 1.1754944e-38, %v2115_v15 }
 0x2d5   : > { %3058 = vmatmul.msk.f32.gmra.mxu1 %vm2179_vm3, %v1998_v37  ;;  %2497 = vmatmul.f32.gmra.mxu2 %v2375_v58  ;;  %v1427_v22 = vmul.f32 1.442695, %v1328_v42  ;;  %vm2159_vm10 = vcmp.eq.f32.partialorder %v2158_v7, 8.507059e+37  ;;  %v5603_v41 = vpop.eup %3266  ;;  %v2078_v2 = vadd.f32 %v5564_v4, %v2077_v35  ;;  %v2058_v13 = vmul.f32 %v5484_v30, %v2057_v52 }
 0x2d6   : > { %2589 = vmatmul.f32.gmra.mxu3 %v2375_v58  ;;  %v2162_v18 = vsel %vm2159_vm10, %v2161_v6, %v2157_v21  ;;  %v5607_v23 = vpop.eup %3268  ;;  %v2145_v5 = vand.u32 2147483648, %v5603_v41  ;;  %vm2139_vm10 = vweird.f32 %v5603_v41  ;;  %v2143_v7 = vand.u32 2147483647, %v5603_v41 }
 0x2d7   : > { %3270 = vpow2.f32 %v1427_v22  ;;  %v2163_v28 = vmul.f32 %v5470_v16, %v2162_v18  ;;  %v2082_v63 = vsel %vm2081_vm1, %v5564_v4, %v2078_v2  ;;  %vm2110_vm4 = vweird.f32 %v5607_v23  ;;  %v2303_v54 = vpop.f32.mrf.mxu0 }
 0x2d8   : > { %3272 = vrcp.f32 %v5603_v41  ;;  %v2113_v4 = vand.u32 2147483647, %v5560_v9  ;;  %vm2111_vm6 = vmor %vm2109_vm5, %vm2110_vm4  ;;  %v2146_v27 = vor.u32 1.1754944e-38, %v2145_v5  ;;  %vm2144_vm12 = vcmp.eq.f32.partialorder %v2143_v7, 8.507059e+37 }
 0x2d9   : > { %2347 = vmatmul.f32.gmra.mxu0 %v2163_v28 }
 0x2da   : > { %v2377_v45 = vpop.f32.mrf.mxu1  ;;  %vm2114_vm7 = vcmp.eq.f32.partialorder %v2113_v4, 8.507059e+37 }
 0x2db   : > { %v2378_v20 = vadd.f32 %v2377_v45, %v5395_v61  ;;  %v2105_v61 = vmul.f32 %v5607_v23, %v5560_v9 }
 0x2dd   : > { %3059 = vmatmul.msk.f32.gmra.mxu1 %vm2179_vm3, %v2028_v44  ;;  %2500 = vmatmul.f32.gmra.mxu2 %v2378_v20  ;;  %v5621_v48 = vpop.eup %3270  ;;  %v2106_v16 = vsub.f32 1.0, %v2105_v61 }
 0x2de   : > { %2592 = vmatmul.f32.gmra.mxu3 %v2378_v20  ;;  %v3273_v34 = vpop.eup %3272  ;;  %3274 = vrcp.f32 %v5621_v48  ;;  %vm2169_vm14 = vweird.f32 %v5621_v48  ;;  %v2173_v40 = vand.u32 2147483647, %v5621_v48 }
 0x2df   : > { %v2107_v10 = vmul.f32 %v5607_v23, %v2106_v16  ;;  %v2135_v55 = vmul.f32 %v3273_v34, %v5603_v41  ;;  %vm2140_vm9 = vweird.f32 %v3273_v34  ;;  %v2306_v57 = vpop.f32.mrf.mxu0 }
 0x2e0   : > { %vm2141_vm11 = vmor %vm2139_vm10, %vm2140_vm9  ;;  %vm2174_vm0 = vcmp.eq.f32.partialorder %v2173_v40, 8.507059e+37 }
 0x2e1   : > { %v2108_v31 = vadd.f32 %v5607_v23, %v2107_v10  ;;  %v2136_v50 = vsub.f32 1.0, %v2135_v55 }
 0x2e2   : > { %v2380_v38 = vpop.f32.mrf.mxu1 }
 0x2e3   : > { %v2381_v14 = vadd.f32 %v2380_v38, %v5448_v49  ;;  %v2086_v49 = vor.u32 1.1754944e-38, %v2085_v11  ;;  %v2112_v37 = vsel %vm2111_vm6, %v5607_v23, %v2108_v31  ;;  %v2137_v1 = vmul.f32 %v3273_v34, %v2136_v50 }
 0x2e4   : > { %v3275_v25 = vpop.eup %3274 }
 0x2e5   : > { %3060 = vmatmul.msk.f32.gmra.mxu1 %vm2179_vm3, %v2058_v13  ;;  %2503 = vmatmul.f32.gmra.mxu2 %v2381_v14  ;;  %v2087_v30 = vsel %vm2084_vm2, %v2086_v49, %v2082_v63  ;;  %v2165_v58 = vmul.f32 %v3275_v25, %v5621_v48  ;;  %v2138_v47 = vadd.f32 %v3273_v34, %v2137_v1  ;;  %vm2170_vm13 = vweird.f32 %v3275_v25 }
 0x2e6   : > { %2595 = vmatmul.f32.gmra.mxu3 %v2381_v14  ;;  %v2088_v56 = vmul.f32 %v5519_v12, %v2087_v30  ;;  %vm2171_vm15 = vmor %vm2169_vm14, %vm2170_vm13 }
 0x2e7   : > { %v2166_v12 = vsub.f32 1.0, %v2165_v58  ;;  %v2142_v19 = vsel %vm2141_vm11, %v3273_v34, %v2138_v47  ;;  %v2309_v23 = vpop.f32.mrf.mxu0 }
 0x2e8   : > { %v2147_v36 = vsel %vm2144_vm12, %v2146_v27, %v2142_v19 }
 0x2e9   : > { %v2167_v0 = vmul.f32 %v3275_v25, %v2166_v12  ;;  %v2148_v6 = vmul.f32 %v5603_v41, %v2147_v36 }
 0x2ea   : > { %v2383_v24 = vpop.f32.mrf.mxu1 }
 0x2eb   : > { %v2384_v60 = vadd.f32 %v2383_v24, %v5504_v39  ;;  %v2117_v39 = vsel %vm2114_vm7, %v2116_v51, %v2112_v37  ;;  %v2168_v21 = vadd.f32 %v3275_v25, %v2167_v0 }
 0x2ec   : > { %v2118_v3 = vmul.f32 %v5560_v9, %v2117_v39  ;;  %v2175_v9 = vand.u32 2147483648, %v5621_v48 }
 0x2ed   : > { %3061 = vmatmul.msk.f32.gmra.mxu1 %vm2179_vm3, %v2088_v56  ;;  %2506 = vmatmul.f32.gmra.mxu2 %v2384_v60  ;;  %v2172_v43 = vsel %vm2171_vm15, %v3275_v25, %v2168_v21 }
 0x2ee   : > { %2598 = vmatmul.f32.gmra.mxu3 %v2384_v60  ;;  %v2176_v32 = vor.u32 1.1754944e-38, %v2175_v9 }
 0x2ef   : > { %v2312_v20 = vpop.f32.mrf.mxu0 }
 0x2f0   : > { %v2177_v18 = vsel %vm2174_vm0, %v2176_v32, %v2172_v43 }
 0x2f2   : > { %v2386_v8 = vpop.f32.mrf.mxu1 }
 0x2f3   : > { %v2387_v42 = vadd.f32 %v2386_v8, %v5553_v59 }
 0x2f5   : > { %3062 = vmatmul.msk.f32.gmra.mxu1 %vm2179_vm3, %v2118_v3  ;;  %2509 = vmatmul.f32.gmra.mxu2 %v2387_v42 }
 0x2f6   : > { %2601 = vmatmul.f32.gmra.mxu3 %v2387_v42 }
 0x2f8   : > { %v2315_v46 = vpop.f32.mrf.mxu0 }
 0x2fa   : > { %v2389_v59 = vpop.f32.mrf.mxu1 }
 0x2fb   : > { %v2390_v22 = vadd.f32 %v2389_v59, %v5601_v62  ;;  %v2178_v62 = vmul.f32 %v5621_v48, %v2177_v18 }
 0x2fd   : > { %3063 = vmatmul.msk.f32.gmra.mxu1 %vm2179_vm3, %v2148_v6  ;;  %2512 = vmatmul.f32.gmra.mxu2 %v2390_v22 }
 0x2fe   : > { %2604 = vmatmul.f32.gmra.mxu3 %v2390_v22 }
 0x300   : > { %v2318_v53 = vpop.f32.mrf.mxu0 }
 0x302   : > { %v2392_v45 = vpop.f32.mrf.mxu1 }
 0x303   : > { %v2393_v29 = vadd.f32 %v2392_v45, %v5626_v33 }
 0x305   : > { %3064 = vmatmul.msk.f32.gmra.mxu1 %vm2179_vm3, %v2178_v62  ;;  %2515 = vmatmul.f32.gmra.mxu2 %v2393_v29 }
 0x306   : > { %2607 = vmatmul.f32.gmra.mxu3 %v2393_v29 }
 0x308   : > { %v2321_v2 = vpop.f32.mrf.mxu0 }
 0x30a   : > { %v2395_v41 = vpop.f32.mrf.mxu1 }
 0x30b   : > { %v2396_v44 = vadd.f32 %v2395_v41, %v2303_v54 }
 0x30d   : > { %2518 = vmatmul.f32.gmra.mxu2 %v2396_v44 }
 0x30e   : > { %2610 = vmatmul.f32.gmra.mxu3 %v2396_v44 }
 0x312   : > { %v2398_v17 = vpop.f32.mrf.mxu1 }
 0x313   : > { %v2399_v28 = vadd.f32 %v2398_v17, %v2306_v57  ;;  %v2324_v11 = vpop.f32.mrf.mxu0 }
 0x315   : > { %2521 = vmatmul.f32.gmra.mxu2 %v2399_v28 }
 0x316   : > { %2613 = vmatmul.f32.gmra.mxu3 %v2399_v28 }
 0x31a   : > { %v2401_v35 = vpop.f32.mrf.mxu1 }
 0x31b   : > { %v2402_v61 = vadd.f32 %v2401_v35, %v2309_v23  ;;  %v2327_v26 = vpop.f32.mrf.mxu0 }
 0x31d   : > { %2524 = vmatmul.f32.gmra.mxu2 %v2402_v61 }
 0x31e   : > { %2616 = vmatmul.f32.gmra.mxu3 %v2402_v61 }
 0x322   : > { %v2404_v52 = vpop.f32.mrf.mxu1 }
 0x323   : > { %v2405_v48 = vadd.f32 %v2404_v52, %v2312_v20  ;;  %v2330_v55 = vpop.f32.mrf.mxu0 }
 0x325   : > { %2527 = vmatmul.f32.gmra.mxu2 %v2405_v48 }
 0x326   : > { %2619 = vmatmul.f32.gmra.mxu3 %v2405_v48 }
 0x32a   : > { %v2407_v16 = vpop.f32.mrf.mxu1 }
 0x32b   : > { %v2408_v34 = vadd.f32 %v2407_v16, %v2315_v46  ;;  %v2333_v24 = vpop.f32.mrf.mxu0 }
 0x32d   : > { %2530 = vmatmul.f32.gmra.mxu2 %v2408_v34 }
 0x32e   : > { %2622 = vmatmul.f32.gmra.mxu3 %v2408_v34 }
 0x332   : > { %v2410_v38 = vpop.f32.mrf.mxu1 }
 0x333   : > { %v2411_v33 = vadd.f32 %v2410_v38, %v2318_v53  ;;  %v2336_v0 = vpop.f32.mrf.mxu0 }
 0x335   : > { %2533 = vmatmul.f32.gmra.mxu2 %v2411_v33 }
 0x336   : > { %2625 = vmatmul.f32.gmra.mxu3 %v2411_v33 }
 0x33a   : > { %v2413_v14 = vpop.f32.mrf.mxu1 }
 0x33b   : > { %v2414_v13 = vadd.f32 %v2413_v14, %v2321_v2  ;;  %v2339_v45 = vpop.f32.mrf.mxu0 }
 0x33d   : > { %2536 = vmatmul.f32.gmra.mxu2 %v2414_v13 }
 0x33e   : > { %2628 = vmatmul.f32.gmra.mxu3 %v2414_v13 }
 0x342   : > { %v2416_v63 = vpop.f32.mrf.mxu1 }
 0x343   : > { %v2417_v10 = vadd.f32 %v2416_v63, %v2324_v11 }
 0x345   : > { %2539 = vmatmul.f32.gmra.mxu2 %v2417_v10 }
 0x346   : > { %2631 = vmatmul.f32.gmra.mxu3 %v2417_v10  ;;  %v2342_v53 = vpop.f32.mrf.mxu0 }
 0x348   : > { %v2492_v49 = vpop.f32.mrf.mxu2 }
 0x349   : > { %2659 = vst [vmem:[%s5666_s15] sm:$0xff] %v2492_v49  ;;  %v2584_v30 = vpop.f32.mrf.mxu3  ;;  %v2782_v15 = vmul.f32 %v2492_v49, %v2492_v49 }
 0x34a   : > { %2660 = vst [vmem:[%s5666_s15 + $0x8] sm:$0xff] %v2584_v30  ;;  %v2419_v31 = vpop.f32.mrf.mxu1  ;;  %v2783_v54 = vmul.f32 %v2584_v30, %v2584_v30 }
 0x34b   : > { %v2420_v50 = vadd.f32 %v2419_v31, %v2327_v26 }
 0x34d   : > { %2542 = vmatmul.f32.gmra.mxu2 %v2420_v50 }
 0x34e   : > { %2634 = vmatmul.f32.gmra.mxu3 %v2420_v50  ;;  %v2345_v63 = vpop.f32.mrf.mxu0 }
 0x350   : > { %v2495_v25 = vpop.f32.mrf.mxu2 }
 0x351   : > { %2661 = vst [vmem:[%s5666_s15 + $0x10] sm:$0xff] %v2495_v25  ;;  %v2709_v60 = vadd.f32 %v2495_v25, %v2492_v49  ;;  %v2784_v56 = vmul.f32 %v2495_v25, %v2495_v25  ;;  %v2587_v4 = vpop.f32.mrf.mxu3 }
 0x352   : > { %2662 = vst [vmem:[%s5666_s15 + $0x18] sm:$0xff] %v2587_v4  ;;  %v2740_v37 = vadd.f32 %v2587_v4, %v2584_v30  ;;  %v2785_v1 = vmul.f32 %v2587_v4, %v2587_v4  ;;  %v2422_v58 = vpop.f32.mrf.mxu1 }
 0x353   : > { %v2832_v51 = vadd.f32 %v2784_v56, %v2782_v15  ;;  %v2423_v39 = vadd.f32 %v2422_v58, %v2330_v55 }
 0x354   : > { %v2863_v47 = vadd.f32 %v2785_v1, %v2783_v54 }
 0x355   : > { %2545 = vmatmul.f32.gmra.mxu2 %v2423_v39 }
 0x356   : > { %2637 = vmatmul.f32.gmra.mxu3 %v2423_v39  ;;  %v2348_v58 = vpop.f32.mrf.mxu0 }
 0x358   : > { %v2498_v12 = vpop.f32.mrf.mxu2 }
 0x359   : > { %2663 = vst [vmem:[%s5666_s15 + $0x20] sm:$0xff] %v2498_v12  ;;  %v2710_v8 = vadd.f32 %v2709_v60, %v2498_v12  ;;  %v2786_v5 = vmul.f32 %v2498_v12, %v2498_v12  ;;  %v2590_v42 = vpop.f32.mrf.mxu3 }
 0x35a   : > { %2664 = vst [vmem:[%s5666_s15 + $0x28] sm:$0xff] %v2590_v42  ;;  %v2741_v3 = vadd.f32 %v2740_v37, %v2590_v42  ;;  %v2787_v7 = vmul.f32 %v2590_v42, %v2590_v42  ;;  %v2425_v19 = vpop.f32.mrf.mxu1 }
 0x35b   : > { %v2833_v27 = vadd.f32 %v2832_v51, %v2786_v5  ;;  %v2426_v57 = vadd.f32 %v2425_v19, %v2333_v24 }
 0x35c   : > { %v2864_v36 = vadd.f32 %v2863_v47, %v2787_v7 }
 0x35d   : > { %2548 = vmatmul.f32.gmra.mxu2 %v2426_v57 }
 0x35e   : > { %2640 = vmatmul.f32.gmra.mxu3 %v2426_v57 }
 0x360   : > { %v2501_v21 = vpop.f32.mrf.mxu2 }
 0x361   : > { %2665 = vst [vmem:[%s5666_s15 + $0x30] sm:$0xff] %v2501_v21  ;;  %v2711_v59 = vadd.f32 %v2710_v8, %v2501_v21  ;;  %v2788_v9 = vmul.f32 %v2501_v21, %v2501_v21  ;;  %v2593_v22 = vpop.f32.mrf.mxu3 }
 0x362   : > { %2666 = vst [vmem:[%s5666_s15 + $0x38] sm:$0xff] %v2593_v22  ;;  %v2742_v6 = vadd.f32 %v2741_v3, %v2593_v22  ;;  %v2789_v40 = vmul.f32 %v2593_v22, %v2593_v22  ;;  %v2428_v43 = vpop.f32.mrf.mxu1 }
 0x363   : > { %v2834_v32 = vadd.f32 %v2833_v27, %v2788_v9  ;;  %v2429_v18 = vadd.f32 %v2428_v43, %v2336_v0 }
 0x364   : > { %v2865_v23 = vadd.f32 %v2864_v36, %v2789_v40 }
 0x365   : > { %2551 = vmatmul.f32.gmra.mxu2 %v2429_v18 }
 0x366   : > { %2643 = vmatmul.f32.gmra.mxu3 %v2429_v18 }
 0x368   : > { %v2504_v29 = vpop.f32.mrf.mxu2 }
 0x369   : > { %2667 = vst [vmem:[%s5666_s15 + $0x40] sm:$0xff] %v2504_v29  ;;  %v2712_v62 = vadd.f32 %v2711_v59, %v2504_v29  ;;  %v2790_v41 = vmul.f32 %v2504_v29, %v2504_v29  ;;  %v2596_v20 = vpop.f32.mrf.mxu3 }
 0x36a   : > { %2668 = vst [vmem:[%s5666_s15 + $0x48] sm:$0xff] %v2596_v20  ;;  %v2743_v44 = vadd.f32 %v2742_v6, %v2596_v20  ;;  %v2791_v17 = vmul.f32 %v2596_v20, %v2596_v20  ;;  %v2431_v28 = vpop.f32.mrf.mxu1 }
 0x36b   : > { %v2835_v46 = vadd.f32 %v2834_v32, %v2790_v41  ;;  %v2432_v35 = vadd.f32 %v2431_v28, %v2339_v45 }
 0x36c   : > { %v2866_v61 = vadd.f32 %v2865_v23, %v2791_v17 }
 0x36d   : > { %2554 = vmatmul.f32.gmra.mxu2 %v2432_v35 }
 0x36e   : > { %2646 = vmatmul.f32.gmra.mxu3 %v2432_v35 }
 0x370   : > { %v2507_v52 = vpop.f32.mrf.mxu2 }
 0x371   : > { %2669 = vst [vmem:[%s5666_s15 + $0x50] sm:$0xff] %v2507_v52  ;;  %v2713_v48 = vadd.f32 %v2712_v62, %v2507_v52  ;;  %v2792_v2 = vmul.f32 %v2507_v52, %v2507_v52  ;;  %v2599_v16 = vpop.f32.mrf.mxu3 }
 0x372   : > { %2670 = vst [vmem:[%s5666_s15 + $0x58] sm:$0xff] %v2599_v16  ;;  %v2744_v34 = vadd.f32 %v2743_v44, %v2599_v16  ;;  %v2793_v38 = vmul.f32 %v2599_v16, %v2599_v16  ;;  %v2434_v11 = vpop.f32.mrf.mxu1 }
 0x373   : > { %v2836_v33 = vadd.f32 %v2835_v46, %v2792_v2  ;;  %v2435_v14 = vadd.f32 %v2434_v11, %v2342_v53 }
 0x374   : > { %v2867_v13 = vadd.f32 %v2866_v61, %v2793_v38 }
 0x375   : > { %2557 = vmatmul.f32.gmra.mxu2 %v2435_v14 }
 0x376   : > { %2649 = vmatmul.f32.gmra.mxu3 %v2435_v14 }
 0x378   : > { %v2510_v26 = vpop.f32.mrf.mxu2 }
 0x379   : > { %2671 = vst [vmem:[%s5666_s15 + $0x60] sm:$0xff] %v2510_v26  ;;  %v2714_v10 = vadd.f32 %v2713_v48, %v2510_v26  ;;  %v2794_v55 = vmul.f32 %v2510_v26, %v2510_v26  ;;  %v2602_v49 = vpop.f32.mrf.mxu3 }
 0x37a   : > { %2672 = vst [vmem:[%s5666_s15 + $0x68] sm:$0xff] %v2602_v49  ;;  %v2745_v30 = vadd.f32 %v2744_v34, %v2602_v49  ;;  %v2795_v31 = vmul.f32 %v2602_v49, %v2602_v49  ;;  %v2437_v50 = vpop.f32.mrf.mxu1 }
 0x37b   : > { %v2837_v25 = vadd.f32 %v2836_v33, %v2794_v55  ;;  %v2438_v24 = vadd.f32 %v2437_v50, %v2345_v63 }
 0x37c   : > { %v2868_v15 = vadd.f32 %v2867_v13, %v2795_v31 }
 0x37d   : > { %2560 = vmatmul.f32.gmra.mxu2 %v2438_v24 }
 0x37e   : > { %2652 = vmatmul.f32.gmra.mxu3 %v2438_v24 }
 0x380   : > { %v2513_v60 = vpop.f32.mrf.mxu2 }
 0x381   : > { %2673 = vst [vmem:[%s5666_s15 + $0x70] sm:$0xff] %v2513_v60  ;;  %v2715_v56 = vadd.f32 %v2714_v10, %v2513_v60  ;;  %v2796_v4 = vmul.f32 %v2513_v60, %v2513_v60  ;;  %v2605_v54 = vpop.f32.mrf.mxu3 }
 0x382   : > { %2674 = vst [vmem:[%s5666_s15 + $0x78] sm:$0xff] %v2605_v54  ;;  %v2746_v37 = vadd.f32 %v2745_v30, %v2605_v54  ;;  %v2797_v1 = vmul.f32 %v2605_v54, %v2605_v54  ;;  %v2440_v51 = vpop.f32.mrf.mxu1 }
 0x383   : > { %v2838_v39 = vadd.f32 %v2837_v25, %v2796_v4  ;;  %v2441_v47 = vadd.f32 %v2440_v51, %v2348_v58 }
 0x384   : > { %v2869_v12 = vadd.f32 %v2868_v15, %v2797_v1 }
 0x385   : > { %2563 = vmatmul.f32.gmra.mxu2 %v2441_v47 }
 0x386   : > { %2655 = vmatmul.f32.gmra.mxu3 %v2441_v47 }
 0x388   : > { %v2516_v8 = vpop.f32.mrf.mxu2 }
 0x389   : > { %2675 = vst [vmem:[%s5666_s15 + $0x80] sm:$0xff] %v2516_v8  ;;  %v2716_v5 = vadd.f32 %v2715_v56, %v2516_v8  ;;  %v2798_v42 = vmul.f32 %v2516_v8, %v2516_v8  ;;  %v2608_v3 = vpop.f32.mrf.mxu3 }
 0x38a   : > { %2676 = vst [vmem:[%s5666_s15 + $0x88] sm:$0xff] %v2608_v3  ;;  %v2747_v7 = vadd.f32 %v2746_v37, %v2608_v3  ;;  %v2799_v19 = vmul.f32 %v2608_v3, %v2608_v3 }
 0x38b   : > { %v2839_v0 = vadd.f32 %v2838_v39, %v2798_v42 }
 0x38c   : > { %v2870_v27 = vadd.f32 %v2869_v12, %v2799_v19 }
 0x390   : > { %v2519_v57 = vpop.f32.mrf.mxu2 }
 0x391   : > { %2677 = vst [vmem:[%s5666_s15 + $0x90] sm:$0xff] %v2519_v57  ;;  %v2717_v36 = vadd.f32 %v2716_v5, %v2519_v57  ;;  %v2800_v21 = vmul.f32 %v2519_v57, %v2519_v57  ;;  %v2611_v59 = vpop.f32.mrf.mxu3 }
 0x392   : > { %2678 = vst [vmem:[%s5666_s15 + $0x98] sm:$0xff] %v2611_v59  ;;  %v2748_v9 = vadd.f32 %v2747_v7, %v2611_v59  ;;  %v2801_v22 = vmul.f32 %v2611_v59, %v2611_v59 }
 0x393   : > { %v2840_v6 = vadd.f32 %v2839_v0, %v2800_v21 }
 0x394   : > { %v2871_v40 = vadd.f32 %v2870_v27, %v2801_v22 }
 0x398   : > { %v2522_v43 = vpop.f32.mrf.mxu2 }
 0x399   : > { %2679 = vst [vmem:[%s5666_s15 + $0xa0] sm:$0xff] %v2522_v43  ;;  %v2718_v32 = vadd.f32 %v2717_v36, %v2522_v43  ;;  %v2802_v18 = vmul.f32 %v2522_v43, %v2522_v43  ;;  %v2614_v23 = vpop.f32.mrf.mxu3 }
 0x39a   : > { %2680 = vst [vmem:[%s5666_s15 + $0xa8] sm:$0xff] %v2614_v23  ;;  %v2749_v45 = vadd.f32 %v2748_v9, %v2614_v23  ;;  %v2803_v29 = vmul.f32 %v2614_v23, %v2614_v23 }
 0x39b   : > { %v2841_v62 = vadd.f32 %v2840_v6, %v2802_v18 }
 0x39c   : > { %v2872_v41 = vadd.f32 %v2871_v40, %v2803_v29 }
 0x3a0   : > { %v2525_v20 = vpop.f32.mrf.mxu2 }
 0x3a1   : > { %2681 = vst [vmem:[%s5666_s15 + $0xb0] sm:$0xff] %v2525_v20  ;;  %v2719_v44 = vadd.f32 %v2718_v32, %v2525_v20  ;;  %v2804_v17 = vmul.f32 %v2525_v20, %v2525_v20  ;;  %v2617_v28 = vpop.f32.mrf.mxu3 }
 0x3a2   : > { %2682 = vst [vmem:[%s5666_s15 + $0xb8] sm:$0xff] %v2617_v28  ;;  %v2750_v46 = vadd.f32 %v2749_v45, %v2617_v28  ;;  %v2805_v35 = vmul.f32 %v2617_v28, %v2617_v28 }
 0x3a3   : > { %v2842_v61 = vadd.f32 %v2841_v62, %v2804_v17 }
 0x3a4   : > { %v2873_v53 = vadd.f32 %v2872_v41, %v2805_v35 }
 0x3a8   : > { %v2528_v52 = vpop.f32.mrf.mxu2 }
 0x3a9   : > { %2683 = vst [vmem:[%s5666_s15 + $0xc0] sm:$0xff] %v2528_v52  ;;  %v2720_v48 = vadd.f32 %v2719_v44, %v2528_v52  ;;  %v2806_v2 = vmul.f32 %v2528_v52, %v2528_v52  ;;  %v2620_v16 = vpop.f32.mrf.mxu3 }
 0x3aa   : > { %2684 = vst [vmem:[%s5666_s15 + $0xc8] sm:$0xff] %v2620_v16  ;;  %v2751_v34 = vadd.f32 %v2750_v46, %v2620_v16  ;;  %v2807_v38 = vmul.f32 %v2620_v16, %v2620_v16 }
 0x3ab   : > { %v2843_v11 = vadd.f32 %v2842_v61, %v2806_v2 }
 0x3ac   : > { %v2874_v33 = vadd.f32 %v2873_v53, %v2807_v38 }
 0x3b0   : > { %v2531_v14 = vpop.f32.mrf.mxu2 }
 0x3b1   : > { %2685 = vst [vmem:[%s5666_s15 + $0xd0] sm:$0xff] %v2531_v14  ;;  %v2721_v13 = vadd.f32 %v2720_v48, %v2531_v14  ;;  %v2808_v26 = vmul.f32 %v2531_v14, %v2531_v14  ;;  %v2623_v63 = vpop.f32.mrf.mxu3 }
 0x3b2   : > { %2686 = vst [vmem:[%s5666_s15 + $0xd8] sm:$0xff] %v2623_v63  ;;  %v2752_v10 = vadd.f32 %v2751_v34, %v2623_v63  ;;  %v2809_v55 = vmul.f32 %v2623_v63, %v2623_v63 }
 0x3b3   : > { %v2844_v49 = vadd.f32 %v2843_v11, %v2808_v26 }
 0x3b4   : > { %v2875_v30 = vadd.f32 %v2874_v33, %v2809_v55 }
 0x3b8   : > { %v2534_v31 = vpop.f32.mrf.mxu2 }
 0x3b9   : > { %2687 = vst [vmem:[%s5666_s15 + $0xe0] sm:$0xff] %v2534_v31  ;;  %v2722_v50 = vadd.f32 %v2721_v13, %v2534_v31  ;;  %v2810_v25 = vmul.f32 %v2534_v31, %v2534_v31  ;;  %v2626_v24 = vpop.f32.mrf.mxu3 }
 0x3ba   : > { %2688 = vst [vmem:[%s5666_s15 + $0xe8] sm:$0xff] %v2626_v24  ;;  %v2811_v3 = vmul.f32 %v2626_v24, %v2626_v24  ;;  %v2753_v19 = vadd.f32 %v2752_v10, %v2626_v24 }
 0x3bb   : > { %v2845_v15 = vadd.f32 %v2844_v49, %v2810_v25 }
 0x3bc   : > { %v2876_v21 = vadd.f32 %v2875_v30, %v2811_v3 }
 0x3c0   : > { %v2537_v60 = vpop.f32.mrf.mxu2 }
 0x3c1   : > { %2689 = vst [vmem:[%s5666_s15 + $0xf0] sm:$0xff] %v2537_v60  ;;  %v2629_v56 = vpop.f32.mrf.mxu3  ;;  %v2812_v7 = vmul.f32 %v2537_v60, %v2537_v60  ;;  %v2723_v27 = vadd.f32 %v2722_v50, %v2537_v60 }
 0x3c2   : > { %2690 = vst [vmem:[%s5666_s15 + $0xf8] sm:$0xff] %v2629_v56  ;;  %v2813_v0 = vmul.f32 %v2629_v56, %v2629_v56  ;;  %v2754_v59 = vadd.f32 %v2753_v19, %v2629_v56 }
 0x3c3   : > { %v2846_v6 = vadd.f32 %v2845_v15, %v2812_v7 }
 0x3c4   : > { %v2877_v32 = vadd.f32 %v2876_v21, %v2813_v0 }
 0x3c8   : > { %v2540_v4 = vpop.f32.mrf.mxu2 }
 0x3c9   : > { %2691 = vst [vmem:[%s5666_s15 + $0x100] sm:$0xff] %v2540_v4  ;;  %v2632_v54 = vpop.f32.mrf.mxu3  ;;  %v2814_v57 = vmul.f32 %v2540_v4, %v2540_v4  ;;  %v2724_v40 = vadd.f32 %v2723_v27, %v2540_v4 }
 0x3ca   : > { %2692 = vst [vmem:[%s5666_s15 + $0x108] sm:$0xff] %v2632_v54  ;;  %v2815_v9 = vmul.f32 %v2632_v54, %v2632_v54  ;;  %v2755_v18 = vadd.f32 %v2754_v59, %v2632_v54 }
 0x3cb   : > { %v2847_v45 = vadd.f32 %v2846_v6, %v2814_v57 }
 0x3cc   : > { %v2878_v41 = vadd.f32 %v2877_v32, %v2815_v9 }
 0x3d0   : > { %v2543_v37 = vpop.f32.mrf.mxu2 }
 0x3d1   : > { %2693 = vst [vmem:[%s5666_s15 + $0x110] sm:$0xff] %v2543_v37  ;;  %v2635_v1 = vpop.f32.mrf.mxu3  ;;  %v2816_v43 = vmul.f32 %v2543_v37, %v2543_v37  ;;  %v2725_v29 = vadd.f32 %v2724_v40, %v2543_v37 }
 0x3d2   : > { %2694 = vst [vmem:[%s5666_s15 + $0x118] sm:$0xff] %v2635_v1  ;;  %v2817_v23 = vmul.f32 %v2635_v1, %v2635_v1  ;;  %v2756_v20 = vadd.f32 %v2755_v18, %v2635_v1 }
 0x3d3   : > { %v2848_v17 = vadd.f32 %v2847_v45, %v2816_v43 }
 0x3d4   : > { %v2879_v35 = vadd.f32 %v2878_v41, %v2817_v23 }
 0x3d8   : > { %v2546_v58 = vpop.f32.mrf.mxu2 }
 0x3d9   : > { %2695 = vst [vmem:[%s5666_s15 + $0x120] sm:$0xff] %v2546_v58  ;;  %v2638_v51 = vpop.f32.mrf.mxu3  ;;  %v2818_v62 = vmul.f32 %v2546_v58, %v2546_v58  ;;  %v2726_v28 = vadd.f32 %v2725_v29, %v2546_v58 }
 0x3da   : > { %2696 = vst [vmem:[%s5666_s15 + $0x128] sm:$0xff] %v2638_v51  ;;  %v2819_v44 = vmul.f32 %v2638_v51, %v2638_v51  ;;  %v2757_v61 = vadd.f32 %v2756_v20, %v2638_v51 }
 0x3db   : > { %v2849_v52 = vadd.f32 %v2848_v17, %v2818_v62 }
 0x3dc   : > { %v2880_v34 = vadd.f32 %v2879_v35, %v2819_v44  ;;  %v2777_v35 = vlaneseq }
 0x3de   : > { %vm2779_vm3 = vcmp.lt.s32.totalorder %v2777_v35, 256 }
 0x3e0   : > { %v2549_v39 = vpop.f32.mrf.mxu2 }
 0x3e1   : > { %2697 = vst [vmem:[%s5666_s15 + $0x130] sm:$0xff] %v2549_v39  ;;  %v2641_v47 = vpop.f32.mrf.mxu3  ;;  %v2820_v46 = vmul.f32 %v2549_v39, %v2549_v39  ;;  %v2727_v48 = vadd.f32 %v2726_v28, %v2549_v39 }
 0x3e2   : > { %2698 = vst [vmem:[%s5666_s15 + $0x138] sm:$0xff] %v2641_v47  ;;  %v2821_v53 = vmul.f32 %v2641_v47, %v2641_v47  ;;  %v2758_v38 = vadd.f32 %v2757_v61, %v2641_v47 }
 0x3e3   : > { %v2850_v14 = vadd.f32 %v2849_v52, %v2820_v46 }
 0x3e4   : > { %v2881_v63 = vadd.f32 %v2880_v34, %v2821_v53 }
 0x3e8   : > { %v2552_v12 = vpop.f32.mrf.mxu2 }
 0x3e9   : > { %2699 = vst [vmem:[%s5666_s15 + $0x140] sm:$0xff] %v2552_v12  ;;  %v2644_v8 = vpop.f32.mrf.mxu3  ;;  %v2822_v2 = vmul.f32 %v2552_v12, %v2552_v12  ;;  %v2728_v13 = vadd.f32 %v2727_v48, %v2552_v12 }
 0x3ea   : > { %2700 = vst [vmem:[%s5666_s15 + $0x148] sm:$0xff] %v2644_v8  ;;  %v2823_v11 = vmul.f32 %v2644_v8, %v2644_v8  ;;  %v2759_v10 = vadd.f32 %v2758_v38, %v2644_v8 }
 0x3eb   : > { %v2851_v49 = vadd.f32 %v2850_v14, %v2822_v2 }
 0x3ec   : > { %v2882_v50 = vadd.f32 %v2881_v63, %v2823_v11 }
 0x3f0   : > { %v2555_v5 = vpop.f32.mrf.mxu2 }
 0x3f1   : > { %2701 = vst [vmem:[%s5666_s15 + $0x150] sm:$0xff] %v2555_v5  ;;  %v2647_v42 = vpop.f32.mrf.mxu3  ;;  %v2824_v26 = vmul.f32 %v2555_v5, %v2555_v5  ;;  %v2729_v30 = vadd.f32 %v2728_v13, %v2555_v5 }
 0x3f2   : > { %2702 = vst [vmem:[%s5666_s15 + $0x158] sm:$0xff] %v2647_v42  ;;  %v2825_v55 = vmul.f32 %v2647_v42, %v2647_v42  ;;  %v2760_v25 = vadd.f32 %v2759_v10, %v2647_v42 }
 0x3f3   : > { %v2852_v15 = vadd.f32 %v2851_v49, %v2824_v26 }
 0x3f4   : > { %v2883_v4 = vadd.f32 %v2882_v50, %v2825_v55 }
 0x3f8   : > { %v2558_v36 = vpop.f32.mrf.mxu2 }
 0x3f9   : > { %2703 = vst [vmem:[%s5666_s15 + $0x160] sm:$0xff] %v2558_v36  ;;  %v2650_v22 = vpop.f32.mrf.mxu3  ;;  %v2826_v31 = vmul.f32 %v2558_v36, %v2558_v36  ;;  %v2730_v60 = vadd.f32 %v2729_v30, %v2558_v36 }
 0x3fa   : > { %2704 = vst [vmem:[%s5666_s15 + $0x168] sm:$0xff] %v2650_v22  ;;  %v2827_v24 = vmul.f32 %v2650_v22, %v2650_v22  ;;  %v2761_v54 = vadd.f32 %v2760_v25, %v2650_v22 }
 0x3fb   : > { %v2853_v1 = vadd.f32 %v2852_v15, %v2826_v31 }
 0x3fc   : > { %v2884_v39 = vadd.f32 %v2883_v4, %v2827_v24 }
 0x400   : > { %v2561_v16 = vpop.f32.mrf.mxu2 }
 0x401   : > { %2705 = vst [vmem:[%s5666_s15 + $0x170] sm:$0xff] %v2561_v16  ;;  %v2653_v33 = vpop.f32.mrf.mxu3  ;;  %v2828_v56 = vmul.f32 %v2561_v16, %v2561_v16  ;;  %v2731_v58 = vadd.f32 %v2730_v60, %v2561_v16 }
 0x402   : > { %2706 = vst [vmem:[%s5666_s15 + $0x178] sm:$0xff] %v2653_v33  ;;  %v2829_v37 = vmul.f32 %v2653_v33, %v2653_v33  ;;  %v2762_v47 = vadd.f32 %v2761_v54, %v2653_v33 }
 0x403   : > { %v2854_v3 = vadd.f32 %v2853_v1, %v2828_v56 }
 0x404   : > { %v2885_v0 = vadd.f32 %v2884_v39, %v2829_v37 }
 0x408   : > { %v2564_v51 = vpop.f32.mrf.mxu2 }
 0x409   : > { %2707 = vst [vmem:[%s5666_s15 + $0x180] sm:$0xf] %v2564_v51  ;;  %v2732_v12 = vsel %vm2255_vm8, %v2564_v51, 0.0  ;;  %v2830_v8 = vmul.f32 %v2564_v51, %v2564_v51  ;;  %v2656_v5 = vpop.f32.mrf.mxu3 }
 0x40a   : > { %v2733_v42 = vadd.f32 %v2732_v12, %v2731_v58  ;;  %2708 = vst [vmem:[%s5666_s15 + $0x188] sm:$0xf] %v2656_v5  ;;  %v2763_v7 = vsel %vm2255_vm8, %v2656_v5, 0.0  ;;  %v2831_v19 = vmul.f32 %v2656_v5, %v2656_v5 }
 0x40b   : > { %v2855_v27 = vsel %vm2255_vm8, %v2830_v8, 0.0  ;;  %v2764_v57 = vadd.f32 %v2763_v7, %v2762_v47 }
 0x40c   : > { %v2734_v36 = vrot.slane %v2733_v42, 4  ;;  %v2856_v21 = vadd.f32 %v2855_v27, %v2854_v3  ;;  %v2886_v59 = vsel %vm2255_vm8, %v2831_v19, 0.0  ;;  %vm2774_vm8 = vcmask 1040384  }
 0x40d   : > { %v2765_v9 = vrot.slane %v2764_v57, 4  ;;  %v2887_v22 = vadd.f32 %v2886_v59, %v2885_v0 }
 0x40e   : > { %v2735_v6 = vadd.f32 %v2734_v36, %v2733_v42  ;;  %v2857_v40 = vrot.slane %v2856_v21, 4 }
 0x40f   : > { %v2766_v43 = vadd.f32 %v2765_v9, %v2764_v57  ;;  %v2888_v32 = vrot.slane %v2887_v22, 4 }
 0x410   : > { %v2736_v18 = vrot.slane %v2735_v6, 2  ;;  %v2858_v23 = vadd.f32 %v2857_v40, %v2856_v21 }
 0x411   : > { %v2767_v45 = vrot.slane %v2766_v43, 2  ;;  %v2889_v29 = vadd.f32 %v2888_v32, %v2887_v22 }
 0x412   : > { %v2737_v62 = vadd.f32 %v2736_v18, %v2735_v6  ;;  %v2859_v41 = vrot.slane %v2858_v23, 2 }
 0x413   : > { %v2768_v20 = vadd.f32 %v2767_v45, %v2766_v43  ;;  %v2890_v44 = vrot.slane %v2889_v29, 2 }
 0x414   : > { %v2860_v17 = vadd.f32 %v2859_v41, %v2858_v23  ;;  %v2738_v28 = vrot.slane %v2737_v62, 1 }
 0x415   : > { %v2769_v46 = vrot.slane %v2768_v20, 1  ;;  %v2891_v61 = vadd.f32 %v2890_v44, %v2889_v29 }
 0x416   : > { %v2861_v53 = vrot.slane %v2860_v17, 1  ;;  %v2739_v2 = vadd.f32 %v2738_v28, %v2737_v62 }
 0x417   : > { %v2770_v52 = vadd.f32 %v2769_v46, %v2768_v20  ;;  %v2892_v48 = vrot.slane %v2891_v61, 1 }
 0x418   : > { %v2862_v38 = vadd.f32 %v2861_v53, %v2860_v17 }
 0x419   : > { %v2773_v16 = vrot.slane %v2770_v52, 7  ;;  %v2893_v34 = vadd.f32 %v2892_v48, %v2891_v61 }
 0x41b   : > { %v2775_v11 = vsel %vm2774_vm8, %v2739_v2, %v2773_v16  ;;  %v2896_v33 = vrot.slane %v2893_v34, 7 }
 0x41c   : > { %2781 = vst.msk [vmem:[%s342_s18] sm:$0x3] %vm2779_vm3, %v2775_v11 }
 0x41d   : > { %v2897_v14 = vsel %vm2774_vm8, %v2862_v38, %v2896_v33 }
 0x41e   : > { %2899 = vst.msk [vmem:[%s346_s22] sm:$0x3] %vm2779_vm3, %v2897_v14 }
 0x41f PF: > { %s19_s27 = sadd.s32 1, %s3282_s27  }
 0x420   : > { %p16_p4 = scmp.ge.s32.totalorder %s19_s27, 6  }
 0x422   :  { %18 = sbr.rel (!%p16_p4) target bundleno = 1 (0x1), region = 101 }

// kernel: cma_block_forward.3
= control target key start
LH: loop header
LB: loop body
LE: loop exit
PB: predicated region body
PF: predicated region fallthrough
CT: control target
= control target key end

     0   :  { %s727_s21 = smov 0   ;;  %s958_s0 = inlined_call_operand.vmem [shape: f32[784,256], index: 0, kind: input, shape index: {}]   ;;  %s959_s1 = inlined_call_operand.vmem [shape: f32[784,256], index: 1, kind: input, shape index: {}]   ;;  %s960_s2 = inlined_call_operand.vmem [shape: f32[4,1,256], index: 2, kind: input, shape index: {}]   ;;  %s961_s3 = inlined_call_operand.vmem [shape: f32[4,1,256], index: 3, kind: input, shape index: {}]   ;;  %s962_s4 = inlined_call_operand.vmem [shape: f32[1,256], index: 4, kind: input, shape index: {}]   ;;  %s963_s5 = inlined_call_operand.vmem [shape: f32[1,256], index: 5, kind: input, shape index: {}]   ;;  %s964_s6 = inlined_call_operand.vmem [shape: f32[784,256], index: 6, kind: output, shape index: {}]  }
   0x1 LB: > { %s656_s22 = sadd.s32 4294967295, %s690_s21   ;;  %p660_p0 = scmp.ge.s32.totalorder %s690_s21, 1  ;;  %s690_s21 = sphi %s727_s21, %s16_s21  }
   0x2   : > { %p226_p1 = scmp.lt.s32.totalorder %s690_s21, 8 }
   0x4   : > { %p227_p2 = pnand %p660_p0, %p226_p1 }
   0x5   : > { %s264_s15 = smul.u32 (!%p227_p2), 14, %s656_s22 }
   0x6   : > { %230 = sbr.rel (%p227_p2) target bundleno = 98 (0x62), region = 44 }
   0x7   : > { %p265_p3 = scmp.lt.s32.totalorder (!%p227_p2), %s264_s15, 97 }
   0xb   : > { %v285_v0 = vld [vmem:[%s960_s2] sm:$0x3]  ;;  %v286_v1 = vld [vmem:[%s960_s2 + $0x2] sm:$0x3]  ;;  %vm309_vm0 = vcmask 1040384   ;;  %s966_s15 = smov (!%p265_p3, %s264_s15), 97 }
   0xc   : > { %v287_v2 = vld [vmem:[%s960_s2 + $0x4] sm:$0x3]  ;;  %v288_v3 = vld [vmem:[%s960_s2 + $0x6] sm:$0x3]  ;;  %v293_v4 = vperm.slane %v285_v0, 0  ;;  %v294_v5 = vperm.slane %v285_v0, 1 }
   0xd   : > { %v295_v6 = vperm.slane %v286_v1, 0  ;;  %v296_v7 = vperm.slane %v286_v1, 1  ;;  %v297_v8 = vperm.slane %v287_v2, 0  ;;  %v298_v9 = vperm.slane %v287_v2, 1  ;;  %v324_v14 = vld [vmem:[%s961_s3] sm:$0x3] }
   0xe   : > { %v299_v10 = vperm.slane %v288_v3, 0  ;;  %v300_v11 = vperm.slane %v288_v3, 1  ;;  %v310_v12 = vsel %vm309_vm0, %v293_v4, 0.0  ;;  %v317_v13 = vsel %vm309_vm0, %v294_v5, 0.0  ;;  %v325_v22 = vld [vmem:[%s961_s3 + $0x2] sm:$0x3] }
   0xf   : > { %v311_v15 = vsel %vm309_vm0, %v295_v6, 0.0  ;;  %v313_v16 = vsel %vm309_vm0, %v297_v8, 0.0  ;;  %v318_v17 = vsel %vm309_vm0, %v296_v7, 0.0  ;;  %v320_v18 = vsel %vm309_vm0, %v298_v9, 0.0  ;;  %v326_v23 = vld [vmem:[%s961_s3 + $0x4] sm:$0x3] }
  0x10   : > { %v312_v19 = vadd.f32 %v311_v15, %v310_v12  ;;  %v315_v20 = vsel %vm309_vm0, %v299_v10, 0.0  ;;  %v319_v21 = vadd.f32 %v318_v17, %v317_v13  ;;  %v322_v24 = vsel %vm309_vm0, %v300_v11, 0.0  ;;  %v327_v25 = vld [vmem:[%s961_s3 + $0x6] sm:$0x3]  ;;  %s777_s16 = sshll.u32 %s966_s15, 4 }
  0x11   : > { %v332_v26 = vperm.slane %v324_v14, 0  ;;  %v333_v27 = vperm.slane %v324_v14, 1  ;;  %v334_v28 = vperm.slane %v325_v22, 0  ;;  %v335_v31 = vperm.slane %v325_v22, 1  ;;  %v370_v12 = vld [vmem:[%s962_s4] sm:$0x3]  ;;  %s786_s22 = scalar_lea.vmem %s959_s1, %s777_s16  ;;  %s800_s25 = scalar_lea.vmem %s958_s0, %s777_s16 }
  0x12   : > { %v314_v29 = vadd.f32 %v313_v16, %v312_v19  ;;  %v321_v30 = vadd.f32 %v320_v18, %v319_v21  ;;  %v336_v32 = vperm.slane %v326_v23, 0  ;;  %v337_v33 = vperm.slane %v326_v23, 1  ;;  %v441_v18 = vld [vmem:[%s786_s22] sm:$0xff]  ;;  %v442_v19 = vld [vmem:[%s786_s22 + $0x8] sm:$0xff]  ;;  %v444_v21 = vld [vmem:[%s786_s22 + $0x18] sm:$0xff]  ;;  %s842_s30 = scalar_lea.vmem %s964_s6, %s777_s16 }
  0x13   : > { %v338_v34 = vperm.slane %v327_v25, 0  ;;  %v339_v35 = vperm.slane %v327_v25, 1  ;;  %v348_v36 = vsel %vm309_vm0, %v332_v26, 0.0  ;;  %v349_v39 = vsel %vm309_vm0, %v334_v28, 0.0  ;;  %v399_v25 = vld [vmem:[%s963_s5] sm:$0x3] }
  0x14   : > { %v316_v37 = vadd.f32 %v315_v20, %v314_v29  ;;  %v323_v38 = vadd.f32 %v322_v24, %v321_v30  ;;  %v351_v40 = vsel %vm309_vm0, %v336_v32, 0.0  ;;  %v350_v41 = vadd.f32 %v349_v39, %v348_v36  ;;  %v443_v20 = vld [vmem:[%s786_s22 + $0x10] sm:$0xff]  ;;  %v445_v24 = vld [vmem:[%s786_s22 + $0x20] sm:$0xff]  ;;  %v446_v29 = vld [vmem:[%s786_s22 + $0x28] sm:$0xff] }
  0x15   : > { %v355_v42 = vsel %vm309_vm0, %v333_v27, 0.0  ;;  %v356_v43 = vsel %vm309_vm0, %v335_v31, 0.0  ;;  %v353_v44 = vsel %vm309_vm0, %v338_v34, 0.0  ;;  %v358_v46 = vsel %vm309_vm0, %v337_v33, 0.0  ;;  %v447_v30 = vld [vmem:[%s786_s22 + $0x30] sm:$0xff]  ;;  %v413_v32 = vld [vmem:[%s800_s25] sm:$0xff] }
  0x16   : > { %v357_v45 = vadd.f32 %v356_v43, %v355_v42  ;;  %v362_v47 = vmul.f32 0.0012755102, %v316_v37  ;;  %v352_v48 = vadd.f32 %v351_v40, %v350_v41  ;;  %v360_v49 = vsel %vm309_vm0, %v339_v35, 0.0  ;;  %v414_v33 = vld [vmem:[%s800_s25 + $0x8] sm:$0xff]  ;;  %v415_v34 = vld [vmem:[%s800_s25 + $0x10] sm:$0xff]  ;;  %v416_v36 = vld [vmem:[%s800_s25 + $0x18] sm:$0xff] }
  0x17   : > { %v363_v50 = vmul.f32 0.0012755102, %v323_v38  ;;  %v448_v38 = vld [vmem:[%s786_s22 + $0x38] sm:$0xff]  ;;  %v417_v40 = vld [vmem:[%s800_s25 + $0x20] sm:$0xff] }
  0x18   : > { %v359_v51 = vadd.f32 %v358_v46, %v357_v45  ;;  %v354_v52 = vadd.f32 %v353_v44, %v352_v48  ;;  %v366_v53 = vmul.f32 %v362_v47, %v362_v47  ;;  %v449_v43 = vld [vmem:[%s786_s22 + $0x40] sm:$0xff]  ;;  %v418_v48 = vld [vmem:[%s800_s25 + $0x28] sm:$0xff] }
  0x19   : > { %v367_v55 = vmul.f32 %v363_v50, %v363_v50 }
  0x1a   : > { %v361_v54 = vadd.f32 %v360_v49, %v359_v51  ;;  %v364_v56 = vmul.f32 0.0012755102, %v354_v52  ;;  %v419_v49 = vld [vmem:[%s800_s25 + $0x30] sm:$0xff] }
  0x1c   : > { %v365_v57 = vmul.f32 0.0012755102, %v361_v54  ;;  %v368_v58 = vsub.f32 %v364_v56, %v366_v53  ;;  %v451_v53 = vld [vmem:[%s786_s22 + $0x50] sm:$0xff] }
  0x1e   : > { %v369_v59 = vsub.f32 %v365_v57, %v367_v55  ;;  %v371_v60 = vadd.f32 1e-05, %v368_v58  ;;  %v420_v57 = vld [vmem:[%s800_s25 + $0x38] sm:$0xff] }
  0x20   : > { %v372_v61 = vadd.f32 1e-05, %v369_v59  ;;  %680 = vrsqrt.f32 %v371_v60  ;;  %vm379_vm1 = vweird.f32 %v371_v60  ;;  %v452_v59 = vld [vmem:[%s786_s22 + $0x58] sm:$0xff] }
  0x22   : > { %682 = vrsqrt.f32 %v372_v61  ;;  %vm389_vm3 = vweird.f32 %v372_v61 }
  0x26   : > { %v681_v62 = vpop.eup %680 }
  0x27   : > { %v374_v0 = vmul.f32 %v681_v62, %v371_v60  ;;  %vm380_vm2 = vweird.f32 %v681_v62 }
  0x28   : > { %v683_v63 = vpop.eup %682  ;;  %vm381_vm5 = vmor %vm379_vm1, %vm380_vm2 }
  0x29   : > { %v384_v1 = vmul.f32 %v683_v63, %v372_v61  ;;  %v375_v2 = vmul.f32 %v681_v62, %v374_v0  ;;  %vm390_vm4 = vweird.f32 %v683_v63  ;;  %v453_v0 = vld [vmem:[%s786_s22 + $0x60] sm:$0xff] }
  0x2a   : > { %vm391_vm6 = vmor %vm389_vm3, %vm390_vm4 }
  0x2b   : > { %v385_v3 = vmul.f32 %v683_v63, %v384_v1  ;;  %v376_v4 = vmul.f32 0.5, %v375_v2 }
  0x2d   : > { %v386_v5 = vmul.f32 0.5, %v385_v3  ;;  %v377_v6 = vsub.f32 1.5, %v376_v4  ;;  %v422_v4 = vld [vmem:[%s800_s25 + $0x48] sm:$0xff] }
  0x2f   : > { %v387_v7 = vsub.f32 1.5, %v386_v5  ;;  %v378_v8 = vmul.f32 %v681_v62, %v377_v6  ;;  %v454_v6 = vld [vmem:[%s786_s22 + $0x68] sm:$0xff] }
  0x31   : > { %v388_v9 = vmul.f32 %v683_v63, %v387_v7  ;;  %v382_v10 = vsel %vm381_vm5, %v681_v62, %v378_v8  ;;  %v421_v62 = vld [vmem:[%s800_s25 + $0x40] sm:$0xff] }
  0x33   : > { %v392_v11 = vsel %vm391_vm6, %v683_v63, %v388_v9  ;;  %v423_v9 = vld [vmem:[%s800_s25 + $0x50] sm:$0xff] }
  0x34   : > { %v395_v13 = vrot.slane %v392_v11, 7  ;;  %v455_v11 = vld [vmem:[%s786_s22 + $0x70] sm:$0xff] }
  0x36   : > { %v396_v14 = vsel %vm309_vm0, %v382_v10, %v395_v13 }
  0x37   : > { %v398_v15 = vmul.f32 %v396_v14, %v370_v12  ;;  %v424_v14 = vld [vmem:[%s800_s25 + $0x58] sm:$0xff] }
  0x39   : > { %v789_v16 = vperm.slane %v398_v15, 0  ;;  %v791_v17 = vperm.slane %v398_v15, 1 }
  0x3b   : > { %v405_v22 = vmul.f32 %v789_v16, %v362_v47  ;;  %v406_v23 = vmul.f32 %v791_v17, %v363_v50  ;;  %v469_v26 = vmul.f32 %v441_v18, %v789_v16  ;;  %v470_v27 = vmul.f32 %v442_v19, %v791_v17  ;;  %v450_v50 = vld [vmem:[%s786_s22 + $0x48] sm:$0xff]  ;;  %v456_v18 = vld [vmem:[%s786_s22 + $0x78] sm:$0xff] }
  0x3c   : > { %v471_v28 = vmul.f32 %v443_v20, %v789_v16  ;;  %v472_v35 = vmul.f32 %v444_v21, %v791_v17  ;;  %v473_v37 = vmul.f32 %v445_v24, %v789_v16  ;;  %v474_v41 = vmul.f32 %v446_v29, %v791_v17  ;;  %v425_v21 = vld [vmem:[%s800_s25 + $0x60] sm:$0xff] }
  0x3d   : > { %v409_v31 = vrot.slane %v406_v23, 7  ;;  %v475_v42 = vmul.f32 %v447_v30, %v789_v16  ;;  %v497_v45 = vadd.f32 %v469_v26, %v413_v32  ;;  %v498_v46 = vadd.f32 %v470_v27, %v414_v33  ;;  %v457_v23 = vld [vmem:[%s786_s22 + $0x80] sm:$0xff]  ;;  %v426_v26 = vld [vmem:[%s800_s25 + $0x68] sm:$0xff]  ;;  %v459_v33 = vld [vmem:[%s786_s22 + $0x90] sm:$0xff] }
  0x3e   : > { %v499_v47 = vadd.f32 %v471_v28, %v415_v34  ;;  %v500_v51 = vadd.f32 %v472_v35, %v416_v36  ;;  %v476_v52 = vmul.f32 %v448_v38, %v791_v17  ;;  %v501_v56 = vadd.f32 %v473_v37, %v417_v40  ;;  %v458_v28 = vld [vmem:[%s786_s22 + $0x88] sm:$0xff]  ;;  %v428_v36 = vld [vmem:[%s800_s25 + $0x78] sm:$0xff] }
  0x3f   : > { %v410_v39 = vsel %vm309_vm0, %v405_v22, %v409_v31  ;;  %v477_v58 = vmul.f32 %v449_v43, %v789_v16  ;;  %v502_v60 = vadd.f32 %v474_v41, %v418_v48  ;;  %v503_v61 = vadd.f32 %v475_v42, %v419_v49  ;;  %v427_v31 = vld [vmem:[%s800_s25 + $0x70] sm:$0xff]  ;;  %v460_v38 = vld [vmem:[%s786_s22 + $0x98] sm:$0xff]  ;;  %v429_v41 = vld [vmem:[%s800_s25 + $0x80] sm:$0xff] }
  0x40   : > { %v412_v44 = vsub.f32 %v399_v25, %v410_v39  ;;  %v478_v63 = vmul.f32 %v450_v50, %v791_v17  ;;  %v479_v5 = vmul.f32 %v451_v53, %v789_v16  ;;  %v504_v8 = vadd.f32 %v476_v52, %v420_v57  ;;  %v461_v43 = vld [vmem:[%s786_s22 + $0xa0] sm:$0xff]  ;;  %v462_v48 = vld [vmem:[%s786_s22 + $0xa8] sm:$0xff]  ;;  %v463_v53 = vld [vmem:[%s786_s22 + $0xb0] sm:$0xff] }
  0x41   : > { %v480_v10 = vmul.f32 %v452_v59, %v791_v17  ;;  %v505_v13 = vadd.f32 %v477_v58, %v421_v62  ;;  %v481_v15 = vmul.f32 %v453_v0, %v789_v16  ;;  %v482_v22 = vmul.f32 %v454_v6, %v791_v17  ;;  %v432_v58 = vld [vmem:[%s800_s25 + $0x98] sm:$0xff]  ;;  %v466_v6 = vld [vmem:[%s786_s22 + $0xc8] sm:$0xff] }
  0x42   : > { %v831_v54 = vperm.slane %v412_v44, 0  ;;  %v833_v55 = vperm.slane %v412_v44, 1  ;;  %v506_v20 = vadd.f32 %v478_v63, %v422_v4  ;;  %v507_v25 = vadd.f32 %v479_v5, %v423_v9  ;;  %v433_v63 = vld [vmem:[%s800_s25 + $0xa0] sm:$0xff]  ;;  %v434_v4 = vld [vmem:[%s800_s25 + $0xa8] sm:$0xff]  ;;  %v435_v9 = vld [vmem:[%s800_s25 + $0xb0] sm:$0xff] }
  0x43   : > { %v483_v27 = vmul.f32 %v455_v11, %v789_v16  ;;  %v508_v30 = vadd.f32 %v480_v10, %v424_v14  ;;  %v484_v32 = vmul.f32 %v456_v18, %v791_v17  ;;  %v509_v35 = vadd.f32 %v481_v15, %v425_v21  ;;  %v467_v11 = vld [vmem:[%s786_s22 + $0xd0] sm:$0xff]  ;;  %v436_v14 = vld [vmem:[%s800_s25 + $0xb8] sm:$0xff]  ;;  %v437_v21 = vld [vmem:[%s800_s25 + $0xc0] sm:$0xff] }
  0x44   : > { %v530_v1 = vadd.f32 %v831_v54, %v497_v45  ;;  %v531_v2 = vadd.f32 %v833_v55, %v498_v46  ;;  %v532_v3 = vadd.f32 %v831_v54, %v499_v47  ;;  %v533_v7 = vadd.f32 %v833_v55, %v500_v51  ;;  %v430_v46 = vld [vmem:[%s800_s25 + $0x88] sm:$0xff]  ;;  %v431_v51 = vld [vmem:[%s800_s25 + $0x90] sm:$0xff]  ;;  %v468_v18 = vld [vmem:[%s786_s22 + $0xd8] sm:$0xff] }
  0x45   : > { %v534_v12 = vadd.f32 %v831_v54, %v501_v56  ;;  %v535_v19 = vadd.f32 %v833_v55, %v502_v60  ;;  %v536_v24 = vadd.f32 %v831_v54, %v503_v61  ;;  %v537_v29 = vadd.f32 %v833_v55, %v504_v8  ;;  %v464_v60 = vld [vmem:[%s786_s22 + $0xb8] sm:$0xff] }
  0x46   : > { %558 = vst [vmem:[%s842_s30] sm:$0xff] %v530_v1  ;;  %v538_v34 = vadd.f32 %v831_v54, %v505_v13  ;;  %v485_v37 = vmul.f32 %v457_v23, %v789_v16  ;;  %v539_v39 = vadd.f32 %v833_v55, %v506_v20  ;;  %v510_v40 = vadd.f32 %v482_v22, %v426_v26  ;;  %v465_v1 = vld [vmem:[%s786_s22 + $0xc0] sm:$0xff] }
  0x47   : > { %559 = vst [vmem:[%s842_s30 + $0x8] sm:$0xff] %v531_v2  ;;  %v486_v42 = vmul.f32 %v458_v28, %v791_v17  ;;  %v540_v44 = vadd.f32 %v831_v54, %v507_v25  ;;  %v511_v45 = vadd.f32 %v483_v27, %v427_v31  ;;  %v487_v47 = vmul.f32 %v459_v33, %v789_v16  ;;  %v438_v25 = vld [vmem:[%s800_s25 + $0xc8] sm:$0xff]  ;;  %v440_v33 = vld [vmem:[%s800_s25 + $0xd8] sm:$0xff] }
  0x48   : > { %560 = vst [vmem:[%s842_s30 + $0x10] sm:$0xff] %v532_v3  ;;  %v541_v49 = vadd.f32 %v833_v55, %v508_v30  ;;  %v512_v50 = vadd.f32 %v484_v32, %v428_v36  ;;  %v488_v52 = vmul.f32 %v460_v38, %v791_v17  ;;  %v542_v56 = vadd.f32 %v831_v54, %v509_v35 }
  0x49   : > { %561 = vst [vmem:[%s842_s30 + $0x18] sm:$0xff] %v533_v7  ;;  %v513_v57 = vadd.f32 %v485_v37, %v429_v41  ;;  %v489_v59 = vmul.f32 %v461_v43, %v789_v16  ;;  %v543_v61 = vadd.f32 %v833_v55, %v510_v40  ;;  %v514_v62 = vadd.f32 %v486_v42, %v430_v46 }
  0x4a   : > { %562 = vst [vmem:[%s842_s30 + $0x20] sm:$0xff] %v534_v12  ;;  %v490_v0 = vmul.f32 %v462_v48, %v791_v17  ;;  %v544_v2 = vadd.f32 %v831_v54, %v511_v45  ;;  %v515_v3 = vadd.f32 %v487_v47, %v431_v51  ;;  %v491_v5 = vmul.f32 %v463_v53, %v789_v16 }
  0x4b   : > { %563 = vst [vmem:[%s842_s30 + $0x28] sm:$0xff] %v535_v19  ;;  %v545_v7 = vadd.f32 %v833_v55, %v512_v50  ;;  %v516_v8 = vadd.f32 %v488_v52, %v432_v58  ;;  %v492_v10 = vmul.f32 %v464_v60, %v791_v17  ;;  %v546_v12 = vadd.f32 %v831_v54, %v513_v57 }
  0x4c   : > { %564 = vst [vmem:[%s842_s30 + $0x30] sm:$0xff] %v536_v24  ;;  %v517_v13 = vadd.f32 %v489_v59, %v433_v63  ;;  %v493_v15 = vmul.f32 %v465_v1, %v789_v16  ;;  %v547_v19 = vadd.f32 %v833_v55, %v514_v62  ;;  %v518_v20 = vadd.f32 %v490_v0, %v434_v4 }
  0x4d   : > { %565 = vst [vmem:[%s842_s30 + $0x38] sm:$0xff] %v537_v29  ;;  %v494_v22 = vmul.f32 %v466_v6, %v791_v17  ;;  %v548_v23 = vadd.f32 %v831_v54, %v515_v3  ;;  %v519_v24 = vadd.f32 %v491_v5, %v435_v9  ;;  %v495_v26 = vmul.f32 %v467_v11, %v789_v16  ;;  %v439_v29 = vld [vmem:[%s800_s25 + $0xd0] sm:$0xff] }
  0x4e   : > { %566 = vst [vmem:[%s842_s30 + $0x40] sm:$0xff] %v538_v34  ;;  %v549_v27 = vadd.f32 %v833_v55, %v516_v8  ;;  %v520_v28 = vadd.f32 %v492_v10, %v436_v14  ;;  %v496_v30 = vmul.f32 %v468_v18, %v791_v17  ;;  %v550_v31 = vadd.f32 %v831_v54, %v517_v13 }
  0x4f   : > { %567 = vst [vmem:[%s842_s30 + $0x48] sm:$0xff] %v539_v39  ;;  %v521_v32 = vadd.f32 %v493_v15, %v437_v21  ;;  %v551_v16 = vadd.f32 %v833_v55, %v518_v20  ;;  %v522_v34 = vadd.f32 %v494_v22, %v438_v25  ;;  %v552_v35 = vadd.f32 %v831_v54, %v519_v24 }
  0x50   : > { %568 = vst [vmem:[%s842_s30 + $0x50] sm:$0xff] %v540_v44  ;;  %v523_v17 = vadd.f32 %v495_v26, %v439_v29  ;;  %v553_v36 = vadd.f32 %v833_v55, %v520_v28  ;;  %v524_v37 = vadd.f32 %v496_v30, %v440_v33 }
  0x51   : > { %569 = vst [vmem:[%s842_s30 + $0x58] sm:$0xff] %v541_v49  ;;  %v554_v38 = vadd.f32 %v831_v54, %v521_v32  ;;  %v555_v39 = vadd.f32 %v833_v55, %v522_v34 }
  0x52   : > { %570 = vst [vmem:[%s842_s30 + $0x60] sm:$0xff] %v542_v56  ;;  %v556_v40 = vadd.f32 %v831_v54, %v523_v17  ;;  %v557_v41 = vadd.f32 %v833_v55, %v524_v37 }
  0x53   : > { %571 = vst [vmem:[%s842_s30 + $0x68] sm:$0xff] %v543_v61 }
  0x54   : > { %572 = vst [vmem:[%s842_s30 + $0x70] sm:$0xff] %v544_v2 }
  0x55   : > { %573 = vst [vmem:[%s842_s30 + $0x78] sm:$0xff] %v545_v7 }
  0x56   : > { %574 = vst [vmem:[%s842_s30 + $0x80] sm:$0xff] %v546_v12 }
  0x57   : > { %575 = vst [vmem:[%s842_s30 + $0x88] sm:$0xff] %v547_v19 }
  0x58   : > { %576 = vst [vmem:[%s842_s30 + $0x90] sm:$0xff] %v548_v23 }
  0x59   : > { %577 = vst [vmem:[%s842_s30 + $0x98] sm:$0xff] %v549_v27 }
  0x5a   : > { %578 = vst [vmem:[%s842_s30 + $0xa0] sm:$0xff] %v550_v31 }
  0x5b   : > { %579 = vst [vmem:[%s842_s30 + $0xa8] sm:$0xff] %v551_v16 }
  0x5c   : > { %580 = vst [vmem:[%s842_s30 + $0xb0] sm:$0xff] %v552_v35 }
  0x5d   : > { %581 = vst [vmem:[%s842_s30 + $0xb8] sm:$0xff] %v553_v36 }
  0x5e   : > { %582 = vst [vmem:[%s842_s30 + $0xc0] sm:$0xff] %v554_v38 }
  0x5f   : > { %583 = vst [vmem:[%s842_s30 + $0xc8] sm:$0xff] %v555_v39 }
  0x60   : > { %584 = vst [vmem:[%s842_s30 + $0xd0] sm:$0xff] %v556_v40 }
  0x61   : > { %585 = vst [vmem:[%s842_s30 + $0xd8] sm:$0xff] %v557_v41 }
  0x62 PF: > { %s16_s21 = sadd.s32 1, %s690_s21  }
  0x63   : > { %p13_p4 = scmp.ge.s32.totalorder %s16_s21, 9  }
  0x65   :  { %15 = sbr.rel (!%p13_p4) target bundleno = 1 (0x1), region = 77 }

</bundles_post_ra>
